<compile_context>
chip_gen: v5e
topology: v5e:2x2
jax: 0.10.0
libtpu: 0.0.40
codegen_flags: <defaults>
</compile_context>

<pallas_src>
import functools
import math

import jax
import jax.numpy as jnp
import numpy as np
from jax.experimental import pallas as pl
from jax.experimental.pallas import tpu as pltpu


# --------------------------------------------------------------------------
# helpers
# --------------------------------------------------------------------------

def _row_tile(rows, block_rows):
    """Row tile: full rows if they fit, else block_rows rounded down to a multiple of 8."""
    if rows <= block_rows:
        return rows
    return max(8, (block_rows // 8) * 8)


def _compiler_params(block_bytes):
    # Budget against the smallest physical VMEM (v7x: 64 MiB scoped 32 MiB); leave headroom
    # for double-buffering + compiler scratch.
    limit = int(min(48 * 1024 * 1024, max(16 * 1024 * 1024, int(1.5 * block_bytes))))
    return pltpu.CompilerParams(
        dimension_semantics=("parallel",),
        vmem_limit_bytes=limit,
    )


def _gelu_tanh(x):
    # TODO(synk): torch.nn.GELU defaults to the exact erf formulation; tanh approximation
    # is used here for robust Mosaic lowering (difference < 1e-3).
    return 0.5 * x * (1.0 + jnp.tanh(0.7978845608028654 * (x + 0.044715 * x * x * x)))


# --------------------------------------------------------------------------
# Kernel 1: fused LayerNorm + Linear (+ optional GELU)
# --------------------------------------------------------------------------

def _ln_matmul_kernel(x_ref, g_ref, b_ref, w_ref, bias_ref, o_ref, *, eps, act):
    x = x_ref[...].astype(jnp.float32)                       # (TM, D)
    mean = jnp.mean(x, axis=-1, keepdims=True)
    cen = x - mean
    var = jnp.mean(cen * cen, axis=-1, keepdims=True)        # biased variance, like torch
    y = cen * jax.lax.rsqrt(var + eps)
    y = y * g_ref[...].astype(jnp.float32) + b_ref[...].astype(jnp.float32)
    h = jnp.dot(y.astype(w_ref.dtype), w_ref[...],
                preferred_element_type=jnp.float32)           # (TM, Dout) on the MXU
    h = h + bias_ref[...].astype(jnp.float32)
    if act == "gelu":
        h = _gelu_tanh(h)
    o_ref[...] = h.astype(o_ref.dtype)


def ln_matmul(x2d, gamma, beta, w, bias, *, eps=1e-5, act=None, block_rows=512):
    rows, d = x2d.shape
    dout = w.shape[1]
    tm = _row_tile(rows, block_rows)
    grid = (pl.cdiv(rows, tm),)
    itm = jnp.dtype(x2d.dtype).itemsize
    block_bytes = itm * (2 * tm * (d + dout) + 2 * (2 * d + d * dout + dout))
    return pl.pallas_call(
        functools.partial(_ln_matmul_kernel, eps=eps, act=act),
        out_shape=jax.ShapeDtypeStruct((rows, dout), x2d.dtype),
        grid_spec=pltpu.PrefetchScalarGridSpec(
            num_scalar_prefetch=0,
            grid=grid,
            in_specs=[
                pl.BlockSpec((tm, d), lambda i: (i, 0)),      # x row tile (pipelined)
                pl.BlockSpec((1, d), lambda i: (0, 0)),       # gamma (resident)
                pl.BlockSpec((1, d), lambda i: (0, 0)),       # beta  (resident)
                pl.BlockSpec((d, dout), lambda i: (0, 0)),    # W     (resident)
                pl.BlockSpec((1, dout), lambda i: (0, 0)),    # bias  (resident)
            ],
            out_specs=pl.BlockSpec((tm, dout), lambda i: (i, 0)),
        ),
        compiler_params=_compiler_params(block_bytes),
    )(x2d, gamma.reshape(1, d), beta.reshape(1, d), w, bias.reshape(1, dout))


# --------------------------------------------------------------------------
# Kernel 2: fused Linear + bias + residual add
# --------------------------------------------------------------------------

def _matmul_bias_res_kernel(x_ref, w_ref, bias_ref, res_ref, o_ref):
    acc = jnp.dot(x_ref[...], w_ref[...], preferred_element_type=jnp.float32)
    acc = acc + bias_ref[...].astype(jnp.float32) + res_ref[...].astype(jnp.float32)
    o_ref[...] = acc.astype(o_ref.dtype)


def matmul_bias_res(x2d, w, bias, res2d, *, block_rows=512):
    rows, d = x2d.shape
    dout = w.shape[1]
    tm = _row_tile(rows, block_rows)
    grid = (pl.cdiv(rows, tm),)
    itm = jnp.dtype(x2d.dtype).itemsize
    block_bytes = itm * (2 * tm * (d + 2 * dout) + 2 * (d * dout + dout))
    return pl.pallas_call(
        _matmul_bias_res_kernel,
        out_shape=jax.ShapeDtypeStruct((rows, dout), x2d.dtype),
        grid_spec=pltpu.PrefetchScalarGridSpec(
            num_scalar_prefetch=0,
            grid=grid,
            in_specs=[
                pl.BlockSpec((tm, d), lambda i: (i, 0)),      # x row tile
                pl.BlockSpec((d, dout), lambda i: (0, 0)),    # W resident
                pl.BlockSpec((1, dout), lambda i: (0, 0)),    # bias resident
                pl.BlockSpec((tm, dout), lambda i: (i, 0)),   # residual row tile
            ],
            out_specs=pl.BlockSpec((tm, dout), lambda i: (i, 0)),
        ),
        compiler_params=_compiler_params(block_bytes),
    )(x2d, w, bias.reshape(1, dout), res2d)


# --------------------------------------------------------------------------
# Kernel 3: attention core, one grid step per (batch, head)
# --------------------------------------------------------------------------

def _attention_kernel(q_ref, k_ref, v_ref, t_ref, a2_ref, o_ref, *, scale):
    q = q_ref[0].astype(jnp.float32)                          # (N, Dh)
    k = k_ref[0].astype(jnp.float32)
    v = v_ref[0].astype(jnp.float32)
    t = t_ref[0].astype(jnp.float32)
    # q @ k^T on the MXU (contraction over Dh; rhs transposed, no explicit transpose op).
    dots = jax.lax.dot_general(q, k, (((1,), (1,)), ((), ())),
                               preferred_element_type=jnp.float32) * scale
    m = jnp.max(dots, axis=-1, keepdims=True)
    e = jnp.exp(dots - m)
    attn1 = e / jnp.sum(e, axis=-1, keepdims=True)
    o1 = jnp.dot(attn1, v, preferred_element_type=jnp.float32)
    o2 = jnp.dot(a2_ref[...].astype(jnp.float32), t, preferred_element_type=jnp.float32)
    o_ref[0] = jnp.concatenate([o1, o2], axis=-1).astype(o_ref.dtype)   # lane-dense store


def attention_core(q, k, v, t, attn2, scale):
    bh, n, dh = q.shape
    itm = jnp.dtype(q.dtype).itemsize
    block_bytes = itm * (2 * 4 * n * dh + 2 * n * n + 2 * n * 2 * dh)
    spec_head = pl.BlockSpec((1, n, dh), lambda i: (i, 0, 0))
    return pl.pallas_call(
        functools.partial(_attention_kernel, scale=scale),
        out_shape=jax.ShapeDtypeStruct((bh, n, 2 * dh), q.dtype),
        grid_spec=pltpu.PrefetchScalarGridSpec(
            num_scalar_prefetch=0,
            grid=(bh,),
            in_specs=[spec_head, spec_head, spec_head, spec_head,
                      pl.BlockSpec((n, n), lambda i: (0, 0))],          # attn2 resident
            out_specs=pl.BlockSpec((1, n, 2 * dh), lambda i: (i, 0, 0)),
        ),
        compiler_params=_compiler_params(block_bytes),
    )(q, k, v, t, attn2)


# --------------------------------------------------------------------------
# Transformer forward (JAX glue around the Pallas kernels)
# --------------------------------------------------------------------------

def transformer_forward(x, layers, *, heads, dim_head, block_rows=512):
    b, n, d = x.shape
    inner = heads * dim_head
    scale = dim_head ** (-0.5)
    rows = b * n

    # Fixed positional-decay attention matrix attn2 = exp(-|i-j|/e) / column sums,
    # shared by all layers/heads; precomputed once as a constant kernel input.
    idx = jnp.arange(1, n + 1, dtype=jnp.float32)
    tg = jnp.abs(idx[None, :] - idx[:, None])
    a2 = jnp.exp(-tg / math.e)
    a2 = a2 / a2.sum(-1)           # same broadcasting as the torch reference (divide by col sums)

    x2d = x.reshape(rows, d)
    for p in layers:
        # ---- x = Attention(LayerNorm(x)) + x ----
        qkvt = ln_matmul(x2d, p["ln1_g"], p["ln1_b"], p["w_qkv"],
                         jnp.zeros((4 * inner,), x2d.dtype),          # to_qkv has bias=False
                         block_rows=block_rows)                        # (rows, 4*inner)
        qkvt = qkvt.reshape(b, n, 4, heads, dim_head)
        q, k, v, t = [
            jnp.transpose(qkvt[:, :, i], (0, 2, 1, 3)).reshape(b * heads, n, dim_head)
            for i in range(4)
        ]
        o = attention_core(q, k, v, t, a2, scale)                      # (b*heads, n, 2*dim_head)
        o = jnp.transpose(o.reshape(b, heads, n, 2 * dim_head), (0, 2, 1, 3))
        o = o.reshape(rows, 2 * inner)
        x2d = matmul_bias_res(o, p["w_o"], p["b_o"], x2d, block_rows=block_rows)

        # ---- x = FeedForward(LayerNorm(x)) + x ----
        h = ln_matmul(x2d, p["ln2_g"], p["ln2_b"], p["w1"], p["b1"],
                      act="gelu", block_rows=block_rows)               # (rows, mlp_dim)
        x2d = matmul_bias_res(h, p["w2"], p["b2"], x2d, block_rows=block_rows)

    return x2d.reshape(b, n, d)


def init_params(key, depth, dim, heads, dim_head, mlp_dim):
    inner = heads * dim_head
    layers = []
    for _ in range(depth):
        key, *ks = jax.random.split(key, 11)
        rnd = lambda k, shape, s=0.02: s * jax.random.normal(k, shape, jnp.float32)
        layers.append(dict(
            ln1_g=1.0 + rnd(ks[0], (dim,), 0.1),
            ln1_b=rnd(ks[1], (dim,), 0.05),
            w_qkv=rnd(ks[2], (dim, 4 * inner)),
            w_o=rnd(ks[3], (2 * inner, dim)),
            b_o=rnd(ks[4], (dim,), 0.01),
            ln2_g=1.0 + rnd(ks[5], (dim,), 0.1),
            ln2_b=rnd(ks[6], (dim,), 0.05),
            w1=rnd(ks[7], (dim, mlp_dim)),
            b1=rnd(ks[8], (mlp_dim,), 0.01),
            w2=rnd(ks[9], (mlp_dim, dim)),
            b2=jnp.zeros((dim,), jnp.float32),
        ))
    return layers


# --------------------------------------------------------------------------
# Pure numpy (float64) reference of the PyTorch module for the sanity check
# --------------------------------------------------------------------------

def _np_layernorm(x, g, b, eps=1e-5):
    mu = x.mean(-1, keepdims=True)
    var = ((x - mu) ** 2).mean(-1, keepdims=True)
    return (x - mu) / np.sqrt(var + eps) * g + b


def _np_gelu_tanh(x):
    return 0.5 * x * (1.0 + np.tanh(0.7978845608028654 * (x + 0.044715 * x ** 3)))


def reference_transformer(x, layers, heads, dim_head):
    x = np.asarray(x, dtype=np.float64)
    b, n, d = x.shape
    scale = dim_head ** (-0.5)
    idx = np.arange(1, n + 1, dtype=np.float64)
    tg = np.abs(idx[None, :] - idx[:, None])
    a2 = np.exp(-tg / math.e)
    a2 = a2 / a2.sum(-1)
    for p_ in layers:
        p = {k_: np.asarray(v_, dtype=np.float64) for k_, v_ in p_.items()}
        # attention block
        h = _np_layernorm(x, p["ln1_g"], p["ln1_b"])
        qkvt = (h @ p["w_qkv"]).reshape(b, n, 4, heads, dim_head)
        q, k, v, t = [np.transpose(qkvt[:, :, i], (0, 2, 1, 3)) for i in range(4)]
        dots = np.einsum("bhqd,bhkd->bhqk", q, k) * scale
        m = dots.max(-1, keepdims=True)
        e = np.exp(dots - m)
        attn1 = e / e.sum(-1, keepdims=True)
        o1 = np.einsum("bhqk,bhkd->bhqd", attn1, v)
        o2 = np.einsum("qk,bhkd->bhqd", a2, t)
        o = np.concatenate([o1, o2], axis=-1)
        o = np.transpose(o, (0, 2, 1, 3)).reshape(b, n, heads * 2 * dim_head)
        x = o @ p["w_o"] + p["b_o"] + x
        # feed-forward block
        h = _np_layernorm(x, p["ln2_g"], p["ln2_b"])
        h = _np_gelu_tanh(h @ p["w1"] + p["b1"])
        x = h @ p["w2"] + p["b2"] + x
    return x


# --------------------------------------------------------------------------
# main
# --------------------------------------------------------------------------

if __name__ == "__main__":
    B, N, D = 2, 64, 128          # lane-dense feature dims (multiples of 128 where it matters)
    heads, dim_head = 2, 64       # inner_dim = 128, to_out = Linear(256, 128)
    mlp_dim = 256
    depth = 2

    key = jax.random.PRNGKey(0)
    kx, kp = jax.random.split(key)
    x = jax.random.normal(kx, (B, N, D), dtype=jnp.float32)
    params = init_params(kp, depth, D, heads, dim_head, mlp_dim)

    # block_rows=64 -> rows=128 gives a 2-step pipelined row grid for the fused kernels.
    fwd = jax.jit(functools.partial(transformer_forward, heads=heads,
                                    dim_head=dim_head, block_rows=64))
    out = jax.block_until_ready(fwd(x, params))

    ref = reference_transformer(x, params, heads, dim_head)
    err = float(np.max(np.abs(np.asarray(out, dtype=np.float64) - ref)))
    assert out.shape == (B, N, D)
    assert np.isfinite(err) and err < 2e-2, f"max abs err vs reference: {err}"
    print("KERNEL_OK")
</pallas_src>

<mosaic_0001>
module attributes {stable_mosaic.version = 11 : i64} {
  func.func @_ln_matmul_kernel(%arg0: i32, %arg1: memref<64x128xf32, #tpu.memory_space<vmem>>, %arg2: memref<1x128xf32, #tpu.memory_space<vmem>>, %arg3: memref<1x128xf32, #tpu.memory_space<vmem>>, %arg4: memref<128x512xf32, #tpu.memory_space<vmem>>, %arg5: memref<1x512xf32, #tpu.memory_space<vmem>>, %arg6: memref<64x512xf32, #tpu.memory_space<vmem>>) attributes {dimension_semantics = [#tpu.dimension_semantics<parallel>], iteration_bounds = array<i64: 2>, scalar_prefetch = 0 : i64, scratch_operands = 0 : i64, tpu.core_type = #tpu.core_type<tc>, window_params = [{transform_indices = @transform_0, window_bounds = array<i64: 64, 128>}, {pipeline_mode = #tpu.pipeline_mode<synchronous>, transform_indices = @transform_1, window_bounds = array<i64: 1, 128>}, {pipeline_mode = #tpu.pipeline_mode<synchronous>, transform_indices = @transform_2, window_bounds = array<i64: 1, 128>}, {pipeline_mode = #tpu.pipeline_mode<synchronous>, transform_indices = @transform_3, window_bounds = array<i64: 128, 512>}, {pipeline_mode = #tpu.pipeline_mode<synchronous>, transform_indices = @transform_4, window_bounds = array<i64: 1, 512>}, {transform_indices = @transform_5, window_bounds = array<i64: 64, 512>}]} {
    %c0 = arith.constant 0 : index
    %c0_0 = arith.constant 0 : index
    %0 = vector.load %arg1[%c0, %c0_0] : memref<64x128xf32, #tpu.memory_space<vmem>>, vector<64x128xf32>
    %cst = arith.constant dense<0.000000e+00> : vector<64xf32>
    %1 = vector.multi_reduction <add>, %0, %cst [1] : vector<64x128xf32> to vector<64xf32>
    %2 = vector.shape_cast %1 : vector<64xf32> to vector<64x1xf32>
    %cst_1 = arith.constant 1.280000e+02 : f32
    %3 = vector.broadcast %cst_1 : f32 to vector<64x1xf32>
    %4 = arith.divf %2, %3 : vector<64x1xf32>
    %5 = vector.broadcast %4 : vector<64x1xf32> to vector<64x128xf32>
    %6 = arith.subf %0, %5 : vector<64x128xf32>
    %7 = arith.mulf %6, %6 : vector<64x128xf32>
    %cst_2 = arith.constant dense<0.000000e+00> : vector<64xf32>
    %8 = vector.multi_reduction <add>, %7, %cst_2 [1] : vector<64x128xf32> to vector<64xf32>
    %9 = vector.shape_cast %8 : vector<64xf32> to vector<64x1xf32>
    %cst_3 = arith.constant 1.280000e+02 : f32
    %10 = vector.broadcast %cst_3 : f32 to vector<64x1xf32>
    %11 = arith.divf %9, %10 : vector<64x1xf32>
    %cst_4 = arith.constant 9.99999974E-6 : f32
    %12 = vector.broadcast %cst_4 : f32 to vector<64x1xf32>
    %13 = arith.addf %11, %12 : vector<64x1xf32>
    %14 = math.rsqrt %13 : vector<64x1xf32>
    %15 = vector.broadcast %14 : vector<64x1xf32> to vector<64x128xf32>
    %16 = arith.mulf %6, %15 : vector<64x128xf32>
    %c0_5 = arith.constant 0 : index
    %c0_6 = arith.constant 0 : index
    %17 = vector.load %arg2[%c0_5, %c0_6] : memref<1x128xf32, #tpu.memory_space<vmem>>, vector<1x128xf32>
    %18 = vector.broadcast %17 : vector<1x128xf32> to vector<64x128xf32>
    %19 = arith.mulf %16, %18 : vector<64x128xf32>
    %c0_7 = arith.constant 0 : index
    %c0_8 = arith.constant 0 : index
    %20 = vector.load %arg3[%c0_7, %c0_8] : memref<1x128xf32, #tpu.memory_space<vmem>>, vector<1x128xf32>
    %21 = vector.broadcast %20 : vector<1x128xf32> to vector<64x128xf32>
    %22 = arith.addf %19, %21 : vector<64x128xf32>
    %c0_9 = arith.constant 0 : index
    %c0_10 = arith.constant 0 : index
    %23 = vector.load %arg4[%c0_9, %c0_10] : memref<128x512xf32, #tpu.memory_space<vmem>>, vector<128x512xf32>
    %cst_11 = arith.constant dense<0.000000e+00> : vector<64x512xf32>
    %24 = tpu.matmul %22, %23, %cst_11 {dimension_numbers = #tpu.dot_dimension_numbers<[1], [0], [0], [1], [0, 0, 1, 1], [], []>} : vector<64x128xf32>, vector<128x512xf32>, vector<64x512xf32> -> vector<64x512xf32>
    %c0_12 = arith.constant 0 : index
    %c0_13 = arith.constant 0 : index
    %25 = vector.load %arg5[%c0_12, %c0_13] : memref<1x512xf32, #tpu.memory_space<vmem>>, vector<1x512xf32>
    %26 = vector.broadcast %25 : vector<1x512xf32> to vector<64x512xf32>
    %27 = arith.addf %24, %26 : vector<64x512xf32>
    %c0_14 = arith.constant 0 : index
    %c0_15 = arith.constant 0 : index
    %28 = vector.load %arg6[%c0_14, %c0_15] : memref<64x512xf32, #tpu.memory_space<vmem>>, vector<64x512xf32>
    tpu.vector_store %arg6[%c0_14, %c0_15], %27 {strides = array<i32>} : memref<64x512xf32, #tpu.memory_space<vmem>>, vector<64x512xf32>,
    return
  }
  func.func @transform_0(%arg0: i32) -> (i32, i32) {
    %c0_i32 = arith.constant 0 : i32
    %c0_i32_0 = arith.constant 0 : i32
    return %arg0, %c0_i32 : i32, i32
  }
  func.func @transform_1(%arg0: i32) -> (i32, i32) {
    %c0_i32 = arith.constant 0 : i32
    %c0_i32_0 = arith.constant 0 : i32
    %c0_i32_1 = arith.constant 0 : i32
    return %c0_i32, %c0_i32_0 : i32, i32
  }
  func.func @transform_2(%arg0: i32) -> (i32, i32) {
    %c0_i32 = arith.constant 0 : i32
    %c0_i32_0 = arith.constant 0 : i32
    %c0_i32_1 = arith.constant 0 : i32
    return %c0_i32, %c0_i32_0 : i32, i32
  }
  func.func @transform_3(%arg0: i32) -> (i32, i32) {
    %c0_i32 = arith.constant 0 : i32
    %c0_i32_0 = arith.constant 0 : i32
    %c0_i32_1 = arith.constant 0 : i32
    return %c0_i32, %c0_i32_0 : i32, i32
  }
  func.func @transform_4(%arg0: i32) -> (i32, i32) {
    %c0_i32 = arith.constant 0 : i32
    %c0_i32_0 = arith.constant 0 : i32
    %c0_i32_1 = arith.constant 0 : i32
    return %c0_i32, %c0_i32_0 : i32, i32
  }
  func.func @transform_5(%arg0: i32) -> (i32, i32) {
    %c0_i32 = arith.constant 0 : i32
    %c0_i32_0 = arith.constant 0 : i32
    return %arg0, %c0_i32 : i32, i32
  }
}

module attributes {stable_mosaic.version = 11 : i64} {
  func.func @_attention_kernel(%arg0: i32, %arg1: memref<1x64x64xf32, #tpu.memory_space<vmem>>, %arg2: memref<1x64x64xf32, #tpu.memory_space<vmem>>, %arg3: memref<1x64x64xf32, #tpu.memory_space<vmem>>, %arg4: memref<1x64x64xf32, #tpu.memory_space<vmem>>, %arg5: memref<64x64xf32, #tpu.memory_space<vmem>>, %arg6: memref<1x64x128xf32, #tpu.memory_space<vmem>>) attributes {dimension_semantics = [#tpu.dimension_semantics<parallel>], iteration_bounds = array<i64: 4>, scalar_prefetch = 0 : i64, scratch_operands = 0 : i64, tpu.core_type = #tpu.core_type<tc>, window_params = [{transform_indices = @transform_0, window_bounds = array<i64: 1, 64, 64>}, {transform_indices = @transform_1, window_bounds = array<i64: 1, 64, 64>}, {transform_indices = @transform_2, window_bounds = array<i64: 1, 64, 64>}, {transform_indices = @transform_3, window_bounds = array<i64: 1, 64, 64>}, {pipeline_mode = #tpu.pipeline_mode<synchronous>, transform_indices = @transform_4, window_bounds = array<i64: 64, 64>}, {transform_indices = @transform_5, window_bounds = array<i64: 1, 64, 128>}]} {
    %c0 = arith.constant 0 : index
    %c0_0 = arith.constant 0 : index
    %c0_1 = arith.constant 0 : index
    %0 = vector.load %arg1[%c0, %c0_0, %c0_1] : memref<1x64x64xf32, #tpu.memory_space<vmem>>, vector<1x64x64xf32>
    %1 = vector.shape_cast %0 : vector<1x64x64xf32> to vector<64x64xf32>
    %c0_2 = arith.constant 0 : index
    %c0_3 = arith.constant 0 : index
    %c0_4 = arith.constant 0 : index
    %2 = vector.load %arg2[%c0_2, %c0_3, %c0_4] : memref<1x64x64xf32, #tpu.memory_space<vmem>>, vector<1x64x64xf32>
    %3 = vector.shape_cast %2 : vector<1x64x64xf32> to vector<64x64xf32>
    %c0_5 = arith.constant 0 : index
    %c0_6 = arith.constant 0 : index
    %c0_7 = arith.constant 0 : index
    %4 = vector.load %arg3[%c0_5, %c0_6, %c0_7] : memref<1x64x64xf32, #tpu.memory_space<vmem>>, vector<1x64x64xf32>
    %5 = vector.shape_cast %4 : vector<1x64x64xf32> to vector<64x64xf32>
    %c0_8 = arith.constant 0 : index
    %c0_9 = arith.constant 0 : index
    %c0_10 = arith.constant 0 : index
    %6 = vector.load %arg4[%c0_8, %c0_9, %c0_10] : memref<1x64x64xf32, #tpu.memory_space<vmem>>, vector<1x64x64xf32>
    %7 = vector.shape_cast %6 : vector<1x64x64xf32> to vector<64x64xf32>
    %cst = arith.constant dense<0.000000e+00> : vector<64x64xf32>
    %8 = tpu.matmul %1, %3, %cst {dimension_numbers = #tpu.dot_dimension_numbers<[1], [1], [0], [0], [0, 0, 1, 0], [], []>} : vector<64x64xf32>, vector<64x64xf32>, vector<64x64xf32> -> vector<64x64xf32>
    %cst_11 = arith.constant 1.250000e-01 : f32
    %9 = vector.broadcast %cst_11 : f32 to vector<64x64xf32>
    %10 = arith.mulf %8, %9 : vector<64x64xf32>
    %cst_12 = arith.constant dense<0xFF800000> : vector<64xf32>
    %11 = vector.multi_reduction <maximumf>, %10, %cst_12 [1] : vector<64x64xf32> to vector<64xf32>
    %12 = vector.shape_cast %11 : vector<64xf32> to vector<64x1xf32>
    %13 = vector.broadcast %12 : vector<64x1xf32> to vector<64x64xf32>
    %14 = arith.subf %10, %13 : vector<64x64xf32>
    %15 = math.exp %14 : vector<64x64xf32>
    %cst_13 = arith.constant dense<0.000000e+00> : vector<64xf32>
    %16 = vector.multi_reduction <add>, %15, %cst_13 [1] : vector<64x64xf32> to vector<64xf32>
    %17 = vector.shape_cast %16 : vector<64xf32> to vector<64x1xf32>
    %18 = vector.broadcast %17 : vector<64x1xf32> to vector<64x64xf32>
    %19 = arith.divf %15, %18 : vector<64x64xf32>
    %cst_14 = arith.constant dense<0.000000e+00> : vector<64x64xf32>
    %20 = tpu.matmul %19, %5, %cst_14 {dimension_numbers = #tpu.dot_dimension_numbers<[1], [0], [0], [1], [0, 0, 1, 1], [], []>} : vector<64x64xf32>, vector<64x64xf32>, vector<64x64xf32> -> vector<64x64xf32>
    %c0_15 = arith.constant 0 : index
    %c0_16 = arith.constant 0 : index
    %21 = vector.load %arg5[%c0_15, %c0_16] : memref<64x64xf32, #tpu.memory_space<vmem>>, vector<64x64xf32>
    %cst_17 = arith.constant dense<0.000000e+00> : vector<64x64xf32>
    %22 = tpu.matmul %21, %7, %cst_17 {dimension_numbers = #tpu.dot_dimension_numbers<[1], [0], [0], [1], [0, 0, 1, 1], [], []>} : vector<64x64xf32>, vector<64x64xf32>, vector<64x64xf32> -> vector<64x64xf32>
    %23 = tpu.concatenate %20, %22 in 1 : vector<64x64xf32>, vector<64x64xf32> -> vector<64x128xf32>
    %c0_18 = arith.constant 0 : index
    %c0_19 = arith.constant 0 : index
    %c0_20 = arith.constant 0 : index
    %24 = vector.load %arg6[%c0_18, %c0_19, %c0_20] : memref<1x64x128xf32, #tpu.memory_space<vmem>>, vector<1x64x128xf32>
    %25 = vector.shape_cast %24 : vector<1x64x128xf32> to vector<64x128xf32>
    %26 = vector.shape_cast %23 : vector<64x128xf32> to vector<1x64x128xf32>
    tpu.vector_store %arg6[%c0_18, %c0_19, %c0_20], %26 {strides = array<i32>} : memref<1x64x128xf32, #tpu.memory_space<vmem>>, vector<1x64x128xf32>,
    return
  }
  func.func @transform_0(%arg0: i32) -> (i32, i32, i32) {
    %c0_i32 = arith.constant 0 : i32
    %c0_i32_0 = arith.constant 0 : i32
    %c0_i32_1 = arith.constant 0 : i32
    return %arg0, %c0_i32, %c0_i32_0 : i32, i32, i32
  }
  func.func @transform_1(%arg0: i32) -> (i32, i32, i32) {
    %c0_i32 = arith.constant 0 : i32
    %c0_i32_0 = arith.constant 0 : i32
    %c0_i32_1 = arith.constant 0 : i32
    return %arg0, %c0_i32, %c0_i32_0 : i32, i32, i32
  }
  func.func @transform_2(%arg0: i32) -> (i32, i32, i32) {
    %c0_i32 = arith.constant 0 : i32
    %c0_i32_0 = arith.constant 0 : i32
    %c0_i32_1 = arith.constant 0 : i32
    return %arg0, %c0_i32, %c0_i32_0 : i32, i32, i32
  }
  func.func @transform_3(%arg0: i32) -> (i32, i32, i32) {
    %c0_i32 = arith.constant 0 : i32
    %c0_i32_0 = arith.constant 0 : i32
    %c0_i32_1 = arith.constant 0 : i32
    return %arg0, %c0_i32, %c0_i32_0 : i32, i32, i32
  }
  func.func @transform_4(%arg0: i32) -> (i32, i32) {
    %c0_i32 = arith.constant 0 : i32
    %c0_i32_0 = arith.constant 0 : i32
    %c0_i32_1 = arith.constant 0 : i32
    return %c0_i32, %c0_i32_0 : i32, i32
  }
  func.func @transform_5(%arg0: i32) -> (i32, i32, i32) {
    %c0_i32 = arith.constant 0 : i32
    %c0_i32_0 = arith.constant 0 : i32
    %c0_i32_1 = arith.constant 0 : i32
    return %arg0, %c0_i32, %c0_i32_0 : i32, i32, i32
  }
}

module attributes {stable_mosaic.version = 11 : i64} {
  func.func @_matmul_bias_res_kernel(%arg0: i32, %arg1: memref<64x256xf32, #tpu.memory_space<vmem>>, %arg2: memref<256x128xf32, #tpu.memory_space<vmem>>, %arg3: memref<1x128xf32, #tpu.memory_space<vmem>>, %arg4: memref<64x128xf32, #tpu.memory_space<vmem>>, %arg5: memref<64x128xf32, #tpu.memory_space<vmem>>) attributes {dimension_semantics = [#tpu.dimension_semantics<parallel>], iteration_bounds = array<i64: 2>, scalar_prefetch = 0 : i64, scratch_operands = 0 : i64, tpu.core_type = #tpu.core_type<tc>, window_params = [{transform_indices = @transform_0, window_bounds = array<i64: 64, 256>}, {pipeline_mode = #tpu.pipeline_mode<synchronous>, transform_indices = @transform_1, window_bounds = array<i64: 256, 128>}, {pipeline_mode = #tpu.pipeline_mode<synchronous>, transform_indices = @transform_2, window_bounds = array<i64: 1, 128>}, {transform_indices = @transform_3, window_bounds = array<i64: 64, 128>}, {transform_indices = @transform_4, window_bounds = array<i64: 64, 128>}]} {
    %c0 = arith.constant 0 : index
    %c0_0 = arith.constant 0 : index
    %0 = vector.load %arg1[%c0, %c0_0] : memref<64x256xf32, #tpu.memory_space<vmem>>, vector<64x256xf32>
    %c0_1 = arith.constant 0 : index
    %c0_2 = arith.constant 0 : index
    %1 = vector.load %arg2[%c0_1, %c0_2] : memref<256x128xf32, #tpu.memory_space<vmem>>, vector<256x128xf32>
    %cst = arith.constant dense<0.000000e+00> : vector<64x128xf32>
    %2 = tpu.matmul %0, %1, %cst {dimension_numbers = #tpu.dot_dimension_numbers<[1], [0], [0], [1], [0, 0, 1, 1], [], []>} : vector<64x256xf32>, vector<256x128xf32>, vector<64x128xf32> -> vector<64x128xf32>
    %c0_3 = arith.constant 0 : index
    %c0_4 = arith.constant 0 : index
    %3 = vector.load %arg3[%c0_3, %c0_4] : memref<1x128xf32, #tpu.memory_space<vmem>>, vector<1x128xf32>
    %4 = vector.broadcast %3 : vector<1x128xf32> to vector<64x128xf32>
    %5 = arith.addf %2, %4 : vector<64x128xf32>
    %c0_5 = arith.constant 0 : index
    %c0_6 = arith.constant 0 : index
    %6 = vector.load %arg4[%c0_5, %c0_6] : memref<64x128xf32, #tpu.memory_space<vmem>>, vector<64x128xf32>
    %7 = arith.addf %5, %6 : vector<64x128xf32>
    %c0_7 = arith.constant 0 : index
    %c0_8 = arith.constant 0 : index
    %8 = vector.load %arg5[%c0_7, %c0_8] : memref<64x128xf32, #tpu.memory_space<vmem>>, vector<64x128xf32>
    tpu.vector_store %arg5[%c0_7, %c0_8], %7 {strides = array<i32>} : memref<64x128xf32, #tpu.memory_space<vmem>>, vector<64x128xf32>,
    return
  }
  func.func @transform_0(%arg0: i32) -> (i32, i32) {
    %c0_i32 = arith.constant 0 : i32
    %c0_i32_0 = arith.constant 0 : i32
    return %arg0, %c0_i32 : i32, i32
  }
  func.func @transform_1(%arg0: i32) -> (i32, i32) {
    %c0_i32 = arith.constant 0 : i32
    %c0_i32_0 = arith.constant 0 : i32
    %c0_i32_1 = arith.constant 0 : i32
    return %c0_i32, %c0_i32_0 : i32, i32
  }
  func.func @transform_2(%arg0: i32) -> (i32, i32) {
    %c0_i32 = arith.constant 0 : i32
    %c0_i32_0 = arith.constant 0 : i32
    %c0_i32_1 = arith.constant 0 : i32
    return %c0_i32, %c0_i32_0 : i32, i32
  }
  func.func @transform_3(%arg0: i32) -> (i32, i32) {
    %c0_i32 = arith.constant 0 : i32
    %c0_i32_0 = arith.constant 0 : i32
    return %arg0, %c0_i32 : i32, i32
  }
  func.func @transform_4(%arg0: i32) -> (i32, i32) {
    %c0_i32 = arith.constant 0 : i32
    %c0_i32_0 = arith.constant 0 : i32
    return %arg0, %c0_i32 : i32, i32
  }
}

module attributes {stable_mosaic.version = 11 : i64} {
  func.func @_ln_matmul_kernel(%arg0: i32, %arg1: memref<64x128xf32, #tpu.memory_space<vmem>>, %arg2: memref<1x128xf32, #tpu.memory_space<vmem>>, %arg3: memref<1x128xf32, #tpu.memory_space<vmem>>, %arg4: memref<128x512xf32, #tpu.memory_space<vmem>>, %arg5: memref<1x512xf32, #tpu.memory_space<vmem>>, %arg6: memref<64x512xf32, #tpu.memory_space<vmem>>) attributes {dimension_semantics = [#tpu.dimension_semantics<parallel>], iteration_bounds = array<i64: 2>, scalar_prefetch = 0 : i64, scratch_operands = 0 : i64, tpu.core_type = #tpu.core_type<tc>, window_params = [{transform_indices = @transform_0, window_bounds = array<i64: 64, 128>}, {pipeline_mode = #tpu.pipeline_mode<synchronous>, transform_indices = @transform_1, window_bounds = array<i64: 1, 128>}, {pipeline_mode = #tpu.pipeline_mode<synchronous>, transform_indices = @transform_2, window_bounds = array<i64: 1, 128>}, {pipeline_mode = #tpu.pipeline_mode<synchronous>, transform_indices = @transform_3, window_bounds = array<i64: 128, 512>}, {pipeline_mode = #tpu.pipeline_mode<synchronous>, transform_indices = @transform_4, window_bounds = array<i64: 1, 512>}, {transform_indices = @transform_5, window_bounds = array<i64: 64, 512>}]} {
    %c0 = arith.constant 0 : index
    %c0_0 = arith.constant 0 : index
    %0 = vector.load %arg1[%c0, %c0_0] : memref<64x128xf32, #tpu.memory_space<vmem>>, vector<64x128xf32>
    %cst = arith.constant dense<0.000000e+00> : vector<64xf32>
    %1 = vector.multi_reduction <add>, %0, %cst [1] : vector<64x128xf32> to vector<64xf32>
    %2 = vector.shape_cast %1 : vector<64xf32> to vector<64x1xf32>
    %cst_1 = arith.constant 1.280000e+02 : f32
    %3 = vector.broadcast %cst_1 : f32 to vector<64x1xf32>
    %4 = arith.divf %2, %3 : vector<64x1xf32>
    %5 = vector.broadcast %4 : vector<64x1xf32> to vector<64x128xf32>
    %6 = arith.subf %0, %5 : vector<64x128xf32>
    %7 = arith.mulf %6, %6 : vector<64x128xf32>
    %cst_2 = arith.constant dense<0.000000e+00> : vector<64xf32>
    %8 = vector.multi_reduction <add>, %7, %cst_2 [1] : vector<64x128xf32> to vector<64xf32>
    %9 = vector.shape_cast %8 : vector<64xf32> to vector<64x1xf32>
    %cst_3 = arith.constant 1.280000e+02 : f32
    %10 = vector.broadcast %cst_3 : f32 to vector<64x1xf32>
    %11 = arith.divf %9, %10 : vector<64x1xf32>
    %cst_4 = arith.constant 9.99999974E-6 : f32
    %12 = vector.broadcast %cst_4 : f32 to vector<64x1xf32>
    %13 = arith.addf %11, %12 : vector<64x1xf32>
    %14 = math.rsqrt %13 : vector<64x1xf32>
    %15 = vector.broadcast %14 : vector<64x1xf32> to vector<64x128xf32>
    %16 = arith.mulf %6, %15 : vector<64x128xf32>
    %c0_5 = arith.constant 0 : index
    %c0_6 = arith.constant 0 : index
    %17 = vector.load %arg2[%c0_5, %c0_6] : memref<1x128xf32, #tpu.memory_space<vmem>>, vector<1x128xf32>
    %18 = vector.broadcast %17 : vector<1x128xf32> to vector<64x128xf32>
    %19 = arith.mulf %16, %18 : vector<64x128xf32>
    %c0_7 = arith.constant 0 : index
    %c0_8 = arith.constant 0 : index
    %20 = vector.load %arg3[%c0_7, %c0_8] : memref<1x128xf32, #tpu.memory_space<vmem>>, vector<1x128xf32>
    %21 = vector.broadcast %20 : vector<1x128xf32> to vector<64x128xf32>
    %22 = arith.addf %19, %21 : vector<64x128xf32>
    %c0_9 = arith.constant 0 : index
    %c0_10 = arith.constant 0 : index
    %23 = vector.load %arg4[%c0_9, %c0_10] : memref<128x512xf32, #tpu.memory_space<vmem>>, vector<128x512xf32>
    %cst_11 = arith.constant dense<0.000000e+00> : vector<64x512xf32>
    %24 = tpu.matmul %22, %23, %cst_11 {dimension_numbers = #tpu.dot_dimension_numbers<[1], [0], [0], [1], [0, 0, 1, 1], [], []>} : vector<64x128xf32>, vector<128x512xf32>, vector<64x512xf32> -> vector<64x512xf32>
    %c0_12 = arith.constant 0 : index
    %c0_13 = arith.constant 0 : index
    %25 = vector.load %arg5[%c0_12, %c0_13] : memref<1x512xf32, #tpu.memory_space<vmem>>, vector<1x512xf32>
    %26 = vector.broadcast %25 : vector<1x512xf32> to vector<64x512xf32>
    %27 = arith.addf %24, %26 : vector<64x512xf32>
    %c0_14 = arith.constant 0 : index
    %c0_15 = arith.constant 0 : index
    %28 = vector.load %arg6[%c0_14, %c0_15] : memref<64x512xf32, #tpu.memory_space<vmem>>, vector<64x512xf32>
    tpu.vector_store %arg6[%c0_14, %c0_15], %27 {strides = array<i32>} : memref<64x512xf32, #tpu.memory_space<vmem>>, vector<64x512xf32>,
    return
  }
  func.func @transform_0(%arg0: i32) -> (i32, i32) {
    %c0_i32 = arith.constant 0 : i32
    %c0_i32_0 = arith.constant 0 : i32
    return %arg0, %c0_i32 : i32, i32
  }
  func.func @transform_1(%arg0: i32) -> (i32, i32) {
    %c0_i32 = arith.constant 0 : i32
    %c0_i32_0 = arith.constant 0 : i32
    %c0_i32_1 = arith.constant 0 : i32
    return %c0_i32, %c0_i32_0 : i32, i32
  }
  func.func @transform_2(%arg0: i32) -> (i32, i32) {
    %c0_i32 = arith.constant 0 : i32
    %c0_i32_0 = arith.constant 0 : i32
    %c0_i32_1 = arith.constant 0 : i32
    return %c0_i32, %c0_i32_0 : i32, i32
  }
  func.func @transform_3(%arg0: i32) -> (i32, i32) {
    %c0_i32 = arith.constant 0 : i32
    %c0_i32_0 = arith.constant 0 : i32
    %c0_i32_1 = arith.constant 0 : i32
    return %c0_i32, %c0_i32_0 : i32, i32
  }
  func.func @transform_4(%arg0: i32) -> (i32, i32) {
    %c0_i32 = arith.constant 0 : i32
    %c0_i32_0 = arith.constant 0 : i32
    %c0_i32_1 = arith.constant 0 : i32
    return %c0_i32, %c0_i32_0 : i32, i32
  }
  func.func @transform_5(%arg0: i32) -> (i32, i32) {
    %c0_i32 = arith.constant 0 : i32
    %c0_i32_0 = arith.constant 0 : i32
    return %arg0, %c0_i32 : i32, i32
  }
}

module attributes {stable_mosaic.version = 11 : i64} {
  func.func @_ln_matmul_kernel(%arg0: i32, %arg1: memref<64x128xf32, #tpu.memory_space<vmem>>, %arg2: memref<1x128xf32, #tpu.memory_space<vmem>>, %arg3: memref<1x128xf32, #tpu.memory_space<vmem>>, %arg4: memref<128x256xf32, #tpu.memory_space<vmem>>, %arg5: memref<1x256xf32, #tpu.memory_space<vmem>>, %arg6: memref<64x256xf32, #tpu.memory_space<vmem>>) attributes {dimension_semantics = [#tpu.dimension_semantics<parallel>], iteration_bounds = array<i64: 2>, scalar_prefetch = 0 : i64, scratch_operands = 0 : i64, tpu.core_type = #tpu.core_type<tc>, window_params = [{transform_indices = @transform_0, window_bounds = array<i64: 64, 128>}, {pipeline_mode = #tpu.pipeline_mode<synchronous>, transform_indices = @transform_1, window_bounds = array<i64: 1, 128>}, {pipeline_mode = #tpu.pipeline_mode<synchronous>, transform_indices = @transform_2, window_bounds = array<i64: 1, 128>}, {pipeline_mode = #tpu.pipeline_mode<synchronous>, transform_indices = @transform_3, window_bounds = array<i64: 128, 256>}, {pipeline_mode = #tpu.pipeline_mode<synchronous>, transform_indices = @transform_4, window_bounds = array<i64: 1, 256>}, {transform_indices = @transform_5, window_bounds = array<i64: 64, 256>}]} {
    %c0 = arith.constant 0 : index
    %c0_0 = arith.constant 0 : index
    %0 = vector.load %arg1[%c0, %c0_0] : memref<64x128xf32, #tpu.memory_space<vmem>>, vector<64x128xf32>
    %cst = arith.constant dense<0.000000e+00> : vector<64xf32>
    %1 = vector.multi_reduction <add>, %0, %cst [1] : vector<64x128xf32> to vector<64xf32>
    %2 = vector.shape_cast %1 : vector<64xf32> to vector<64x1xf32>
    %cst_1 = arith.constant 1.280000e+02 : f32
    %3 = vector.broadcast %cst_1 : f32 to vector<64x1xf32>
    %4 = arith.divf %2, %3 : vector<64x1xf32>
    %5 = vector.broadcast %4 : vector<64x1xf32> to vector<64x128xf32>
    %6 = arith.subf %0, %5 : vector<64x128xf32>
    %7 = arith.mulf %6, %6 : vector<64x128xf32>
    %cst_2 = arith.constant dense<0.000000e+00> : vector<64xf32>
    %8 = vector.multi_reduction <add>, %7, %cst_2 [1] : vector<64x128xf32> to vector<64xf32>
    %9 = vector.shape_cast %8 : vector<64xf32> to vector<64x1xf32>
    %cst_3 = arith.constant 1.280000e+02 : f32
    %10 = vector.broadcast %cst_3 : f32 to vector<64x1xf32>
    %11 = arith.divf %9, %10 : vector<64x1xf32>
    %cst_4 = arith.constant 9.99999974E-6 : f32
    %12 = vector.broadcast %cst_4 : f32 to vector<64x1xf32>
    %13 = arith.addf %11, %12 : vector<64x1xf32>
    %14 = math.rsqrt %13 : vector<64x1xf32>
    %15 = vector.broadcast %14 : vector<64x1xf32> to vector<64x128xf32>
    %16 = arith.mulf %6, %15 : vector<64x128xf32>
    %c0_5 = arith.constant 0 : index
    %c0_6 = arith.constant 0 : index
    %17 = vector.load %arg2[%c0_5, %c0_6] : memref<1x128xf32, #tpu.memory_space<vmem>>, vector<1x128xf32>
    %18 = vector.broadcast %17 : vector<1x128xf32> to vector<64x128xf32>
    %19 = arith.mulf %16, %18 : vector<64x128xf32>
    %c0_7 = arith.constant 0 : index
    %c0_8 = arith.constant 0 : index
    %20 = vector.load %arg3[%c0_7, %c0_8] : memref<1x128xf32, #tpu.memory_space<vmem>>, vector<1x128xf32>
    %21 = vector.broadcast %20 : vector<1x128xf32> to vector<64x128xf32>
    %22 = arith.addf %19, %21 : vector<64x128xf32>
    %c0_9 = arith.constant 0 : index
    %c0_10 = arith.constant 0 : index
    %23 = vector.load %arg4[%c0_9, %c0_10] : memref<128x256xf32, #tpu.memory_space<vmem>>, vector<128x256xf32>
    %cst_11 = arith.constant dense<0.000000e+00> : vector<64x256xf32>
    %24 = tpu.matmul %22, %23, %cst_11 {dimension_numbers = #tpu.dot_dimension_numbers<[1], [0], [0], [1], [0, 0, 1, 1], [], []>} : vector<64x128xf32>, vector<128x256xf32>, vector<64x256xf32> -> vector<64x256xf32>
    %c0_12 = arith.constant 0 : index
    %c0_13 = arith.constant 0 : index
    %25 = vector.load %arg5[%c0_12, %c0_13] : memref<1x256xf32, #tpu.memory_space<vmem>>, vector<1x256xf32>
    %26 = vector.broadcast %25 : vector<1x256xf32> to vector<64x256xf32>
    %27 = arith.addf %24, %26 : vector<64x256xf32>
    %cst_14 = arith.constant 5.000000e-01 : f32
    %28 = vector.broadcast %cst_14 : f32 to vector<64x256xf32>
    %29 = arith.mulf %28, %27 : vector<64x256xf32>
    %cst_15 = arith.constant 4.471500e-02 : f32
    %30 = vector.broadcast %cst_15 : f32 to vector<64x256xf32>
    %31 = arith.mulf %30, %27 : vector<64x256xf32>
    %32 = arith.mulf %31, %27 : vector<64x256xf32>
    %33 = arith.mulf %32, %27 : vector<64x256xf32>
    %34 = arith.addf %27, %33 : vector<64x256xf32>
    %cst_16 = arith.constant 0.797884583 : f32
    %35 = vector.broadcast %cst_16 : f32 to vector<64x256xf32>
    %36 = arith.mulf %35, %34 : vector<64x256xf32>
    %37 = math.tanh %36 : vector<64x256xf32>
    %cst_17 = arith.constant 1.000000e+00 : f32
    %38 = vector.broadcast %cst_17 : f32 to vector<64x256xf32>
    %39 = arith.addf %38, %37 : vector<64x256xf32>
    %40 = arith.mulf %29, %39 : vector<64x256xf32>
    %c0_18 = arith.constant 0 : index
    %c0_19 = arith.constant 0 : index
    %41 = vector.load %arg6[%c0_18, %c0_19] : memref<64x256xf32, #tpu.memory_space<vmem>>, vector<64x256xf32>
    tpu.vector_store %arg6[%c0_18, %c0_19], %40 {strides = array<i32>} : memref<64x256xf32, #tpu.memory_space<vmem>>, vector<64x256xf32>,
    return
  }
  func.func @transform_0(%arg0: i32) -> (i32, i32) {
    %c0_i32 = arith.constant 0 : i32
    %c0_i32_0 = arith.constant 0 : i32
    return %arg0, %c0_i32 : i32, i32
  }
  func.func @transform_1(%arg0: i32) -> (i32, i32) {
    %c0_i32 = arith.constant 0 : i32
    %c0_i32_0 = arith.constant 0 : i32
    %c0_i32_1 = arith.constant 0 : i32
    return %c0_i32, %c0_i32_0 : i32, i32
  }
  func.func @transform_2(%arg0: i32) -> (i32, i32) {
    %c0_i32 = arith.constant 0 : i32
    %c0_i32_0 = arith.constant 0 : i32
    %c0_i32_1 = arith.constant 0 : i32
    return %c0_i32, %c0_i32_0 : i32, i32
  }
  func.func @transform_3(%arg0: i32) -> (i32, i32) {
    %c0_i32 = arith.constant 0 : i32
    %c0_i32_0 = arith.constant 0 : i32
    %c0_i32_1 = arith.constant 0 : i32
    return %c0_i32, %c0_i32_0 : i32, i32
  }
  func.func @transform_4(%arg0: i32) -> (i32, i32) {
    %c0_i32 = arith.constant 0 : i32
    %c0_i32_0 = arith.constant 0 : i32
    %c0_i32_1 = arith.constant 0 : i32
    return %c0_i32, %c0_i32_0 : i32, i32
  }
  func.func @transform_5(%arg0: i32) -> (i32, i32) {
    %c0_i32 = arith.constant 0 : i32
    %c0_i32_0 = arith.constant 0 : i32
    return %arg0, %c0_i32 : i32, i32
  }
}

module attributes {stable_mosaic.version = 11 : i64} {
  func.func @_matmul_bias_res_kernel(%arg0: i32, %arg1: memref<64x256xf32, #tpu.memory_space<vmem>>, %arg2: memref<256x128xf32, #tpu.memory_space<vmem>>, %arg3: memref<1x128xf32, #tpu.memory_space<vmem>>, %arg4: memref<64x128xf32, #tpu.memory_space<vmem>>, %arg5: memref<64x128xf32, #tpu.memory_space<vmem>>) attributes {dimension_semantics = [#tpu.dimension_semantics<parallel>], iteration_bounds = array<i64: 2>, scalar_prefetch = 0 : i64, scratch_operands = 0 : i64, tpu.core_type = #tpu.core_type<tc>, window_params = [{transform_indices = @transform_0, window_bounds = array<i64: 64, 256>}, {pipeline_mode = #tpu.pipeline_mode<synchronous>, transform_indices = @transform_1, window_bounds = array<i64: 256, 128>}, {pipeline_mode = #tpu.pipeline_mode<synchronous>, transform_indices = @transform_2, window_bounds = array<i64: 1, 128>}, {transform_indices = @transform_3, window_bounds = array<i64: 64, 128>}, {transform_indices = @transform_4, window_bounds = array<i64: 64, 128>}]} {
    %c0 = arith.constant 0 : index
    %c0_0 = arith.constant 0 : index
    %0 = vector.load %arg1[%c0, %c0_0] : memref<64x256xf32, #tpu.memory_space<vmem>>, vector<64x256xf32>
    %c0_1 = arith.constant 0 : index
    %c0_2 = arith.constant 0 : index
    %1 = vector.load %arg2[%c0_1, %c0_2] : memref<256x128xf32, #tpu.memory_space<vmem>>, vector<256x128xf32>
    %cst = arith.constant dense<0.000000e+00> : vector<64x128xf32>
    %2 = tpu.matmul %0, %1, %cst {dimension_numbers = #tpu.dot_dimension_numbers<[1], [0], [0], [1], [0, 0, 1, 1], [], []>} : vector<64x256xf32>, vector<256x128xf32>, vector<64x128xf32> -> vector<64x128xf32>
    %c0_3 = arith.constant 0 : index
    %c0_4 = arith.constant 0 : index
    %3 = vector.load %arg3[%c0_3, %c0_4] : memref<1x128xf32, #tpu.memory_space<vmem>>, vector<1x128xf32>
    %4 = vector.broadcast %3 : vector<1x128xf32> to vector<64x128xf32>
    %5 = arith.addf %2, %4 : vector<64x128xf32>
    %c0_5 = arith.constant 0 : index
    %c0_6 = arith.constant 0 : index
    %6 = vector.load %arg4[%c0_5, %c0_6] : memref<64x128xf32, #tpu.memory_space<vmem>>, vector<64x128xf32>
    %7 = arith.addf %5, %6 : vector<64x128xf32>
    %c0_7 = arith.constant 0 : index
    %c0_8 = arith.constant 0 : index
    %8 = vector.load %arg5[%c0_7, %c0_8] : memref<64x128xf32, #tpu.memory_space<vmem>>, vector<64x128xf32>
    tpu.vector_store %arg5[%c0_7, %c0_8], %7 {strides = array<i32>} : memref<64x128xf32, #tpu.memory_space<vmem>>, vector<64x128xf32>,
    return
  }
  func.func @transform_0(%arg0: i32) -> (i32, i32) {
    %c0_i32 = arith.constant 0 : i32
    %c0_i32_0 = arith.constant 0 : i32
    return %arg0, %c0_i32 : i32, i32
  }
  func.func @transform_1(%arg0: i32) -> (i32, i32) {
    %c0_i32 = arith.constant 0 : i32
    %c0_i32_0 = arith.constant 0 : i32
    %c0_i32_1 = arith.constant 0 : i32
    return %c0_i32, %c0_i32_0 : i32, i32
  }
  func.func @transform_2(%arg0: i32) -> (i32, i32) {
    %c0_i32 = arith.constant 0 : i32
    %c0_i32_0 = arith.constant 0 : i32
    %c0_i32_1 = arith.constant 0 : i32
    return %c0_i32, %c0_i32_0 : i32, i32
  }
  func.func @transform_3(%arg0: i32) -> (i32, i32) {
    %c0_i32 = arith.constant 0 : i32
    %c0_i32_0 = arith.constant 0 : i32
    return %arg0, %c0_i32 : i32, i32
  }
  func.func @transform_4(%arg0: i32) -> (i32, i32) {
    %c0_i32 = arith.constant 0 : i32
    %c0_i32_0 = arith.constant 0 : i32
    return %arg0, %c0_i32 : i32, i32
  }
}

</mosaic_0001>

<bundles_post_ra>
// kernel: transformer_forward.11
= control target key start
LH: loop header
LB: loop body
LE: loop exit
PB: predicated region body
PF: predicated region fallthrough
CT: control target
= control target key end

     0   :  { %s1034_s18 = smov 0   ;;  %s1244_s0 = inlined_call_operand.vmem [shape: f32[4,64,64], index: 0, kind: input, shape index: {}]   ;;  %s1245_s1 = inlined_call_operand.vmem [shape: f32[4,64,64], index: 1, kind: input, shape index: {}]   ;;  %s1246_s2 = inlined_call_operand.vmem [shape: f32[4,64,64], index: 2, kind: input, shape index: {}]   ;;  %s1247_s3 = inlined_call_operand.vmem [shape: f32[4,64,64], index: 3, kind: input, shape index: {}]   ;;  %s1248_s4 = inlined_call_operand.vmem [shape: f32[64,64], index: 4, kind: input, shape index: {}]   ;;  %s1249_s5 = inlined_call_operand.vmem [shape: f32[4,64,128], index: 5, kind: output, shape index: {}]  }
   0x1 LB: > { %s884_s19 = sadd.s32 4294967295, %s1001_s18   ;;  %p888_p0 = scmp.ge.s32.totalorder %s1001_s18, 1  ;;  %s1001_s18 = sphi %s1034_s18, %s15_s18  }
   0x2   : > { %p217_p1 = scmp.lt.s32.totalorder %s1001_s18, 5 }
   0x4   : > { %p218_p2 = pnand %p888_p0, %p217_p1 }
   0x5   : > { %p260_p3 = scmp.lt.s32.totalorder (!%p218_p2), %s884_s19, 3 }
   0x6   : > { %221 = sbr.rel (%p218_p2) target bundleno = 615 (0x267), region = 40 }
   0xb   : > { %s1253_s19 = smov (!%p260_p3, %s884_s19), 3  ;;  %vm317_vm0 = vcmask 523264   ;;  %v672_v48 = vld [vmem:[%s1248_s4] sm:$0xff]  ;;  %v673_v49 = vld [vmem:[%s1248_s4 + $0x8] sm:$0xff]  ;;  %v674_v50 = vld [vmem:[%s1248_s4 + $0x10] sm:$0xff] }
   0xc   : > { %s1042_s20 = sshll.u32 %s1253_s19, 6  ;;  %v675_v53 = vld [vmem:[%s1248_s4 + $0x18] sm:$0xff]  ;;  %v676_v57 = vld [vmem:[%s1248_s4 + $0x20] sm:$0xff]  ;;  %v677_v61 = vld [vmem:[%s1248_s4 + $0x28] sm:$0xff] }
   0xd   : > { %s269_s23 = scalar_lea.vmem %s1245_s1, %s1042_s20  ;;  %s264_s26 = scalar_lea.vmem %s1244_s0, %s1042_s20 }
   0xe   : > { %v300_v0 = vld [vmem:[%s269_s23 + $0x38] sm:$0xff]  ;;  %v299_v1 = vld [vmem:[%s269_s23 + $0x30] sm:$0xff]  ;;  %v298_v2 = vld [vmem:[%s269_s23 + $0x28] sm:$0xff]  ;;  %s1081_s29 = scalar_lea.vmem %s1247_s3, %s1042_s20  ;;  %s274_s25 = scalar_lea.vmem %s1246_s2, %s1042_s20 }
   0xf   : > { %899 = vmatpush.xpose.msk.msra.mxu0 %vm317_vm0, %v300_v0  ;;  %938 = vmatpush.xpose.msk.msra.mxu3 %vm317_vm0, %v300_v0  ;;  %v297_v3 = vld [vmem:[%s269_s23 + $0x20] sm:$0xff]  ;;  %v296_v4 = vld [vmem:[%s269_s23 + $0x18] sm:$0xff]  ;;  %v295_v5 = vld [vmem:[%s269_s23 + $0x10] sm:$0xff] }
  0x10   : > { %v294_v6 = vld [vmem:[%s269_s23 + $0x8] sm:$0xff]  ;;  %v293_v7 = vld [vmem:[%s269_s23] sm:$0xff]  ;;  %v291_v11 = vld [vmem:[%s264_s26 + $0x30] sm:$0xff] }
  0x11   : > { %v285_v8 = vld [vmem:[%s264_s26] sm:$0xff]  ;;  %v290_v9 = vld [vmem:[%s264_s26 + $0x28] sm:$0xff]  ;;  %v287_v12 = vld [vmem:[%s264_s26 + $0x10] sm:$0xff] }
  0x12   : > { %v286_v10 = vld [vmem:[%s264_s26 + $0x8] sm:$0xff]  ;;  %v292_v13 = vld [vmem:[%s264_s26 + $0x38] sm:$0xff]  ;;  %v289_v15 = vld [vmem:[%s264_s26 + $0x20] sm:$0xff] }
  0x13   : > { %900 = vmatpush.xpose.msk.msra.mxu0 %vm317_vm0, %v299_v1  ;;  %939 = vmatpush.xpose.msk.msra.mxu3 %vm317_vm0, %v299_v1  ;;  %v288_v14 = vld [vmem:[%s264_s26 + $0x18] sm:$0xff]  ;;  %v315_v24 = vld [vmem:[%s1081_s29 + $0x30] sm:$0xff]  ;;  %v314_v26 = vld [vmem:[%s1081_s29 + $0x28] sm:$0xff]  ;;  %s1003_s26 = smov 64  }
  0x14   : > { %v316_v23 = vld [vmem:[%s1081_s29 + $0x38] sm:$0xff]  ;;  %v313_v28 = vld [vmem:[%s1081_s29 + $0x20] sm:$0xff]  ;;  %v311_v45 = vld [vmem:[%s1081_s29 + $0x10] sm:$0xff] }
  0x15   : > { %712 = vmatpush.msra.mxu2 %v316_v23  ;;  %v312_v44 = vld [vmem:[%s1081_s29 + $0x18] sm:$0xff]  ;;  %v310_v46 = vld [vmem:[%s1081_s29 + $0x8] sm:$0xff]  ;;  %v309_v47 = vld [vmem:[%s1081_s29] sm:$0xff]  ;;  %s1223_s29 = scalar_lea.vmem %s1249_s5, %s1042_s20 }
  0x17   : > { %901 = vmatpush.xpose.msk.msra.mxu0 %vm317_vm0, %v298_v2  ;;  %940 = vmatpush.xpose.msk.msra.mxu3 %vm317_vm0, %v298_v2 }
  0x18   : > { %713 = vmatpush.msra.mxu2 %v315_v24 }
  0x1a   : > { %714 = vmatpush.msra.mxu2 %v314_v26 }
  0x1b   : > { %902 = vmatpush.xpose.msk.msra.mxu0 %vm317_vm0, %v297_v3  ;;  %941 = vmatpush.xpose.msk.msra.mxu3 %vm317_vm0, %v297_v3  ;;  %v678_v3 = vld [vmem:[%s1248_s4 + $0x30] sm:$0xff] }
  0x1c   : > { %715 = vmatpush.msra.mxu2 %v313_v28 }
  0x1e   : > { %716 = vmatpush.msra.mxu2 %v312_v44 }
  0x1f   : > { %903 = vmatpush.xpose.msk.msra.mxu0 %vm317_vm0, %v296_v4  ;;  %942 = vmatpush.xpose.msk.msra.mxu3 %vm317_vm0, %v296_v4 }
  0x20   : > { %717 = vmatpush.msra.mxu2 %v311_v45 }
  0x22   : > { %718 = vmatpush.msra.mxu2 %v310_v46 }
  0x23   : > { %904 = vmatpush.xpose.msk.msra.mxu0 %vm317_vm0, %v295_v5  ;;  %943 = vmatpush.xpose.msk.msra.mxu3 %vm317_vm0, %v295_v5 }
  0x24   : > { %719 = vmatpush.msra.mxu2 %v309_v47 }
  0x25   : > { %923 = vmatmul.msk.f32.vlgmr.msra.gmra.mxu2 %vm317_vm0, %v672_v48 }
  0x27   : > { %905 = vmatpush.xpose.msk.msra.mxu0 %vm317_vm0, %v294_v6  ;;  %944 = vmatpush.xpose.msk.msra.mxu3 %vm317_vm0, %v294_v6 }
  0x2b   : > { %906 = vmatpush.xpose.msk.msra.mxu0 %vm317_vm0, %v293_v7  ;;  %945 = vmatpush.xpose.msk.msra.mxu3 %vm317_vm0, %v293_v7 }
  0x2d   : > { %924 = vmatmul.msk.f32.gmra.mxu2 %vm317_vm0, %v673_v49 }
  0x2e   : > { %907 = vmatmul.msk.f32.vlgmr.msra.gmra.mxu0 %vm317_vm0, %v285_v8  ;;  %912 = vmatmul.msk.f32.vlgmr.msra.gmra.mxu3 %vm317_vm0, %v290_v9 }
  0x35   : > { %925 = vmatmul.msk.f32.gmra.mxu2 %vm317_vm0, %v674_v50 }
  0x36   : > { %908 = vmatmul.msk.f32.gmra.mxu0 %vm317_vm0, %v286_v10  ;;  %913 = vmatmul.msk.f32.gmra.mxu3 %vm317_vm0, %v291_v11 }
  0x3d   : > { %926 = vmatmul.msk.f32.gmra.mxu2 %vm317_vm0, %v675_v53 }
  0x3e   : > { %909 = vmatmul.msk.f32.gmra.mxu0 %vm317_vm0, %v287_v12  ;;  %914 = vmatmul.msk.f32.gmra.mxu3 %vm317_vm0, %v292_v13  ;;  %v679_v12 = vld [vmem:[%s1248_s4 + $0x38] sm:$0xff] }
  0x45   : > { %927 = vmatmul.msk.f32.gmra.mxu2 %vm317_vm0, %v676_v57 }
  0x46   : > { %910 = vmatmul.msk.f32.gmra.mxu0 %vm317_vm0, %v288_v14 }
  0x4d   : > { %928 = vmatmul.msk.f32.gmra.mxu2 %vm317_vm0, %v677_v61 }
  0x4e   : > { %911 = vmatmul.msk.f32.gmra.mxu0 %vm317_vm0, %v289_v15 }
  0x55   : > { %929 = vmatmul.msk.f32.gmra.mxu2 %vm317_vm0, %v678_v3 }
  0x5d   : > { %930 = vmatmul.msk.f32.gmra.mxu2 %vm317_vm0, %v679_v12 }
  0xab   : > { %v383_v16 = vpop.f32.mrf.mxu0 }
  0xac   : > { %v407_v17 = vmul.f32 0.125, %v383_v16 }
  0xae   : > { %v415_v18 = vsel %vm317_vm0, %v407_v17, -inf }
  0xaf   : > { %416 = vmax.xlane.f32.xlu0 %v415_v18 }
  0xb1   : > { %v398_v19 = vpop.f32.mrf.mxu3 }
  0xb2   : > { %v1102_v42 = vmul.f32 0.125, %v398_v19 }
  0xb3   : > { %v386_v20 = vpop.f32.mrf.mxu0 }
  0xb4   : > { %v408_v21 = vmul.f32 0.125, %v386_v20  ;;  %v430_v43 = vsel %vm317_vm0, %v1102_v42, -inf }
  0xb6   : > { %v418_v22 = vsel %vm317_vm0, %v408_v21, -inf }
  0xb7   : > { %419 = vmax.xlane.f32.xlu0 %v418_v22 }
  0xb9   : > { %v401_v25 = vpop.f32.mrf.mxu3 }
  0xba   : > { %v1094_v37 = vmul.f32 0.125, %v401_v25 }
  0xbb   : > { %v389_v27 = vpop.f32.mrf.mxu0 }
  0xbc   : > { %v409_v29 = vmul.f32 0.125, %v389_v27  ;;  %v433_v40 = vsel %vm317_vm0, %v1094_v37, -inf }
  0xbe   : > { %v421_v30 = vsel %vm317_vm0, %v409_v29, -inf }
  0xbf   : > { %422 = vmax.xlane.f32.xlu1 %v421_v30 }
  0xc1   : > { %v404_v31 = vpop.f32.mrf.mxu3 }
  0xc2   : > { %v1089_v32 = vmul.f32 0.125, %v404_v31 }
  0xc3   : > { %v392_v33 = vpop.f32.mrf.mxu0 }
  0xc4   : > { %v410_v34 = vmul.f32 0.125, %v392_v33  ;;  %v436_v35 = vsel %vm317_vm0, %v1089_v32, -inf  ;;  %v307_v33 = vld [vmem:[%s274_s25 + $0x30] sm:$0xff] }
  0xc5   : > { %437 = vmax.xlane.f32.xlu0 %v436_v35  ;;  %v305_v35 = vld [vmem:[%s274_s25 + $0x20] sm:$0xff] }
  0xc6   : > { %v424_v36 = vsel %vm317_vm0, %v410_v34, -inf }
  0xc7   : > { %425 = vmax.xlane.f32.xlu1 %v424_v36  ;;  %v721_v36 = vpop.f32.mrf.mxu2 }
  0xcb   : > { %v395_v38 = vpop.f32.mrf.mxu0 }
  0xcc   : > { %v1096_v39 = vmul.f32 0.125, %v395_v38  ;;  %v303_v38 = vld [vmem:[%s274_s25 + $0x10] sm:$0xff] }
  0xce   : > { %v427_v41 = vsel %vm317_vm0, %v1096_v39, -inf }
  0xcf   : > { %434 = vmax.xlane.f32.xlu1 %v433_v40  ;;  %428 = vmax.xlane.f32.xlu2 %v427_v41  ;;  %v301_v40 = vld [vmem:[%s274_s25] sm:$0xff]  ;;  %v724_v41 = vpop.f32.mrf.mxu2 }
  0xd7   : > { %431 = vmax.xlane.f32.xlu2 %v430_v43 }
 0x122   : > { %v417_v51 = vpop.xlane.xlu0 %416 }
 0x123   : > { %v439_v52 = vsub.f32 %v407_v17, %v417_v51 }
 0x125   : > { %v447_v54 = vmul.f32 1.442695, %v439_v52 }
 0x127   : > { %963 = vpow2.f32 %v447_v54 }
 0x12a   : > { %v420_v55 = vpop.xlane.xlu0 %419 }
 0x12b   : > { %v440_v56 = vsub.f32 %v408_v21, %v420_v55 }
 0x12d   : > { %v1130_v58 = vpop.eup %963  ;;  %v449_v59 = vmul.f32 1.442695, %v440_v56 }
 0x12e   : > { %v463_v60 = vsel %vm317_vm0, %v1130_v58, 0.0 }
 0x12f   : > { %965 = vpow2.f32 %v449_v59  ;;  %464 = vadd.xlane.f32.xlu2 %v463_v60 }
 0x132   : > { %v423_v62 = vpop.xlane.xlu1 %422 }
 0x133   : > { %v441_v63 = vsub.f32 %v409_v29, %v423_v62 }
 0x135   : > { %v1138_v0 = vpop.eup %965  ;;  %v451_v1 = vmul.f32 1.442695, %v441_v63 }
 0x136   : > { %v466_v2 = vsel %vm317_vm0, %v1138_v0, 0.0 }
 0x137   : > { %967 = vpow2.f32 %v451_v1  ;;  %467 = vadd.xlane.f32.xlu0 %v466_v2 }
 0x138   : > { %v438_v4 = vpop.xlane.xlu0 %437 }
 0x139   : > { %v446_v8 = vsub.f32 %v1089_v32, %v438_v4  ;;  %v308_v32 = vld [vmem:[%s274_s25 + $0x38] sm:$0xff] }
 0x13a   : > { %v426_v5 = vpop.xlane.xlu1 %425  ;;  %639 = vmatpush.msra.mxu1 %v308_v32  ;;  %946 = vmatpush.msrb.mxu3 %v308_v32 }
 0x13b   : > { %v442_v6 = vsub.f32 %v410_v34, %v426_v5  ;;  %v461_v11 = vmul.f32 1.442695, %v446_v8  ;;  %v306_v34 = vld [vmem:[%s274_s25 + $0x28] sm:$0xff] }
 0x13c   : > { %640 = vmatpush.msra.mxu1 %v307_v33  ;;  %947 = vmatpush.msrb.mxu3 %v307_v33 }
 0x13d   : > { %v1146_v7 = vpop.eup %967  ;;  %v453_v9 = vmul.f32 1.442695, %v442_v6 }
 0x13e   : > { %v469_v10 = vsel %vm317_vm0, %v1146_v7, 0.0  ;;  %641 = vmatpush.msra.mxu1 %v306_v34  ;;  %948 = vmatpush.msrb.mxu3 %v306_v34 }
 0x13f   : > { %969 = vpow2.f32 %v453_v9  ;;  %470 = vadd.xlane.f32.xlu1 %v469_v10 }
 0x140   : > { %971 = vpow2.f32 %v461_v11  ;;  %642 = vmatpush.msra.mxu1 %v305_v35  ;;  %949 = vmatpush.msrb.mxu3 %v305_v35 }
 0x142   : > { %v429_v13 = vpop.xlane.xlu2 %428  ;;  %v435_v14 = vpop.xlane.xlu1 %434 }
 0x143   : > { %v443_v15 = vsub.f32 %v1096_v39, %v429_v13  ;;  %v445_v18 = vsub.f32 %v1094_v37, %v435_v14  ;;  %v304_v37 = vld [vmem:[%s274_s25 + $0x18] sm:$0xff]  ;;  %v302_v39 = vld [vmem:[%s274_s25 + $0x8] sm:$0xff] }
 0x144   : > { %643 = vmatpush.msra.mxu1 %v304_v37  ;;  %950 = vmatpush.msrb.mxu3 %v304_v37 }
 0x145   : > { %v1156_v16 = vpop.eup %969  ;;  %v455_v17 = vmul.f32 1.442695, %v443_v15  ;;  %v459_v20 = vmul.f32 1.442695, %v445_v18 }
 0x146   : > { %v472_v19 = vsel %vm317_vm0, %v1156_v16, 0.0  ;;  %v1161_v22 = vpop.eup %971  ;;  %644 = vmatpush.msra.mxu1 %v303_v38  ;;  %951 = vmatpush.msrb.mxu3 %v303_v38 }
 0x147   : > { %473 = vadd.xlane.f32.xlu2 %v472_v19  ;;  %973 = vpow2.f32 %v455_v17  ;;  %v484_v26 = vsel %vm317_vm0, %v1161_v22, 0.0 }
 0x148   : > { %975 = vpow2.f32 %v459_v20  ;;  %645 = vmatpush.msra.mxu1 %v302_v39  ;;  %952 = vmatpush.msrb.mxu3 %v302_v39 }
 0x14a   : > { %v432_v21 = vpop.xlane.xlu2 %431  ;;  %646 = vmatpush.msra.mxu1 %v301_v40  ;;  %953 = vmatpush.msrb.mxu3 %v301_v40 }
 0x14b   : > { %v444_v23 = vsub.f32 %v1102_v42, %v432_v21  ;;  %v727_v42 = vpop.f32.mrf.mxu2 }
 0x14d   : > { %v457_v24 = vmul.f32 1.442695, %v444_v23  ;;  %v1164_v25 = vpop.eup %973 }
 0x14e   : > { %v475_v27 = vsel %vm317_vm0, %v1164_v25, 0.0  ;;  %v1170_v28 = vpop.eup %975 }
 0x14f   : > { %977 = vpow2.f32 %v457_v24  ;;  %485 = vadd.xlane.f32.xlu2 %v484_v26  ;;  %476 = vadd.xlane.f32.xlu0 %v475_v27  ;;  %v481_v31 = vsel %vm317_vm0, %v1170_v28, 0.0 }
 0x153   : > { %v730_v44 = vpop.f32.mrf.mxu2 }
 0x155   : > { %v1172_v29 = vpop.eup %977 }
 0x156   : > { %v478_v30 = vsel %vm317_vm0, %v1172_v29, 0.0 }
 0x157   : > { %479 = vadd.xlane.f32.xlu1 %v478_v30  ;;  %482 = vadd.xlane.f32.xlu0 %v481_v31 }
 0x15b   : > { %v733_v53 = vpop.f32.mrf.mxu2 }
 0x163   : > { %v736_v4 = vpop.f32.mrf.mxu2 }
 0x167   : > { %755 = vrot.lane.b32.xlu2 %v724_v41, %s1003_s26 }
 0x16b   : > { %757 = vrot.lane.b32.xlu0 %v727_v42, %s1003_s26  ;;  %v739_v18 = vpop.f32.mrf.mxu2 }
 0x16f   : > { %759 = vrot.lane.b32.xlu2 %v730_v44, %s1003_s26 }
 0x170   : > { %753 = vrot.lane.b32.xlu1 %v721_v36, %s1003_s26 }
 0x173   : > { %763 = vrot.lane.b32.xlu0 %v736_v4, %s1003_s26  ;;  %v742_v35 = vpop.f32.mrf.mxu2 }
 0x177   : > { %765 = vrot.lane.b32.xlu2 %v739_v18, %s1003_s26 }
 0x178   : > { %761 = vrot.lane.b32.xlu1 %v733_v53, %s1003_s26 }
 0x180   : > { %767 = vrot.lane.b32.xlu1 %v742_v35, %s1003_s26 }
 0x1a2   : > { %v465_v43 = vpop.xlane.xlu2 %464 }
 0x1a3   : > { %979 = vrcp.f32 %v465_v43  ;;  %v498_v49 = vand.u32 2147483648, %v465_v43  ;;  %v496_v51 = vand.u32 2147483647, %v465_v43  ;;  %vm492_vm2 = vweird.f32 %v465_v43 }
 0x1a5   : > { %v499_v55 = vor.u32 1.1754944e-38, %v498_v49  ;;  %vm497_vm4 = vcmp.eq.f32.partialorder %v496_v51, 8.507059e+37 }
 0x1a9   : > { %v980_v45 = vpop.eup %979 }
 0x1aa   : > { %v488_v46 = vmul.f32 %v980_v45, %v465_v43  ;;  %v468_v47 = vpop.xlane.xlu0 %467  ;;  %vm493_vm1 = vweird.f32 %v980_v45 }
 0x1ab   : > { %981 = vrcp.f32 %v468_v47  ;;  %vm494_vm3 = vmor %vm492_vm2, %vm493_vm1  ;;  %v513_v63 = vand.u32 2147483648, %v468_v47  ;;  %v511_v2 = vand.u32 2147483647, %v468_v47  ;;  %vm507_vm6 = vweird.f32 %v468_v47 }
 0x1ac   : > { %v489_v48 = vsub.f32 1.0, %v488_v46 }
 0x1ad   : > { %v514_v6 = vor.u32 1.1754944e-38, %v513_v63  ;;  %vm512_vm8 = vcmp.eq.f32.partialorder %v511_v2, 8.507059e+37 }
 0x1ae   : > { %v490_v50 = vmul.f32 %v980_v45, %v489_v48 }
 0x1b0   : > { %v491_v52 = vadd.f32 %v980_v45, %v490_v50 }
 0x1b1   : > { %v982_v54 = vpop.eup %981 }
 0x1b2   : > { %v503_v56 = vmul.f32 %v982_v54, %v468_v47  ;;  %v471_v57 = vpop.xlane.xlu1 %470  ;;  %v495_v59 = vsel %vm494_vm3, %v980_v45, %v491_v52  ;;  %vm508_vm5 = vweird.f32 %v982_v54 }
 0x1b3   : > { %983 = vrcp.f32 %v471_v57  ;;  %v500_v60 = vsel %vm497_vm4, %v499_v55, %v495_v59  ;;  %vm509_vm7 = vmor %vm507_vm6, %vm508_vm5  ;;  %v528_v14 = vand.u32 2147483648, %v471_v57  ;;  %vm522_vm10 = vweird.f32 %v471_v57 }
 0x1b4   : > { %v504_v61 = vsub.f32 1.0, %v503_v56  ;;  %v501_v62 = vmul.f32 %v1130_v58, %v500_v60  ;;  %v526_v17 = vand.u32 2147483647, %v471_v57 }
 0x1b5   : > { %v529_v24 = vor.u32 1.1754944e-38, %v528_v14 }
 0x1b6   : > { %v505_v1 = vmul.f32 %v982_v54, %v504_v61  ;;  %915 = vmatmul.msk.f32.vlgmr.msra.gmra.mxu1 %vm317_vm0, %v501_v62  ;;  %vm527_vm12 = vcmp.eq.f32.partialorder %v526_v17, 8.507059e+37 }
 0x1b8   : > { %v506_v3 = vadd.f32 %v982_v54, %v505_v1 }
 0x1b9   : > { %v984_v5 = vpop.eup %983 }
 0x1ba   : > { %v518_v8 = vmul.f32 %v984_v5, %v471_v57  ;;  %v474_v9 = vpop.xlane.xlu2 %473  ;;  %v510_v10 = vsel %vm509_vm7, %v982_v54, %v506_v3  ;;  %vm523_vm9 = vweird.f32 %v984_v5 }
 0x1bb   : > { %985 = vrcp.f32 %v474_v9  ;;  %v515_v58 = vsel %vm512_vm8, %v514_v6, %v510_v10  ;;  %vm524_vm11 = vmor %vm522_vm10, %vm523_vm9  ;;  %v543_v32 = vand.u32 2147483648, %v474_v9  ;;  %vm537_vm14 = vweird.f32 %v474_v9 }
 0x1bc   : > { %v519_v11 = vsub.f32 1.0, %v518_v8  ;;  %v516_v12 = vmul.f32 %v1138_v0, %v515_v58  ;;  %v541_v34 = vand.u32 2147483647, %v474_v9 }
 0x1bd   : > { %v544_v41 = vor.u32 1.1754944e-38, %v543_v32 }
 0x1be   : > { %v520_v13 = vmul.f32 %v984_v5, %v519_v11  ;;  %916 = vmatmul.msk.f32.gmra.mxu1 %vm317_vm0, %v516_v12  ;;  %vm542_vm1 = vcmp.eq.f32.partialorder %v541_v34, 8.507059e+37 }
 0x1c0   : > { %v521_v15 = vadd.f32 %v984_v5, %v520_v13 }
 0x1c1   : > { %v986_v19 = vpop.eup %985 }
 0x1c2   : > { %v533_v20 = vmul.f32 %v986_v19, %v474_v9  ;;  %v486_v21 = vpop.xlane.xlu2 %485  ;;  %v525_v23 = vsel %vm524_vm11, %v984_v5, %v521_v15  ;;  %v477_v26 = vpop.xlane.xlu0 %476  ;;  %vm538_vm13 = vweird.f32 %v986_v19 }
 0x1c3   : > { %987 = vrcp.f32 %v486_v21  ;;  %v530_v27 = vsel %vm527_vm12, %v529_v24, %v525_v23  ;;  %vm1195_vm15 = vmor %vm537_vm14, %vm538_vm13  ;;  %v601_v46 = vand.u32 2147483647, %v486_v21  ;;  %v603_v47 = vand.u32 2147483648, %v486_v21 }
 0x1c4   : > { %v534_v0 = vsub.f32 1.0, %v533_v20  ;;  %989 = vrcp.f32 %v477_v26  ;;  %v531_v31 = vmul.f32 %v1146_v7, %v530_v27  ;;  %v558_v49 = vand.u32 2147483648, %v477_v26 }
 0x1c5   : > { %v556_v53 = vand.u32 2147483647, %v477_v26  ;;  %vm597_vm4 = vweird.f32 %v486_v21  ;;  %vm552_vm5 = vweird.f32 %v477_v26  ;;  %v604_v56 = vor.u32 1.1754944e-38, %v603_v47 }
 0x1c6   : > { %v535_v30 = vmul.f32 %v986_v19, %v534_v0  ;;  %917 = vmatmul.msk.f32.gmra.mxu1 %vm317_vm0, %v531_v31  ;;  %v559_v60 = vor.u32 1.1754944e-38, %v558_v49  ;;  %vm602_vm7 = vcmp.eq.f32.partialorder %v601_v46, 8.507059e+37 }
 0x1c7   : > { %vm557_vm9 = vcmp.eq.f32.partialorder %v556_v53, 8.507059e+37 }
 0x1c8   : > { %v536_v33 = vadd.f32 %v986_v19, %v535_v30 }
 0x1c9   : > { %v988_v36 = vpop.eup %987 }
 0x1ca   : > { %v990_v38 = vpop.eup %989  ;;  %v593_v39 = vmul.f32 %v988_v36, %v486_v21  ;;  %v480_v40 = vpop.xlane.xlu1 %479  ;;  %v540_v7 = vsel %vm1195_vm15, %v986_v19, %v536_v33  ;;  %vm598_vm2 = vweird.f32 %v988_v36 }
 0x1cb   : > { %v548_v42 = vmul.f32 %v990_v38, %v477_v26  ;;  %v1202_v43 = vpop.xlane.xlu0 %482  ;;  %991 = vrcp.f32 %v480_v40  ;;  %v545_v48 = vsel %vm542_vm1, %v544_v41, %v540_v7  ;;  %vm553_vm3 = vweird.f32 %v990_v38  ;;  %vm599_vm6 = vmor %vm597_vm4, %vm598_vm2  ;;  %v756_v26 = vpop.permute.xlu2 %755 }
 0x1cc   : > { %v594_v44 = vsub.f32 1.0, %v593_v39  ;;  %993 = vrcp.f32 %v1202_v43  ;;  %v546_v51 = vmul.f32 %v1156_v16, %v545_v48  ;;  %vm554_vm8 = vmor %vm552_vm5, %vm553_vm3  ;;  %v573_v6 = vand.u32 2147483648, %v480_v40 }
 0x1cd   : > { %v549_v45 = vsub.f32 1.0, %v548_v42  ;;  %v571_v10 = vand.u32 2147483647, %v480_v40  ;;  %vm567_vm11 = vweird.f32 %v480_v40  ;;  %vm582_vm15 = vweird.f32 %v1202_v43 }
 0x1ce   : > { %v595_v50 = vmul.f32 %v988_v36, %v594_v44  ;;  %918 = vmatmul.msk.f32.gmra.mxu1 %vm317_vm0, %v546_v51  ;;  %v574_v12 = vor.u32 1.1754944e-38, %v573_v6  ;;  %v586_v17 = vand.u32 2147483647, %v1202_v43 }
 0x1cf   : > { %v550_v52 = vmul.f32 %v990_v38, %v549_v45  ;;  %vm572_vm13 = vcmp.eq.f32.partialorder %v571_v10, 8.507059e+37 }
 0x1d0   : > { %v596_v54 = vadd.f32 %v988_v36, %v595_v50  ;;  %vm587_vm2 = vcmp.eq.f32.partialorder %v586_v17, 8.507059e+37 }
 0x1d1   : > { %v992_v55 = vpop.eup %991  ;;  %v551_v57 = vadd.f32 %v990_v38, %v550_v52 }
 0x1d2   : > { %v994_v59 = vpop.eup %993  ;;  %v563_v61 = vmul.f32 %v992_v55, %v480_v40  ;;  %v600_v62 = vsel %vm599_vm6, %v988_v36, %v596_v54  ;;  %vm568_vm10 = vweird.f32 %v992_v55 }
 0x1d3   : > { %v578_v16 = vmul.f32 %v994_v59, %v1202_v43  ;;  %v555_v63 = vsel %vm554_vm8, %v990_v38, %v551_v57  ;;  %v605_v1 = vsel %vm602_vm7, %v604_v56, %v600_v62  ;;  %vm569_vm12 = vmor %vm567_vm11, %vm568_vm10  ;;  %vm583_vm14 = vweird.f32 %v994_v59  ;;  %v760_v32 = vpop.permute.xlu2 %759 }
 0x1d4   : > { %v564_v2 = vsub.f32 1.0, %v563_v61  ;;  %v560_v3 = vsel %vm557_vm9, %v559_v60, %v555_v63  ;;  %v606_v4 = vmul.f32 %v1161_v22, %v605_v1  ;;  %vm584_vm1 = vmor %vm582_vm15, %vm583_vm14 }
 0x1d5   : > { %v579_v5 = vsub.f32 1.0, %v578_v16  ;;  %v561_v8 = vmul.f32 %v1164_v25, %v560_v3  ;;  %v588_v25 = vand.u32 2147483648, %v1202_v43 }
 0x1d6   : > { %v565_v9 = vmul.f32 %v992_v55, %v564_v2  ;;  %922 = vmatmul.msk.f32.vlgmr.msrb.gmra.mxu3 %vm317_vm0, %v606_v4 }
 0x1d7   : > { %v580_v58 = vmul.f32 %v994_v59, %v579_v5  ;;  %919 = vmatmul.msk.f32.gmra.mxu1 %vm317_vm0, %v561_v8  ;;  %v589_v19 = vor.u32 1.1754944e-38, %v588_v25 }
 0x1d8   : > { %v566_v11 = vadd.f32 %v992_v55, %v565_v9 }
 0x1d9   : > { %v581_v15 = vadd.f32 %v994_v59, %v580_v58 }
 0x1da   : > { %v570_v13 = vsel %vm569_vm12, %v992_v55, %v566_v11 }
 0x1db   : > { %v575_v22 = vsel %vm572_vm13, %v574_v12, %v570_v13  ;;  %v585_v18 = vsel %vm584_vm1, %v994_v59, %v581_v15  ;;  %v766_v43 = vpop.permute.xlu2 %765 }
 0x1dc   : > { %v576_v14 = vmul.f32 %v1172_v29, %v575_v22  ;;  %v590_v20 = vsel %vm587_vm2, %v589_v19, %v585_v18 }
 0x1dd   : > { %v591_v21 = vmul.f32 %v1170_v28, %v590_v20  ;;  %v758_v27 = vpop.permute.xlu0 %757 }
 0x1df   : > { %920 = vmatmul.msk.f32.gmra.mxu1 %vm317_vm0, %v576_v14 }
 0x1e2   : > { %v754_v29 = vpop.permute.xlu1 %753 }
 0x1e5   : > { %v764_v7 = vpop.permute.xlu0 %763 }
 0x1e7   : > { %921 = vmatmul.msk.f32.gmra.mxu1 %vm317_vm0, %v591_v21 }
 0x1ea   : > { %v762_v35 = vpop.permute.xlu1 %761 }
 0x1f2   : > { %v768_v38 = vpop.permute.xlu1 %767 }
 0x233   : > { %v648_v23 = vpop.f32.mrf.mxu1 }
 0x234   : > { %v777_v24 = vsel %vm317_vm0, %v648_v23, %v754_v29 }
 0x235   : > { %785 = vst [vmem:[%s1223_s29] sm:$0xff] %v777_v24 }
 0x23b   : > { %v651_v0 = vpop.f32.mrf.mxu1 }
 0x23c   : > { %v778_v28 = vsel %vm317_vm0, %v651_v0, %v756_v26 }
 0x23d   : > { %786 = vst [vmem:[%s1223_s29 + $0x8] sm:$0xff] %v778_v28 }
 0x243   : > { %v654_v30 = vpop.f32.mrf.mxu1 }
 0x244   : > { %v779_v31 = vsel %vm317_vm0, %v654_v30, %v758_v27 }
 0x245   : > { %787 = vst [vmem:[%s1223_s29 + $0x10] sm:$0xff] %v779_v31 }
 0x24b   : > { %v657_v33 = vpop.f32.mrf.mxu1 }
 0x24c   : > { %v780_v34 = vsel %vm317_vm0, %v657_v33, %v760_v32 }
 0x24d   : > { %788 = vst [vmem:[%s1223_s29 + $0x18] sm:$0xff] %v780_v34 }
 0x254   : > { %v660_v36 = vpop.f32.mrf.mxu1 }
 0x255   : > { %v781_v37 = vsel %vm317_vm0, %v660_v36, %v762_v35 }
 0x256   : > { %789 = vst [vmem:[%s1223_s29 + $0x20] sm:$0xff] %v781_v37 }
 0x259   : > { %v669_v39 = vpop.f32.mrf.mxu3 }
 0x25a   : > { %v784_v40 = vsel %vm317_vm0, %v669_v39, %v768_v38 }
 0x25b   : > { %792 = vst [vmem:[%s1223_s29 + $0x38] sm:$0xff] %v784_v40 }
 0x25c   : > { %v663_v41 = vpop.f32.mrf.mxu1 }
 0x25d   : > { %v782_v42 = vsel %vm317_vm0, %v663_v41, %v764_v7 }
 0x25e   : > { %790 = vst [vmem:[%s1223_s29 + $0x28] sm:$0xff] %v782_v42 }
 0x264   : > { %v666_v44 = vpop.f32.mrf.mxu1 }
 0x265   : > { %v783_v45 = vsel %vm317_vm0, %v666_v44, %v766_v43 }
 0x266   : > { %791 = vst [vmem:[%s1223_s29 + $0x30] sm:$0xff] %v783_v45 }
 0x267 PF: > { %s15_s18 = sadd.s32 1, %s1001_s18  }
 0x268   : > { %p12_p4 = scmp.ge.s32.totalorder %s15_s18, 6  }
 0x26a   :  { %14 = sbr.rel (!%p12_p4) target bundleno = 1 (0x1), region = 79 }

// kernel: transformer_forward.10
= control target key start
LH: loop header
LB: loop body
LE: loop exit
PB: predicated region body
PF: predicated region fallthrough
CT: control target
= control target key end

     0   :  { %10 = vsyncpa [#allocation3], 0  ;;  %s1353_s0 = inlined_call_operand.hbm [shape: f32[128,128], index: 0, kind: input, shape index: {}]   ;;  %s1354_s1 = inlined_call_operand.vmem [shape: f32[1,128], index: 1, kind: input, shape index: {}]   ;;  %s1355_s2 = inlined_call_operand.vmem [shape: f32[1,128], index: 2, kind: input, shape index: {}]   ;;  %s1356_s3 = inlined_call_operand.hbm [shape: f32[128,512], index: 3, kind: input, shape index: {}]   ;;  %s1357_s4 = inlined_call_operand.vmem [shape: f32[1,512], index: 4, kind: input, shape index: {}]   ;;  %s1358_s5 = inlined_call_operand.vmem [shape: f32[128,512], index: 5, kind: output, shape index: {}]  }
   0x1   :  { %12 = vsyncpa [#allocation3 + $0x1], 0 }
   0x2   :  { %13 = vsyncpa [#allocation5], 0  ;;  %s1045_s18 = smov 0   ;;  %s1047_s19 = smov 0  }
   0x3   :  { %s1049_s20 = smov 0   ;;  %s1051_s21 = smov 0  }
   0x4 LB: > { %s816_s22 = sadd.s32 4294967295, %s1007_s21   ;;  %p39_p0 = scmp.ne.s32.totalorder %s999_s19, %s995_s18  ;;  %s1007_s21 = sphi %s1051_s21, %s1368_s21   ;;  %s1003_s20 = sphi %s1049_s20, %s1367_s20   ;;  %s999_s19 = sphi %s1047_s19, %s1366_s19   ;;  %s995_s18 = sphi %s1045_s18, %s1365_s18  }
   0x5   : > { %p1067_p1 = scmp.eq.s32.totalorder %s816_s22, 0  ;;  %p818_p2 = scmp.ge.s32.totalorder %s1007_s21, 1 }
   0x6   : > { %p160_p3 = scmp.lt.s32.totalorder %s1007_s21, 3  ;;  %s177_s27 = sshll.u32 %s1356_s3, 4  ;;  %s178_s27 = int_to_ptr.hbm [resolvable:$true] %s177_s27 }
   0x7   : > { %p1075_p4 = por %p1067_p1, %p39_p0  ;;  %s1009_s29 = smov [#allocation4]  }
   0x8   : > { %p1082_p5 = pnand %p818_p2, %p160_p3  ;;  %s179_s30 = sshll.u32 %s1009_s29, 4  ;;  %s180_s30 = int_to_ptr.vmem [resolvable:$true] %s179_s30 }
   0x9   : > { %s1091_s6 = sadd.s32 1, %s1007_s21   ;;  %s1010_s7 = smov 512  }
   0xa   : > { %p840_p6 = pneg %p1082_p5  ;;  %s1011_s8 = smov 32  }
   0xb   : > { %s23_s9 = ssub.s32 %s1007_s21, %s1091_s6  ;;  %s26_s10 = sadd.s32 1, %s1003_s20 }
   0xc   : > { %p841_p7 = pnand %p840_p6, %p1067_p1  ;;  %p24_p8 = scmp.eq.s32.totalorder %s23_s9, 0 }
   0xd   : > { %p33_p9 = scmp.ne.s32.totalorder %s1003_s20, %s999_s19  ;;  %p34_p10 = scmp.eq.s32.totalorder %s1007_s21, 0 }
   0xe   : > { %843 = dma.hbm_to_vmem [thread:$0]  (!%p841_p7), %s178_s27, 8192, %s180_s30, [#allocation5], %s1010_s7, %s1010_s7, %s1011_s8  }
   0xf   : > { %p849_p11 = scmp.lt.s32.totalorder %s1007_s21, 2  ;;  %p35_p12 = por %p34_p10, %p33_p9 }
  0x10   : > { %s1101_s11 = scalar_select %p24_p8, %s1003_s20, %s26_s10  }
  0x11   : > { %s196_s12 = sand.u32 1, %s1003_s20   ;;  %s832_s14 = sshll.u32 %s1007_s21, 6 }
  0x12   : > { %s821_s13 = sshll.u32 %s196_s12, 6  ;;  %s205_s17 = scalar_lea.hbm %s1353_s0, %s832_s14 }
  0x13   : > { %s200_s18 = scalar_lea.vmem [#allocation2], %s821_s13  ;;  %s206_s26 = sshll.u32 %s205_s17, 4  ;;  %s207_s26 = int_to_ptr.hbm [resolvable:$true] %s206_s26 }
  0x14   : > { %s208_s25 = sshll.u32 %s200_s18, 4  ;;  %p1108_p13 = pnand %p849_p11, %p35_p12  ;;  %s209_s25 = int_to_ptr.vmem [resolvable:$true] %s208_s25 }
  0x15   : > { %s197_s29 = scalar_lea.sflag [#allocation3], %s196_s12  ;;  %s939_s30 = sshra.s32 %s207_s26, 4  ;;  %s940_s30 = int_to_ptr.hbm [resolvable:$true] %s939_s30 }
  0x16   : > { %s941_s7 = scalar_lea.hbm %s940_s30, 64  ;;  %p943_p2 = pneg %p1108_p13 }
  0x17   : > { %p942_p0 = scmp.ne.s32.totalorder %s940_s30, %s941_s7  ;;  %s946_s10 = scalar_lea.hbm %s1353_s0, 128 }
  0x18   : > { %p947_p7 = scmp.lt.s32.totalorder %s940_s30, %s1353_s0  ;;  %p948_p8 = scmp.lt.s32.totalorder %s946_s10, %s941_s7 }
  0x19   : > { %p944_p3 = pnand %p943_p2, %p942_p0 }
  0x1a   : > { %p949_p9 = por %p948_p8, %p947_p7 }
  0x1b   : > { %p945_p6 = pneg %p944_p3 }
  0x1d   : > { %p950_p10 = pnand %p949_p9, %p945_p6 }
  0x1f   : > { %953 = shalt.err (!%p950_p10)
}
  0x20   : > { %s1012_s12 = smov 128   ;;  %s1013_s15 = smov 8  }
  0x21   : > { %847 = dma.hbm_to_vmem [thread:$0]  (!%p1108_p13), %s207_s26, 1024, %s209_s25, %s197_s29, %s1012_s12, %s1012_s12, %s1013_s15  }
  0x22   : > { %220 = sbr.rel (%p1082_p5) target bundleno = 577 (0x241), region = 40  ;;  %s222_s16 = sand.u32 (!%p1082_p5), 1, %s999_s19  }
  0x23   : > { %s825_s17 = sshll.u32 (!%p1082_p5), %s222_s16, 6  ;;  %s223_s18 = scalar_lea.sflag (!%p1082_p5), [#allocation3], %s222_s16 }
  0x24   : > { %s1125_s8 = scalar_lea.vmem (!%p1082_p5), [#allocation2], %s825_s17 }
  0x27   : > { %986 = dma.done.wait (%p1075_p4), %s223_s18, 1024  }
  0x28   : > { %988 = vsyncadd (%p1075_p4), %s223_s18, 4294966272 }
  0x29   : > { %990 = dma.done.wait (%p1067_p1), [#allocation5], 8192  }
  0x2a   : > { %992 = vsyncadd (%p1067_p1), [#allocation5], 4294959104  ;;  %v1136_v0 = vld [vmem:[%s1125_s8 + $0x20] sm:$0xff]  ;;  %v270_v1 = vld [vmem:[%s1125_s8 + $0x10] sm:$0xff]  ;;  %v1014_v7 = vmov 128.0   ;;  %s827_s26 = sshll.u32 %s816_s22, 3 }
  0x2b   : > { %v268_v2 = vld [vmem:[%s1125_s8] sm:$0xff]  ;;  %284 = vadd.xlane.f32.xlu2 %v1136_v0  ;;  %280 = vadd.xlane.f32.xlu1 %v270_v1  ;;  %v273_v3 = vld [vmem:[%s1125_s8 + $0x28] sm:$0xff]  ;;  %v271_v4 = vld [vmem:[%s1125_s8 + $0x18] sm:$0xff]  ;;  %891 = vrcp.f32 %v1014_v7  ;;  %p262_p1 = scmp.lt.s32.totalorder %s827_s26, 15 }
  0x2c   : > { %276 = vadd.xlane.f32.xlu0 %v268_v2  ;;  %v269_v5 = vld [vmem:[%s1125_s8 + $0x8] sm:$0xff]  ;;  %v274_v6 = vld [vmem:[%s1125_s8 + $0x30] sm:$0xff]  ;;  %v527_v16 = vld [vmem:[#allocation4 + $0x1e0] sm:$0xff] }
  0x2d   : > { %v528_v17 = vld [vmem:[#allocation4 + $0x1e8] sm:$0xff]  ;;  %v529_v18 = vld [vmem:[#allocation4 + $0x1f0] sm:$0xff]  ;;  %541 = vmatpush.msra.mxu0 %v527_v16  ;;  %v530_v21 = vld [vmem:[#allocation4 + $0x1f8] sm:$0xff]  ;;  %s1370_s26 = smov (!%p262_p1, %s827_s26), 15 }
  0x2e   : > { %582 = vmatpush.msra.mxu1 %v528_v17  ;;  %v523_v22 = vld [vmem:[#allocation4 + $0x1c0] sm:$0xff]  ;;  %v524_v23 = vld [vmem:[#allocation4 + $0x1c8] sm:$0xff]  ;;  %623 = vmatpush.msra.mxu2 %v529_v18  ;;  %v525_v25 = vld [vmem:[#allocation4 + $0x1d0] sm:$0xff]  ;;  %s833_s30 = sshll.u32 %s1370_s26, 5 }
  0x2f   : > { %664 = vmatpush.msra.mxu3 %v530_v21  ;;  %v526_v26 = vld [vmem:[#allocation4 + $0x1d8] sm:$0xff]  ;;  %542 = vmatpush.msra.mxu0 %v523_v22  ;;  %v519_v51 = vld [vmem:[#allocation4 + $0x1a0] sm:$0xff]  ;;  %v520_v52 = vld [vmem:[#allocation4 + $0x1a8] sm:$0xff]  ;;  %s1268_s7 = scalar_lea.vmem %s1358_s5, %s833_s30 }
  0x30   : > { %583 = vmatpush.msra.mxu1 %v524_v23  ;;  %624 = vmatpush.msra.mxu2 %v525_v25  ;;  %v1168_v41 = vld [vmem:[%s1125_s8 + $0x38] sm:$0xff]  ;;  %v521_v53 = vld [vmem:[#allocation4 + $0x1b0] sm:$0xff]  ;;  %v515_v55 = vld [vmem:[#allocation4 + $0x180] sm:$0xff] }
  0x31   : > { %v892_v8 = vpop.eup %891  ;;  %665 = vmatpush.msra.mxu3 %v526_v26  ;;  %543 = vmatpush.msra.mxu0 %v519_v51  ;;  %v522_v54 = vld [vmem:[#allocation4 + $0x1b8] sm:$0xff]  ;;  %v516_v56 = vld [vmem:[#allocation4 + $0x188] sm:$0xff]  ;;  %v517_v57 = vld [vmem:[#allocation4 + $0x190] sm:$0xff] }
  0x32   : > { %v293_v9 = vmul.f32 128.0, %v892_v8  ;;  %vm297_vm0 = vweird.f32 %v892_v8  ;;  %584 = vmatpush.msra.mxu1 %v520_v52  ;;  %625 = vmatpush.msra.mxu2 %v521_v53  ;;  %v518_v58 = vld [vmem:[#allocation4 + $0x198] sm:$0xff]  ;;  %v511_v59 = vld [vmem:[#allocation4 + $0x160] sm:$0xff]  ;;  %v512_v60 = vld [vmem:[#allocation4 + $0x168] sm:$0xff] }
  0x33   : > { %286 = vadd.xlane.f32.xlu2 %v273_v3  ;;  %282 = vadd.xlane.f32.xlu1 %v271_v4  ;;  %v513_v61 = vld [vmem:[#allocation4 + $0x170] sm:$0xff]  ;;  %v514_v62 = vld [vmem:[#allocation4 + $0x178] sm:$0xff]  ;;  %v507_v63 = vld [vmem:[#allocation4 + $0x140] sm:$0xff] }
  0x34   : > { %278 = vadd.xlane.f32.xlu0 %v269_v5  ;;  %v294_v10 = vsub.f32 1.0, %v293_v9  ;;  %666 = vmatpush.msra.mxu3 %v522_v54  ;;  %v499_v7 = vld [vmem:[#allocation4 + $0x100] sm:$0xff]  ;;  %v501_v9 = vld [vmem:[#allocation4 + $0x110] sm:$0xff]  ;;  %v492_v17 = vld [vmem:[#allocation4 + $0xc8] sm:$0xff] }
  0x35   : > { %544 = vmatpush.msra.mxu0 %v515_v55  ;;  %585 = vmatpush.msra.mxu1 %v516_v56  ;;  %v491_v16 = vld [vmem:[#allocation4 + $0xc0] sm:$0xff]  ;;  %v493_v18 = vld [vmem:[#allocation4 + $0xd0] sm:$0xff]  ;;  %v488_v21 = vld [vmem:[#allocation4 + $0xa8] sm:$0xff] }
  0x36   : > { %v295_v11 = vmul.f32 %v892_v8, %v294_v10  ;;  %626 = vmatpush.msra.mxu2 %v517_v57  ;;  %667 = vmatpush.msra.mxu3 %v518_v58  ;;  %v502_v10 = vld [vmem:[#allocation4 + $0x118] sm:$0xff]  ;;  %v489_v22 = vld [vmem:[#allocation4 + $0xb0] sm:$0xff]  ;;  %v484_v25 = vld [vmem:[#allocation4 + $0x88] sm:$0xff] }
  0x37   : > { %545 = vmatpush.msra.mxu0 %v511_v59  ;;  %586 = vmatpush.msra.mxu1 %v512_v60  ;;  %v490_v23 = vld [vmem:[#allocation4 + $0xb8] sm:$0xff]  ;;  %v485_v26 = vld [vmem:[#allocation4 + $0x90] sm:$0xff] }
  0x38   : > { %v296_v12 = vadd.f32 %v892_v8, %v295_v11  ;;  %627 = vmatpush.msra.mxu2 %v513_v61  ;;  %668 = vmatpush.msra.mxu3 %v514_v62  ;;  %v495_v11 = vld [vmem:[#allocation4 + $0xe0] sm:$0xff]  ;;  %v470_v51 = vld [vmem:[#allocation4 + $0x18] sm:$0xff] }
  0x39   : > { %546 = vmatpush.msra.mxu0 %v507_v63 }
  0x3a   : > { %v1145_v13 = vsel %vm297_vm0, %v892_v8, %v296_v12  ;;  %v500_v8 = vld [vmem:[#allocation4 + $0x108] sm:$0xff] }
  0x3b   : > { %288 = vadd.xlane.f32.xlu1 %v274_v6  ;;  %v496_v12 = vld [vmem:[#allocation4 + $0xe8] sm:$0xff] }
  0x9e   : > { %v285_v14 = vpop.xlane.xlu2 %284  ;;  %v281_v15 = vpop.xlane.xlu1 %280 }
  0x9f   : > { %v301_v19 = vmul.f32 %v1145_v13, %v281_v15  ;;  %v277_v20 = vpop.xlane.xlu0 %276  ;;  %v303_v37 = vmul.f32 %v1145_v13, %v285_v14  ;;  %v497_v14 = vld [vmem:[#allocation4 + $0xf0] sm:$0xff]  ;;  %v498_v15 = vld [vmem:[#allocation4 + $0xf8] sm:$0xff] }
  0xa0   : > { %v299_v24 = vmul.f32 %v1145_v13, %v277_v20  ;;  %v487_v20 = vld [vmem:[#allocation4 + $0xa0] sm:$0xff] }
  0xa1   : > { %v1149_v27 = vsub.f32 %v270_v1, %v301_v19  ;;  %v1173_v43 = vsub.f32 %v1136_v0, %v303_v37  ;;  %v508_v0 = vld [vmem:[#allocation4 + $0x148] sm:$0xff]  ;;  %v509_v1 = vld [vmem:[#allocation4 + $0x150] sm:$0xff]  ;;  %v494_v19 = vld [vmem:[#allocation4 + $0xd8] sm:$0xff] }
  0xa2   : > { %v1151_v28 = vsub.f32 %v268_v2, %v299_v24  ;;  %587 = vmatpush.msra.mxu1 %v508_v0  ;;  %v510_v2 = vld [vmem:[#allocation4 + $0x158] sm:$0xff]  ;;  %628 = vmatpush.msra.mxu2 %v509_v1  ;;  %v483_v24 = vld [vmem:[#allocation4 + $0x80] sm:$0xff]  ;;  %v477_v37 = vld [vmem:[#allocation4 + $0x50] sm:$0xff] }
  0xa3   : > { %v317_v29 = vmul.f32 %v1149_v27, %v1149_v27  ;;  %v319_v46 = vmul.f32 %v1173_v43, %v1173_v43  ;;  %669 = vmatpush.msra.mxu3 %v510_v2 }
  0xa4   : > { %v315_v30 = vmul.f32 %v1151_v28, %v1151_v28 }
  0xa5   : > { %327 = vadd.xlane.f32.xlu1 %v317_v29  ;;  %v486_v29 = vld [vmem:[#allocation4 + $0x98] sm:$0xff] }
  0xa6   : > { %323 = vadd.xlane.f32.xlu0 %v315_v30  ;;  %v287_v31 = vpop.xlane.xlu2 %286  ;;  %v283_v32 = vpop.xlane.xlu1 %282  ;;  %v479_v30 = vld [vmem:[#allocation4 + $0x60] sm:$0xff] }
  0xa7   : > { %v304_v33 = vmul.f32 %v1145_v13, %v287_v31  ;;  %v279_v34 = vpop.xlane.xlu0 %278  ;;  %v302_v39 = vmul.f32 %v1145_v13, %v283_v32  ;;  %v480_v31 = vld [vmem:[#allocation4 + $0x68] sm:$0xff]  ;;  %v481_v32 = vld [vmem:[#allocation4 + $0x70] sm:$0xff] }
  0xa8   : > { %v300_v35 = vmul.f32 %v1145_v13, %v279_v34  ;;  %v475_v34 = vld [vmem:[#allocation4 + $0x40] sm:$0xff] }
  0xa9   : > { %v1159_v36 = vsub.f32 %v273_v3, %v304_v33  ;;  %v1176_v44 = vsub.f32 %v271_v4, %v302_v39  ;;  %v503_v3 = vld [vmem:[#allocation4 + $0x120] sm:$0xff]  ;;  %v504_v4 = vld [vmem:[#allocation4 + $0x128] sm:$0xff]  ;;  %v482_v33 = vld [vmem:[#allocation4 + $0x78] sm:$0xff] }
  0xaa   : > { %v1162_v38 = vsub.f32 %v269_v5, %v300_v35  ;;  %v505_v5 = vld [vmem:[#allocation4 + $0x130] sm:$0xff]  ;;  %547 = vmatpush.msra.mxu0 %v503_v3  ;;  %588 = vmatpush.msra.mxu1 %v504_v4  ;;  %v476_v35 = vld [vmem:[#allocation4 + $0x48] sm:$0xff]  ;;  %v478_v39 = vld [vmem:[#allocation4 + $0x58] sm:$0xff] }
  0xab   : > { %v320_v40 = vmul.f32 %v1159_v36, %v1159_v36  ;;  %v318_v47 = vmul.f32 %v1176_v44, %v1176_v44  ;;  %629 = vmatpush.msra.mxu2 %v505_v5 }
  0xac   : > { %v316_v42 = vmul.f32 %v1162_v38, %v1162_v38  ;;  %548 = vmatpush.msra.mxu0 %v499_v7  ;;  %589 = vmatpush.msra.mxu1 %v500_v8 }
  0xad   : > { %333 = vadd.xlane.f32.xlu1 %v320_v40  ;;  %630 = vmatpush.msra.mxu2 %v501_v9  ;;  %v471_v40 = vld [vmem:[#allocation4 + $0x20] sm:$0xff] }
  0xae   : > { %290 = vadd.xlane.f32.xlu0 %v1168_v41  ;;  %325 = vadd.xlane.f32.xlu2 %v316_v42  ;;  %v289_v45 = vpop.xlane.xlu1 %288  ;;  %v472_v42 = vld [vmem:[#allocation4 + $0x28] sm:$0xff] }
  0xaf   : > { %v305_v48 = vmul.f32 %v1145_v13, %v289_v45  ;;  %549 = vmatpush.msra.mxu0 %v495_v11  ;;  %590 = vmatpush.msra.mxu1 %v496_v12  ;;  %v473_v45 = vld [vmem:[#allocation4 + $0x30] sm:$0xff] }
  0xb0   : > { %631 = vmatpush.msra.mxu2 %v497_v14 }
  0xb1   : > { %v1183_v49 = vsub.f32 %v274_v6, %v305_v48  ;;  %v506_v6 = vld [vmem:[#allocation4 + $0x138] sm:$0xff]  ;;  %550 = vmatpush.msra.mxu0 %v491_v16  ;;  %591 = vmatpush.msra.mxu1 %v492_v17  ;;  %v468_v48 = vld [vmem:[#allocation4 + $0x8] sm:$0xff] }
  0xb2   : > { %670 = vmatpush.msra.mxu3 %v506_v6  ;;  %632 = vmatpush.msra.mxu2 %v493_v18 }
  0xb3   : > { %v321_v50 = vmul.f32 %v1183_v49, %v1183_v49  ;;  %551 = vmatpush.msra.mxu0 %v487_v20  ;;  %592 = vmatpush.msra.mxu1 %v488_v21  ;;  %v1208_v21 = vld [vmem:[%s1354_s1] ss:$0 sm:$0xff] }
  0xb4   : > { %671 = vmatpush.msra.mxu3 %v502_v10  ;;  %633 = vmatpush.msra.mxu2 %v489_v22 }
  0xb5   : > { %552 = vmatpush.msra.mxu0 %v483_v24  ;;  %593 = vmatpush.msra.mxu1 %v484_v25 }
  0xb6   : > { %331 = vadd.xlane.f32.xlu0 %v319_v46  ;;  %329 = vadd.xlane.f32.xlu2 %v318_v47  ;;  %v474_v46 = vld [vmem:[#allocation4 + $0x38] sm:$0xff]  ;;  %v467_v47 = vld [vmem:[#allocation4] sm:$0xff] }
  0xb7   : > { %672 = vmatpush.msra.mxu3 %v498_v15  ;;  %634 = vmatpush.msra.mxu2 %v485_v26  ;;  %v1217_v26 = vld [vmem:[%s1355_s2] ss:$0 sm:$0xff] }
  0xb8   : > { %553 = vmatpush.msra.mxu0 %v479_v30  ;;  %594 = vmatpush.msra.mxu1 %v480_v31 }
  0xb9   : > { %673 = vmatpush.msra.mxu3 %v494_v19  ;;  %635 = vmatpush.msra.mxu2 %v481_v32 }
  0xba   : > { %554 = vmatpush.msra.mxu0 %v475_v34  ;;  %595 = vmatpush.msra.mxu1 %v476_v35 }
  0xbb   : > { %674 = vmatpush.msra.mxu3 %v490_v23  ;;  %636 = vmatpush.msra.mxu2 %v477_v37 }
  0xbc   : > { %555 = vmatpush.msra.mxu0 %v471_v40  ;;  %596 = vmatpush.msra.mxu1 %v472_v42 }
  0xbd   : > { %675 = vmatpush.msra.mxu3 %v486_v29  ;;  %637 = vmatpush.msra.mxu2 %v473_v45 }
  0xbe   : > { %335 = vadd.xlane.f32.xlu2 %v321_v50  ;;  %v469_v50 = vld [vmem:[#allocation4 + $0x10] sm:$0xff]  ;;  %556 = vmatpush.msra.mxu0 %v467_v47 }
  0xbf   : > { %676 = vmatpush.msra.mxu3 %v482_v33  ;;  %597 = vmatpush.msra.mxu1 %v468_v48 }
  0xc0   : > { %638 = vmatpush.msra.mxu2 %v469_v50 }
  0xc1   : > { %677 = vmatpush.msra.mxu3 %v478_v39 }
  0xc3   : > { %678 = vmatpush.msra.mxu3 %v474_v46 }
  0xc5   : > { %679 = vmatpush.msra.mxu3 %v470_v51 }
 0x118   : > { %v328_v52 = vpop.xlane.xlu1 %327 }
 0x119   : > { %v341_v53 = vmul.f32 %v328_v52, %v1145_v13  ;;  %v324_v54 = vpop.xlane.xlu0 %323 }
 0x11a   : > { %v339_v55 = vmul.f32 %v324_v54, %v1145_v13 }
 0x11b   : > { %v349_v56 = vadd.f32 1e-05, %v341_v53 }
 0x11c   : > { %v347_v57 = vadd.f32 1e-05, %v339_v55 }
 0x11d   : > { %893 = vrsqrt.f32 %v349_v56  ;;  %vm381_vm6 = vweird.f32 %v349_v56 }
 0x11e   : > { %895 = vrsqrt.f32 %v347_v57  ;;  %vm361_vm2 = vweird.f32 %v347_v57 }
 0x120   : > { %v334_v6 = vpop.xlane.xlu1 %333 }
 0x121   : > { %v326_v58 = vpop.xlane.xlu2 %325  ;;  %v291_v59 = vpop.xlane.xlu0 %290  ;;  %v344_v15 = vmul.f32 %v334_v6, %v1145_v13 }
 0x122   : > { %v340_v60 = vmul.f32 %v326_v58, %v1145_v13  ;;  %v306_v61 = vmul.f32 %v1145_v13, %v291_v59 }
 0x123   : > { %v1191_v62 = vpop.eup %893  ;;  %v1212_v25 = vadd.f32 1e-05, %v344_v15 }
 0x124   : > { %v896_v63 = vpop.eup %895  ;;  %v348_v0 = vadd.f32 1e-05, %v340_v60  ;;  %v1194_v1 = vsub.f32 %v1168_v41, %v306_v61  ;;  %v376_v2 = vmul.f32 %v1191_v62, %v349_v56  ;;  %vm382_vm7 = vweird.f32 %v1191_v62 }
 0x125   : > { %v356_v3 = vmul.f32 %v896_v63, %v347_v57  ;;  %vm362_vm1 = vweird.f32 %v896_v63  ;;  %vm1225_vm9 = vmor %vm381_vm6, %vm382_vm7  ;;  %vm411_vm0 = vweird.f32 %v1212_v25 }
 0x126   : > { %897 = vrsqrt.f32 %v348_v0  ;;  %v322_v4 = vmul.f32 %v1194_v1, %v1194_v1  ;;  %v377_v7 = vmul.f32 %v1191_v62, %v376_v2  ;;  %vm363_vm3 = vmor %vm361_vm2, %vm362_vm1  ;;  %vm371_vm4 = vweird.f32 %v348_v0 }
 0x127   : > { %v357_v5 = vmul.f32 %v896_v63, %v356_v3 }
 0x128   : > { %337 = vadd.xlane.f32.xlu0 %v322_v4  ;;  %v378_v17 = vmul.f32 0.5, %v377_v7 }
 0x129   : > { %v358_v8 = vmul.f32 0.5, %v357_v5  ;;  %v330_v9 = vpop.xlane.xlu2 %329  ;;  %v332_v10 = vpop.xlane.xlu0 %331 }
 0x12a   : > { %v342_v11 = vmul.f32 %v330_v9, %v1145_v13  ;;  %v343_v41 = vmul.f32 %v332_v10, %v1145_v13  ;;  %v379_v29 = vsub.f32 1.5, %v378_v17 }
 0x12b   : > { %v359_v12 = vsub.f32 1.5, %v358_v8 }
 0x12c   : > { %v898_v14 = vpop.eup %897  ;;  %v350_v16 = vadd.f32 1e-05, %v342_v11  ;;  %v1203_v20 = vadd.f32 1e-05, %v343_v41  ;;  %v380_v39 = vmul.f32 %v1191_v62, %v379_v29 }
 0x12d   : > { %v360_v18 = vmul.f32 %v896_v63, %v359_v12  ;;  %v366_v19 = vmul.f32 %v898_v14, %v348_v0  ;;  %vm372_vm5 = vweird.f32 %v898_v14 }
 0x12e   : > { %899 = vrsqrt.f32 %v350_v16  ;;  %vm373_vm8 = vmor %vm371_vm4, %vm372_vm5  ;;  %v384_v52 = vsel %vm1225_vm9, %v1191_v62, %v380_v39  ;;  %vm391_vm10 = vweird.f32 %v350_v16  ;;  %vm401_vm13 = vweird.f32 %v1203_v20 }
 0x12f   : > { %v364_v22 = vsel %vm363_vm3, %v896_v63, %v360_v18  ;;  %v367_v23 = vmul.f32 %v898_v14, %v366_v19  ;;  %901 = vrsqrt.f32 %v1203_v20  ;;  %v437_v58 = vmul.f32 %v384_v52, %v1149_v27 }
 0x130   : > { %v435_v24 = vmul.f32 %v364_v22, %v1151_v28  ;;  %903 = vrsqrt.f32 %v1212_v25 }
 0x131   : > { %v368_v30 = vmul.f32 0.5, %v367_v23  ;;  %v336_v31 = vpop.xlane.xlu2 %335  ;;  %v449_v62 = vmul.f32 %v1208_v21, %v437_v58 }
 0x132   : > { %v447_v32 = vmul.f32 %v1208_v21, %v435_v24  ;;  %v345_v28 = vmul.f32 %v336_v31, %v1145_v13 }
 0x133   : > { %v369_v33 = vsub.f32 1.5, %v368_v30  ;;  %v461_v4 = vadd.f32 %v1217_v26, %v449_v62 }
 0x134   : > { %v900_v34 = vpop.eup %899  ;;  %v459_v35 = vadd.f32 %v1217_v26, %v447_v32  ;;  %v353_v51 = vadd.f32 1e-05, %v345_v28 }
 0x135   : > { %v902_v37 = vpop.eup %901  ;;  %v370_v40 = vmul.f32 %v898_v14, %v369_v33  ;;  %v386_v42 = vmul.f32 %v900_v34, %v350_v16  ;;  %vm392_vm11 = vweird.f32 %v900_v34 }
 0x136   : > { %v396_v46 = vmul.f32 %v902_v37, %v1203_v20  ;;  %557 = vmatmul.f32.vlgmr.msra.gmra.mxu0 %v459_v35  ;;  %598 = vmatmul.f32.vlgmr.msra.gmra.mxu1 %v459_v35  ;;  %v904_v55 = vpop.eup %903  ;;  %905 = vrsqrt.f32 %v353_v51  ;;  %vm393_vm12 = vmor %vm391_vm10, %vm392_vm11  ;;  %vm402_vm14 = vweird.f32 %v902_v37  ;;  %vm421_vm3 = vweird.f32 %v353_v51 }
 0x137   : > { %v374_v47 = vsel %vm373_vm8, %v898_v14, %v370_v40  ;;  %v387_v48 = vmul.f32 %v900_v34, %v386_v42  ;;  %639 = vmatmul.f32.vlgmr.msra.gmra.mxu2 %v459_v35  ;;  %680 = vmatmul.f32.vlgmr.msra.gmra.mxu3 %v459_v35  ;;  %vm403_vm15 = vmor %vm401_vm13, %vm402_vm14  ;;  %vm412_vm1 = vweird.f32 %v904_v55  ;;  %v531_v35 = vld [vmem:[%s1357_s4] sm:$0xf] }
 0x138   : > { %v436_v50 = vmul.f32 %v374_v47, %v1162_v38  ;;  %v397_v54 = vmul.f32 %v902_v37, %v396_v46  ;;  %v406_v38 = vmul.f32 %v904_v55, %v1212_v25  ;;  %vm413_vm2 = vmor %vm411_vm0, %vm412_vm1  ;;  %v1262_v39 = vperm.slane %v531_v35, 1 }
 0x139   : > { %v388_v53 = vmul.f32 0.5, %v387_v48  ;;  %v1278_v52 = vperm.slane %v531_v35, 3 }
 0x13a   : > { %v448_v56 = vmul.f32 %v1208_v21, %v436_v50  ;;  %v398_v61 = vmul.f32 0.5, %v397_v54  ;;  %v407_v63 = vmul.f32 %v904_v55, %v406_v38 }
 0x13b   : > { %v389_v57 = vsub.f32 1.5, %v388_v53 }
 0x13c   : > { %v460_v59 = vadd.f32 %v1217_v26, %v448_v56  ;;  %v399_v2 = vsub.f32 1.5, %v398_v61  ;;  %v906_v3 = vpop.eup %905  ;;  %v408_v5 = vmul.f32 0.5, %v407_v63 }
 0x13d   : > { %v390_v60 = vmul.f32 %v900_v34, %v389_v57  ;;  %v416_v7 = vmul.f32 %v906_v3, %v353_v51  ;;  %vm422_vm4 = vweird.f32 %v906_v3 }
 0x13e   : > { %560 = vmatmul.f32.gmra.mxu0 %v460_v59  ;;  %601 = vmatmul.f32.gmra.mxu1 %v460_v59  ;;  %v400_v6 = vmul.f32 %v902_v37, %v399_v2  ;;  %v409_v9 = vsub.f32 1.5, %v408_v5  ;;  %vm423_vm5 = vmor %vm421_vm3, %vm422_vm4 }
 0x13f   : > { %642 = vmatmul.f32.gmra.mxu2 %v460_v59  ;;  %683 = vmatmul.f32.gmra.mxu3 %v460_v59  ;;  %v394_v0 = vsel %vm393_vm12, %v900_v34, %v390_v60  ;;  %v417_v11 = vmul.f32 %v906_v3, %v416_v7 }
 0x140   : > { %v438_v27 = vmul.f32 %v394_v0, %v1176_v44  ;;  %v404_v10 = vsel %vm403_vm15, %v902_v37, %v400_v6  ;;  %v410_v12 = vmul.f32 %v904_v55, %v409_v9 }
 0x141   : > { %v439_v44 = vmul.f32 %v404_v10, %v1173_v43  ;;  %v418_v14 = vmul.f32 0.5, %v417_v11 }
 0x142   : > { %v450_v8 = vmul.f32 %v1208_v21, %v438_v27  ;;  %v414_v16 = vsel %vm413_vm2, %v904_v55, %v410_v12 }
 0x143   : > { %v451_v15 = vmul.f32 %v1208_v21, %v439_v44  ;;  %v419_v17 = vsub.f32 1.5, %v418_v14  ;;  %v440_v18 = vmul.f32 %v414_v16, %v1159_v36 }
 0x144   : > { %v462_v41 = vadd.f32 %v1217_v26, %v450_v8 }
 0x145   : > { %v463_v19 = vadd.f32 %v1217_v26, %v451_v15  ;;  %v420_v43 = vmul.f32 %v906_v3, %v419_v17  ;;  %v452_v20 = vmul.f32 %v1208_v21, %v440_v18 }
 0x146   : > { %563 = vmatmul.f32.gmra.mxu0 %v461_v4  ;;  %604 = vmatmul.f32.gmra.mxu1 %v461_v4 }
 0x147   : > { %645 = vmatmul.f32.gmra.mxu2 %v461_v4  ;;  %686 = vmatmul.f32.gmra.mxu3 %v461_v4  ;;  %v424_v22 = vsel %vm423_vm5, %v906_v3, %v420_v43  ;;  %v464_v24 = vadd.f32 %v1217_v26, %v452_v20 }
 0x148   : > { %v441_v23 = vmul.f32 %v424_v22, %v1183_v49 }
 0x14a   : > { %v453_v36 = vmul.f32 %v1208_v21, %v441_v23 }
 0x14c   : > { %v465_v25 = vadd.f32 %v1217_v26, %v453_v36 }
 0x14e   : > { %566 = vmatmul.f32.gmra.mxu0 %v462_v41  ;;  %607 = vmatmul.f32.gmra.mxu1 %v462_v41 }
 0x14f   : > { %648 = vmatmul.f32.gmra.mxu2 %v462_v41  ;;  %689 = vmatmul.f32.gmra.mxu3 %v462_v41 }
 0x156   : > { %569 = vmatmul.f32.gmra.mxu0 %v463_v19  ;;  %610 = vmatmul.f32.gmra.mxu1 %v463_v19 }
 0x157   : > { %651 = vmatmul.f32.gmra.mxu2 %v463_v19  ;;  %692 = vmatmul.f32.gmra.mxu3 %v463_v19 }
 0x15e   : > { %572 = vmatmul.f32.gmra.mxu0 %v464_v24  ;;  %613 = vmatmul.f32.gmra.mxu1 %v464_v24 }
 0x15f   : > { %654 = vmatmul.f32.gmra.mxu2 %v464_v24  ;;  %695 = vmatmul.f32.gmra.mxu3 %v464_v24 }
 0x166   : > { %575 = vmatmul.f32.gmra.mxu0 %v465_v25  ;;  %616 = vmatmul.f32.gmra.mxu1 %v465_v25 }
 0x167   : > { %657 = vmatmul.f32.gmra.mxu2 %v465_v25  ;;  %698 = vmatmul.f32.gmra.mxu3 %v465_v25 }
 0x19b   : > { %v338_v29 = vpop.xlane.xlu0 %337 }
 0x19c   : > { %v346_v30 = vmul.f32 %v338_v29, %v1145_v13  ;;  %v1260_v13 = vperm.slane %v531_v35, 0 }
 0x19e   : > { %v354_v31 = vadd.f32 1e-05, %v346_v30 }
 0x1a0   : > { %907 = vrsqrt.f32 %v354_v31  ;;  %vm431_vm7 = vweird.f32 %v354_v31 }
 0x1a6   : > { %v908_v49 = vpop.eup %907 }
 0x1a7   : > { %v426_v32 = vmul.f32 %v908_v49, %v354_v31  ;;  %vm432_vm6 = vweird.f32 %v908_v49 }
 0x1a8   : > { %vm433_vm8 = vmor %vm431_vm7, %vm432_vm6 }
 0x1a9   : > { %v427_v33 = vmul.f32 %v908_v49, %v426_v32 }
 0x1ab   : > { %v428_v34 = vmul.f32 0.5, %v427_v33 }
 0x1ad   : > { %v429_v28 = vsub.f32 1.5, %v428_v34 }
 0x1af   : > { %v430_v37 = vmul.f32 %v908_v49, %v429_v28 }
 0x1b1   : > { %v434_v40 = vsel %vm433_vm8, %v908_v49, %v430_v37 }
 0x1b2   : > { %v442_v42 = vmul.f32 %v434_v40, %v1194_v1  ;;  %v1276_v1 = vperm.slane %v531_v35, 2 }
 0x1b3   : > { %v558_v45 = vpop.f32.mrf.mxu0  ;;  %v599_v46 = vpop.f32.mrf.mxu1 }
 0x1b4   : > { %v559_v47 = vadd.f32 %v558_v45, %v1260_v13  ;;  %v600_v48 = vadd.f32 %v599_v46, %v1262_v39  ;;  %v454_v50 = vmul.f32 %v1208_v21, %v442_v42 }
 0x1b6   : > { %705 = vst [vmem:[%s1268_s7] sm:$0xff] %v559_v47  ;;  %v466_v51 = vadd.f32 %v1217_v26, %v454_v50 }
 0x1b7   : > { %706 = vst [vmem:[%s1268_s7 + $0x8] sm:$0xff] %v600_v48 }
 0x1b8   : > { %578 = vmatmul.f32.gmra.mxu0 %v466_v51  ;;  %619 = vmatmul.f32.gmra.mxu1 %v466_v51 }
 0x1b9   : > { %660 = vmatmul.f32.gmra.mxu2 %v466_v51  ;;  %701 = vmatmul.f32.gmra.mxu3 %v466_v51 }
 0x1ba   : > { %v640_v53 = vpop.f32.mrf.mxu2  ;;  %v681_v54 = vpop.f32.mrf.mxu3 }
 0x1bb   : > { %v641_v21 = vadd.f32 %v640_v53, %v1276_v1  ;;  %v682_v55 = vadd.f32 %v681_v54, %v1278_v52  ;;  %v561_v26 = vpop.f32.mrf.mxu0  ;;  %v602_v56 = vpop.f32.mrf.mxu1 }
 0x1bc   : > { %v562_v57 = vadd.f32 %v561_v26, %v1260_v13  ;;  %v603_v58 = vadd.f32 %v602_v56, %v1262_v39 }
 0x1bd   : > { %707 = vst [vmem:[%s1268_s7 + $0x10] sm:$0xff] %v641_v21 }
 0x1be   : > { %708 = vst [vmem:[%s1268_s7 + $0x18] sm:$0xff] %v682_v55 }
 0x1bf   : > { %709 = vst [vmem:[%s1268_s7 + $0x20] sm:$0xff] %v562_v57 }
 0x1c0   : > { %710 = vst [vmem:[%s1268_s7 + $0x28] sm:$0xff] %v603_v58 }
 0x1c2   : > { %v643_v59 = vpop.f32.mrf.mxu2  ;;  %v684_v38 = vpop.f32.mrf.mxu3 }
 0x1c3   : > { %v644_v60 = vadd.f32 %v643_v59, %v1276_v1  ;;  %v685_v61 = vadd.f32 %v684_v38, %v1278_v52  ;;  %v564_v62 = vpop.f32.mrf.mxu0  ;;  %v605_v63 = vpop.f32.mrf.mxu1 }
 0x1c4   : > { %v565_v0 = vadd.f32 %v564_v62, %v1260_v13  ;;  %v606_v2 = vadd.f32 %v605_v63, %v1262_v39 }
 0x1c5   : > { %711 = vst [vmem:[%s1268_s7 + $0x30] sm:$0xff] %v644_v60 }
 0x1c6   : > { %712 = vst [vmem:[%s1268_s7 + $0x38] sm:$0xff] %v685_v61 }
 0x1c7   : > { %713 = vst [vmem:[%s1268_s7 + $0x40] sm:$0xff] %v565_v0 }
 0x1c8   : > { %714 = vst [vmem:[%s1268_s7 + $0x48] sm:$0xff] %v606_v2 }
 0x1ca   : > { %v646_v3 = vpop.f32.mrf.mxu2  ;;  %v687_v27 = vpop.f32.mrf.mxu3 }
 0x1cb   : > { %v647_v4 = vadd.f32 %v646_v3, %v1276_v1  ;;  %v688_v5 = vadd.f32 %v687_v27, %v1278_v52  ;;  %v567_v6 = vpop.f32.mrf.mxu0  ;;  %v608_v7 = vpop.f32.mrf.mxu1 }
 0x1cc   : > { %v568_v8 = vadd.f32 %v567_v6, %v1260_v13  ;;  %v609_v9 = vadd.f32 %v608_v7, %v1262_v39 }
 0x1cd   : > { %715 = vst [vmem:[%s1268_s7 + $0x50] sm:$0xff] %v647_v4 }
 0x1ce   : > { %716 = vst [vmem:[%s1268_s7 + $0x58] sm:$0xff] %v688_v5 }
 0x1cf   : > { %717 = vst [vmem:[%s1268_s7 + $0x60] sm:$0xff] %v568_v8 }
 0x1d0   : > { %718 = vst [vmem:[%s1268_s7 + $0x68] sm:$0xff] %v609_v9 }
 0x1d2   : > { %v649_v10 = vpop.f32.mrf.mxu2  ;;  %v690_v11 = vpop.f32.mrf.mxu3 }
 0x1d3   : > { %v650_v44 = vadd.f32 %v649_v10, %v1276_v1  ;;  %v691_v41 = vadd.f32 %v690_v11, %v1278_v52  ;;  %v570_v12 = vpop.f32.mrf.mxu0  ;;  %v611_v14 = vpop.f32.mrf.mxu1 }
 0x1d4   : > { %v571_v15 = vadd.f32 %v570_v12, %v1260_v13  ;;  %v612_v16 = vadd.f32 %v611_v14, %v1262_v39 }
 0x1d5   : > { %719 = vst [vmem:[%s1268_s7 + $0x70] sm:$0xff] %v650_v44 }
 0x1d6   : > { %720 = vst [vmem:[%s1268_s7 + $0x78] sm:$0xff] %v691_v41 }
 0x1d7   : > { %721 = vst [vmem:[%s1268_s7 + $0x80] sm:$0xff] %v571_v15 }
 0x1d8   : > { %722 = vst [vmem:[%s1268_s7 + $0x88] sm:$0xff] %v612_v16 }
 0x1da   : > { %v652_v17 = vpop.f32.mrf.mxu2  ;;  %v693_v18 = vpop.f32.mrf.mxu3 }
 0x1db   : > { %v653_v19 = vadd.f32 %v652_v17, %v1276_v1  ;;  %v694_v43 = vadd.f32 %v693_v18, %v1278_v52  ;;  %v573_v20 = vpop.f32.mrf.mxu0  ;;  %v614_v22 = vpop.f32.mrf.mxu1 }
 0x1dc   : > { %v574_v23 = vadd.f32 %v573_v20, %v1260_v13  ;;  %v615_v24 = vadd.f32 %v614_v22, %v1262_v39 }
 0x1dd   : > { %723 = vst [vmem:[%s1268_s7 + $0x90] sm:$0xff] %v653_v19 }
 0x1de   : > { %724 = vst [vmem:[%s1268_s7 + $0x98] sm:$0xff] %v694_v43 }
 0x1df   : > { %725 = vst [vmem:[%s1268_s7 + $0xa0] sm:$0xff] %v574_v23 }
 0x1e0   : > { %726 = vst [vmem:[%s1268_s7 + $0xa8] sm:$0xff] %v615_v24 }
 0x1e2   : > { %v655_v36 = vpop.f32.mrf.mxu2  ;;  %v696_v25 = vpop.f32.mrf.mxu3 }
 0x1e3   : > { %v656_v29 = vadd.f32 %v655_v36, %v1276_v1  ;;  %v697_v30 = vadd.f32 %v696_v25, %v1278_v52  ;;  %v576_v31 = vpop.f32.mrf.mxu0  ;;  %v617_v49 = vpop.f32.mrf.mxu1 }
 0x1e4   : > { %v577_v32 = vadd.f32 %v576_v31, %v1260_v13  ;;  %v618_v33 = vadd.f32 %v617_v49, %v1262_v39 }
 0x1e5   : > { %727 = vst [vmem:[%s1268_s7 + $0xb0] sm:$0xff] %v656_v29 }
 0x1e6   : > { %728 = vst [vmem:[%s1268_s7 + $0xb8] sm:$0xff] %v697_v30 }
 0x1e7   : > { %729 = vst [vmem:[%s1268_s7 + $0xc0] sm:$0xff] %v577_v32 }
 0x1e8   : > { %730 = vst [vmem:[%s1268_s7 + $0xc8] sm:$0xff] %v618_v33 }
 0x1ea   : > { %v658_v34 = vpop.f32.mrf.mxu2  ;;  %v699_v28 = vpop.f32.mrf.mxu3 }
 0x1eb   : > { %v659_v35 = vadd.f32 %v658_v34, %v1276_v1  ;;  %v700_v37 = vadd.f32 %v699_v28, %v1278_v52 }
 0x1ed   : > { %731 = vst [vmem:[%s1268_s7 + $0xd0] sm:$0xff] %v659_v35 }
 0x1ee   : > { %732 = vst [vmem:[%s1268_s7 + $0xd8] sm:$0xff] %v700_v37 }
 0x235   : > { %v579_v40 = vpop.f32.mrf.mxu0  ;;  %v620_v42 = vpop.f32.mrf.mxu1 }
 0x236   : > { %v580_v45 = vadd.f32 %v579_v40, %v1260_v13  ;;  %v621_v46 = vadd.f32 %v620_v42, %v1262_v39 }
 0x238   : > { %733 = vst [vmem:[%s1268_s7 + $0xe0] sm:$0xff] %v580_v45 }
 0x239   : > { %734 = vst [vmem:[%s1268_s7 + $0xe8] sm:$0xff] %v621_v46 }
 0x23c   : > { %v661_v47 = vpop.f32.mrf.mxu2  ;;  %v702_v48 = vpop.f32.mrf.mxu3 }
 0x23d   : > { %v662_v50 = vadd.f32 %v661_v47, %v1276_v1  ;;  %v703_v51 = vadd.f32 %v702_v48, %v1278_v52 }
 0x23f   : > { %735 = vst [vmem:[%s1268_s7 + $0xf0] sm:$0xff] %v662_v50 }
 0x240   : > { %736 = vst [vmem:[%s1268_s7 + $0xf8] sm:$0xff] %v703_v51 }
 0x241 PF: > { %p16_p4 = scmp.ge.s32.totalorder %s1091_s6, 4   ;;  %s1365_s18 = smov %s999_s19 }
 0x242   : > { %s1366_s19 = smov %s1003_s20  ;;  %s1367_s20 = smov %s1101_s11 }
 0x243   : > { %s1368_s21 = smov %s1091_s6  ;;  %18 = sbr.rel (!%p16_p4) target bundleno = 4 (0x4), region = 84 }
 0x248   :  { %761 = vsyncpa [#allocation3], 1 }
 0x249   :  { %763 = vsyncpa [#allocation3 + $0x1], 1 }
 0x24a   :  { %764 = vsyncpa [#allocation5], 1 }

// kernel: transformer_forward.12
= control target key start
LH: loop header
LB: loop body
LE: loop exit
PB: predicated region body
PF: predicated region fallthrough
CT: control target
= control target key end

     0   :  { %s541_s15 = smov 0   ;;  %s704_s0 = inlined_call_operand.vmem [shape: f32[128,256], index: 0, kind: input, shape index: {}]   ;;  %s705_s1 = inlined_call_operand.vmem [shape: f32[256,128], index: 1, kind: input, shape index: {}]   ;;  %s706_s2 = inlined_call_operand.vmem [shape: f32[1,128], index: 2, kind: input, shape index: {}]   ;;  %s707_s3 = inlined_call_operand.vmem [shape: f32[128,128], index: 3, kind: input, shape index: {}]   ;;  %s708_s4 = inlined_call_operand.vmem [shape: f32[128,128], index: 4, kind: output, shape index: {}]  }
   0x1 LB: > { %s452_s16 = sadd.s32 4294967295, %s514_s15   ;;  %p456_p0 = scmp.ge.s32.totalorder %s514_s15, 1  ;;  %s514_s15 = sphi %s541_s15, %s14_s15  }
   0x2   : > { %p175_p1 = scmp.lt.s32.totalorder %s514_s15, 3 }
   0x4   : > { %p176_p2 = pnand %p456_p0, %p175_p1 }
   0x5   : > { %s457_s25 = sshll.u32 (!%p176_p2), %s452_s16, 3 }
   0x6   : > { %179 = sbr.rel (%p176_p2) target bundleno = 206 (0xce), region = 36  ;;  %p208_p3 = scmp.lt.s32.totalorder (!%p176_p2), %s457_s25, 15 }
   0xb   : > { %v257_v0 = vld [vmem:[%s705_s1 + $0x78] sm:$0xff]  ;;  %v256_v1 = vld [vmem:[%s705_s1 + $0x70] sm:$0xff]  ;;  %v255_v4 = vld [vmem:[%s705_s1 + $0x68] sm:$0xff]  ;;  %s710_s25 = smov (!%p208_p3, %s457_s25), 15 }
   0xc   : > { %v273_v2 = vld [vmem:[%s705_s1 + $0xf8] sm:$0xff]  ;;  %467 = vmatpush.msra.mxu2 %v257_v0  ;;  %v272_v3 = vld [vmem:[%s705_s1 + $0xf0] sm:$0xff]  ;;  %278 = vmatpush.msra.mxu0 %v257_v0  ;;  %v271_v5 = vld [vmem:[%s705_s1 + $0xe8] sm:$0xff]  ;;  %s466_s21 = sshll.u32 %s710_s25, 4  ;;  %s461_s11 = sshll.u32 %s710_s25, 3 }
   0xd   : > { %483 = vmatpush.msra.mxu3 %v273_v2  ;;  %319 = vmatpush.msra.mxu1 %v273_v2  ;;  %v254_v6 = vld [vmem:[%s705_s1 + $0x60] sm:$0xff]  ;;  %v253_v8 = vld [vmem:[%s705_s1 + $0x58] sm:$0xff]  ;;  %v252_v10 = vld [vmem:[%s705_s1 + $0x50] sm:$0xff]  ;;  %s647_s6 = scalar_lea.vmem %s704_s0, %s466_s21  ;;  %s678_s18 = scalar_lea.vmem %s707_s3, %s461_s11 }
   0xe   : > { %468 = vmatpush.msra.mxu2 %v256_v1  ;;  %279 = vmatpush.msra.mxu0 %v256_v1  ;;  %v270_v7 = vld [vmem:[%s705_s1 + $0xe0] sm:$0xff]  ;;  %v269_v9 = vld [vmem:[%s705_s1 + $0xd8] sm:$0xff]  ;;  %v268_v11 = vld [vmem:[%s705_s1 + $0xd0] sm:$0xff]  ;;  %s684_s20 = scalar_lea.vmem %s708_s4, %s461_s11 }
   0xf   : > { %484 = vmatpush.msra.mxu3 %v272_v3  ;;  %320 = vmatpush.msra.mxu1 %v272_v3  ;;  %v251_v12 = vld [vmem:[%s705_s1 + $0x48] sm:$0xff]  ;;  %v250_v14 = vld [vmem:[%s705_s1 + $0x40] sm:$0xff]  ;;  %v249_v16 = vld [vmem:[%s705_s1 + $0x38] sm:$0xff] }
  0x10   : > { %469 = vmatpush.msra.mxu2 %v255_v4  ;;  %280 = vmatpush.msra.mxu0 %v255_v4  ;;  %v267_v13 = vld [vmem:[%s705_s1 + $0xc8] sm:$0xff]  ;;  %v266_v15 = vld [vmem:[%s705_s1 + $0xc0] sm:$0xff]  ;;  %v265_v17 = vld [vmem:[%s705_s1 + $0xb8] sm:$0xff] }
  0x11   : > { %485 = vmatpush.msra.mxu3 %v271_v5  ;;  %321 = vmatpush.msra.mxu1 %v271_v5  ;;  %v248_v18 = vld [vmem:[%s705_s1 + $0x30] sm:$0xff]  ;;  %v247_v20 = vld [vmem:[%s705_s1 + $0x28] sm:$0xff]  ;;  %v246_v22 = vld [vmem:[%s705_s1 + $0x20] sm:$0xff] }
  0x12   : > { %470 = vmatpush.msra.mxu2 %v254_v6  ;;  %281 = vmatpush.msra.mxu0 %v254_v6  ;;  %v264_v19 = vld [vmem:[%s705_s1 + $0xb0] sm:$0xff]  ;;  %v263_v21 = vld [vmem:[%s705_s1 + $0xa8] sm:$0xff]  ;;  %v262_v23 = vld [vmem:[%s705_s1 + $0xa0] sm:$0xff] }
  0x13   : > { %486 = vmatpush.msra.mxu3 %v270_v7  ;;  %322 = vmatpush.msra.mxu1 %v270_v7  ;;  %v245_v24 = vld [vmem:[%s705_s1 + $0x18] sm:$0xff]  ;;  %v244_v26 = vld [vmem:[%s705_s1 + $0x10] sm:$0xff]  ;;  %v243_v28 = vld [vmem:[%s705_s1 + $0x8] sm:$0xff] }
  0x14   : > { %471 = vmatpush.msra.mxu2 %v253_v8  ;;  %282 = vmatpush.msra.mxu0 %v253_v8  ;;  %v261_v25 = vld [vmem:[%s705_s1 + $0x98] sm:$0xff]  ;;  %v260_v27 = vld [vmem:[%s705_s1 + $0x90] sm:$0xff]  ;;  %v259_v29 = vld [vmem:[%s705_s1 + $0x88] sm:$0xff] }
  0x15   : > { %487 = vmatpush.msra.mxu3 %v269_v9  ;;  %323 = vmatpush.msra.mxu1 %v269_v9  ;;  %v242_v30 = vld [vmem:[%s705_s1] sm:$0xff]  ;;  %v235_v33 = vld [vmem:[%s647_s6 + $0x48] sm:$0xff]  ;;  %v236_v36 = vld [vmem:[%s647_s6 + $0x50] sm:$0xff] }
  0x16   : > { %472 = vmatpush.msra.mxu2 %v252_v10  ;;  %283 = vmatpush.msra.mxu0 %v252_v10  ;;  %v258_v31 = vld [vmem:[%s705_s1 + $0x80] sm:$0xff]  ;;  %v227_v35 = vld [vmem:[%s647_s6 + $0x8] sm:$0xff]  ;;  %v237_v37 = vld [vmem:[%s647_s6 + $0x58] sm:$0xff] }
  0x17   : > { %488 = vmatpush.msra.mxu3 %v268_v11  ;;  %324 = vmatpush.msra.mxu1 %v268_v11  ;;  %v234_v32 = vld [vmem:[%s647_s6 + $0x40] sm:$0xff]  ;;  %v228_v38 = vld [vmem:[%s647_s6 + $0x10] sm:$0xff]  ;;  %v229_v39 = vld [vmem:[%s647_s6 + $0x18] sm:$0xff] }
  0x18   : > { %473 = vmatpush.msra.mxu2 %v251_v12  ;;  %284 = vmatpush.msra.mxu0 %v251_v12  ;;  %v226_v34 = vld [vmem:[%s647_s6] sm:$0xff]  ;;  %v239_v41 = vld [vmem:[%s647_s6 + $0x68] sm:$0xff]  ;;  %v240_v44 = vld [vmem:[%s647_s6 + $0x70] sm:$0xff] }
  0x19   : > { %489 = vmatpush.msra.mxu3 %v267_v13  ;;  %325 = vmatpush.msra.mxu1 %v267_v13  ;;  %v238_v40 = vld [vmem:[%s647_s6 + $0x60] sm:$0xff]  ;;  %v231_v43 = vld [vmem:[%s647_s6 + $0x28] sm:$0xff]  ;;  %v241_v45 = vld [vmem:[%s647_s6 + $0x78] sm:$0xff] }
  0x1a   : > { %474 = vmatpush.msra.mxu2 %v250_v14  ;;  %285 = vmatpush.msra.mxu0 %v250_v14  ;;  %v230_v42 = vld [vmem:[%s647_s6 + $0x20] sm:$0xff]  ;;  %v232_v46 = vld [vmem:[%s647_s6 + $0x30] sm:$0xff]  ;;  %v233_v47 = vld [vmem:[%s647_s6 + $0x38] sm:$0xff] }
  0x1b   : > { %490 = vmatpush.msra.mxu3 %v266_v15  ;;  %326 = vmatpush.msra.mxu1 %v266_v15  ;;  %v507_v48 = vld [vmem:[%s706_s2] ss:$0 sm:$0xff]  ;;  %v361_v0 = vld [vmem:[%s678_s18 + $0x8] sm:$0xff]  ;;  %v362_v12 = vld [vmem:[%s678_s18 + $0x10] sm:$0xff] }
  0x1c   : > { %475 = vmatpush.msra.mxu2 %v249_v16  ;;  %286 = vmatpush.msra.mxu0 %v249_v16  ;;  %v360_v52 = vld [vmem:[%s678_s18] sm:$0xff]  ;;  %v365_v6 = vld [vmem:[%s678_s18 + $0x28] sm:$0xff] }
  0x1d   : > { %491 = vmatpush.msra.mxu3 %v265_v17  ;;  %327 = vmatpush.msra.mxu1 %v265_v17  ;;  %v364_v58 = vld [vmem:[%s678_s18 + $0x20] sm:$0xff] }
  0x1e   : > { %476 = vmatpush.msra.mxu2 %v248_v18  ;;  %287 = vmatpush.msra.mxu0 %v248_v18  ;;  %v366_v18 = vld [vmem:[%s678_s18 + $0x30] sm:$0xff] }
  0x1f   : > { %492 = vmatpush.msra.mxu3 %v264_v19  ;;  %328 = vmatpush.msra.mxu1 %v264_v19 }
  0x20   : > { %477 = vmatpush.msra.mxu2 %v247_v20  ;;  %288 = vmatpush.msra.mxu0 %v247_v20 }
  0x21   : > { %493 = vmatpush.msra.mxu3 %v263_v21  ;;  %329 = vmatpush.msra.mxu1 %v263_v21 }
  0x22   : > { %478 = vmatpush.msra.mxu2 %v246_v22  ;;  %289 = vmatpush.msra.mxu0 %v246_v22 }
  0x23   : > { %494 = vmatpush.msra.mxu3 %v262_v23  ;;  %330 = vmatpush.msra.mxu1 %v262_v23 }
  0x24   : > { %479 = vmatpush.msra.mxu2 %v245_v24  ;;  %290 = vmatpush.msra.mxu0 %v245_v24  ;;  %v363_v24 = vld [vmem:[%s678_s18 + $0x18] sm:$0xff] }
  0x25   : > { %495 = vmatpush.msra.mxu3 %v261_v25  ;;  %331 = vmatpush.msra.mxu1 %v261_v25 }
  0x26   : > { %480 = vmatpush.msra.mxu2 %v244_v26  ;;  %291 = vmatpush.msra.mxu0 %v244_v26 }
  0x27   : > { %496 = vmatpush.msra.mxu3 %v260_v27  ;;  %332 = vmatpush.msra.mxu1 %v260_v27 }
  0x28   : > { %481 = vmatpush.msra.mxu2 %v243_v28  ;;  %292 = vmatpush.msra.mxu0 %v243_v28 }
  0x29   : > { %497 = vmatpush.msra.mxu3 %v259_v29  ;;  %333 = vmatpush.msra.mxu1 %v259_v29 }
  0x2a   : > { %482 = vmatpush.msra.mxu2 %v242_v30  ;;  %293 = vmatpush.msra.mxu0 %v242_v30  ;;  %v367_v30 = vld [vmem:[%s678_s18 + $0x38] sm:$0xff] }
  0x2b   : > { %498 = vmatpush.msra.mxu3 %v258_v31  ;;  %306 = vmatmul.f32.vlgmr.msra.gmra.mxu2 %v234_v32 }
  0x2c   : > { %347 = vmatmul.f32.vlgmr.msra.gmra.mxu3 %v235_v33  ;;  %334 = vmatpush.msra.mxu1 %v258_v31 }
  0x2d   : > { %294 = vmatmul.f32.vlgmr.msra.gmra.mxu0 %v226_v34  ;;  %335 = vmatmul.f32.vlgmr.msra.gmra.mxu1 %v227_v35 }
  0x33   : > { %309 = vmatmul.f32.gmra.mxu2 %v236_v36 }
  0x34   : > { %350 = vmatmul.f32.gmra.mxu3 %v237_v37 }
  0x35   : > { %297 = vmatmul.f32.gmra.mxu0 %v228_v38  ;;  %338 = vmatmul.f32.gmra.mxu1 %v229_v39 }
  0x3b   : > { %312 = vmatmul.f32.gmra.mxu2 %v238_v40 }
  0x3c   : > { %353 = vmatmul.f32.gmra.mxu3 %v239_v41 }
  0x3d   : > { %300 = vmatmul.f32.gmra.mxu0 %v230_v42  ;;  %341 = vmatmul.f32.gmra.mxu1 %v231_v43 }
  0x43   : > { %315 = vmatmul.f32.gmra.mxu2 %v240_v44 }
  0x44   : > { %356 = vmatmul.f32.gmra.mxu3 %v241_v45 }
  0x45   : > { %303 = vmatmul.f32.gmra.mxu0 %v232_v46  ;;  %344 = vmatmul.f32.gmra.mxu1 %v233_v47 }
  0xaa   : > { %v295_v49 = vpop.f32.mrf.mxu0  ;;  %v336_v50 = vpop.f32.mrf.mxu1 }
  0xab   : > { %v296_v51 = vadd.f32 %v507_v48, %v295_v49 }
  0xad   : > { %v337_v53 = vadd.f32 %v336_v50, %v296_v51 }
  0xae   : > { %v307_v54 = vpop.f32.mrf.mxu2 }
  0xaf   : > { %v348_v55 = vpop.f32.mrf.mxu3  ;;  %v308_v56 = vadd.f32 %v507_v48, %v307_v54  ;;  %v368_v57 = vadd.f32 %v360_v52, %v337_v53 }
  0xb1   : > { %376 = vst [vmem:[%s684_s20] sm:$0xff] %v368_v57  ;;  %v349_v59 = vadd.f32 %v348_v55, %v308_v56 }
  0xb2   : > { %v298_v60 = vpop.f32.mrf.mxu0  ;;  %v339_v61 = vpop.f32.mrf.mxu1 }
  0xb3   : > { %v372_v62 = vadd.f32 %v364_v58, %v349_v59  ;;  %v299_v63 = vadd.f32 %v507_v48, %v298_v60 }
  0xb5   : > { %380 = vst [vmem:[%s684_s20 + $0x20] sm:$0xff] %v372_v62  ;;  %v340_v1 = vadd.f32 %v339_v61, %v299_v63 }
  0xb6   : > { %v310_v2 = vpop.f32.mrf.mxu2 }
  0xb7   : > { %v351_v3 = vpop.f32.mrf.mxu3  ;;  %v311_v4 = vadd.f32 %v507_v48, %v310_v2  ;;  %v369_v5 = vadd.f32 %v361_v0, %v340_v1 }
  0xb9   : > { %377 = vst [vmem:[%s684_s20 + $0x8] sm:$0xff] %v369_v5  ;;  %v352_v7 = vadd.f32 %v351_v3, %v311_v4 }
  0xba   : > { %v301_v8 = vpop.f32.mrf.mxu0  ;;  %v342_v9 = vpop.f32.mrf.mxu1 }
  0xbb   : > { %v373_v10 = vadd.f32 %v365_v6, %v352_v7  ;;  %v302_v11 = vadd.f32 %v507_v48, %v301_v8 }
  0xbd   : > { %381 = vst [vmem:[%s684_s20 + $0x28] sm:$0xff] %v373_v10  ;;  %v343_v13 = vadd.f32 %v342_v9, %v302_v11 }
  0xbe   : > { %v313_v14 = vpop.f32.mrf.mxu2 }
  0xbf   : > { %v354_v15 = vpop.f32.mrf.mxu3  ;;  %v314_v16 = vadd.f32 %v507_v48, %v313_v14  ;;  %v370_v17 = vadd.f32 %v362_v12, %v343_v13 }
  0xc1   : > { %378 = vst [vmem:[%s684_s20 + $0x10] sm:$0xff] %v370_v17  ;;  %v355_v19 = vadd.f32 %v354_v15, %v314_v16 }
  0xc2   : > { %v304_v20 = vpop.f32.mrf.mxu0  ;;  %v345_v21 = vpop.f32.mrf.mxu1 }
  0xc3   : > { %v374_v22 = vadd.f32 %v366_v18, %v355_v19  ;;  %v305_v23 = vadd.f32 %v507_v48, %v304_v20 }
  0xc5   : > { %382 = vst [vmem:[%s684_s20 + $0x30] sm:$0xff] %v374_v22  ;;  %v346_v25 = vadd.f32 %v345_v21, %v305_v23 }
  0xc6   : > { %v316_v26 = vpop.f32.mrf.mxu2 }
  0xc7   : > { %v357_v27 = vpop.f32.mrf.mxu3  ;;  %v317_v28 = vadd.f32 %v507_v48, %v316_v26  ;;  %v371_v29 = vadd.f32 %v363_v24, %v346_v25 }
  0xc9   : > { %379 = vst [vmem:[%s684_s20 + $0x18] sm:$0xff] %v371_v29  ;;  %v358_v31 = vadd.f32 %v357_v27, %v317_v28 }
  0xcb   : > { %v375_v32 = vadd.f32 %v367_v30, %v358_v31 }
  0xcd   : > { %383 = vst [vmem:[%s684_s20 + $0x38] sm:$0xff] %v375_v32 }
  0xce PF: > { %s14_s15 = sadd.s32 1, %s514_s15  }
  0xcf   : > { %p11_p4 = scmp.ge.s32.totalorder %s14_s15, 4  }
  0xd1   :  { %13 = sbr.rel (!%p11_p4) target bundleno = 1 (0x1), region = 69 }

// kernel: transformer_forward.19
= control target key start
LH: loop header
LB: loop body
LE: loop exit
PB: predicated region body
PF: predicated region fallthrough
CT: control target
= control target key end

     0   :  { %9 = vsyncpa [#allocation3], 0  ;;  %s887_s0 = inlined_call_operand.vmem [shape: f32[128,256], index: 0, kind: input, shape index: {}]   ;;  %s888_s1 = inlined_call_operand.vmem [shape: f32[256,128], index: 1, kind: input, shape index: {}]   ;;  %s889_s2 = inlined_call_operand.vmem [shape: f32[1,128], index: 2, kind: input, shape index: {}]   ;;  %s890_s3 = inlined_call_operand.vmem [shape: f32[128,128], index: 3, kind: input, shape index: {}]   ;;  %s891_s4 = inlined_call_operand.hbm [shape: f32[128,128], index: 4, kind: output, shape index: {}]  }
   0x1   :  { %11 = vsyncpa [#allocation3 + $0x1], 0  ;;  %s654_s15 = smov 0   ;;  %s656_s16 = smov 0  }
   0x2   :  { %s658_s17 = smov 0   ;;  %s660_s18 = smov 0  }
   0x3 LB: > { %s675_s19 = sadd.s32 4294967295, %s625_s18   ;;  %s472_s20 = sadd.s32 4294967294, %s625_s18   ;;  %s625_s18 = sphi %s660_s18, %s897_s18   ;;  %s621_s17 = sphi %s658_s17, %s896_s17   ;;  %s617_s16 = sphi %s656_s16, %s895_s16   ;;  %s613_s15 = sphi %s654_s15, %s894_s15  }
   0x4   : > { %s679_s21 = sadd.s32 1, %s625_s18   ;;  %s118_s22 = sadd.s32 1, %s621_s17 }
   0x5   : > { %s115_s23 = ssub.s32 %s625_s18, %s679_s21  ;;  %p128_p0 = scmp.ne.s32.totalorder %s621_s17, %s617_s16 }
   0x6   : > { %p116_p1 = scmp.eq.s32.totalorder %s115_s23, 0  ;;  %p129_p2 = scmp.eq.s32.totalorder %s675_s19, 1 }
   0x7   : > { %p134_p3 = scmp.ne.s32.totalorder %s617_s16, %s613_s15  ;;  %p135_p4 = scmp.eq.s32.totalorder %s472_s20, 1 }
   0x8   : > { %s690_s24 = scalar_select %p116_p1, %s621_s17, %s118_s22  }
   0x9   : > { %p692_p5 = por %p129_p2, %p128_p0  ;;  %p696_p6 = por %p135_p4, %p134_p3 }
   0xa   : > { %p475_p7 = scmp.ge.s32.totalorder %s625_s18, 1  ;;  %p178_p8 = scmp.lt.s32.totalorder %s625_s18, 3 }
   0xc   : > { %p179_p9 = pnand %p475_p7, %p178_p8 }
   0xd   : > { %s477_s22 = sshll.u32 (!%p179_p9), %s675_s19, 3  ;;  %s207_s7 = sand.u32 (!%p179_p9), 1, %s617_s16  }
   0xe   : > { %182 = sbr.rel (%p179_p9) target bundleno = 217 (0xd9), region = 36  ;;  %p211_p10 = scmp.lt.s32.totalorder (!%p179_p9), %s477_s22, 15 }
   0xf   : > { %s476_s11 = sshll.u32 (!%p179_p9), %s207_s7, 6  ;;  %s488_s12 = sshll.u32 (!%p179_p9), %s675_s19, 6 }
  0x10   : > { %s383_s27 = scalar_lea.sflag (!%p179_p9), [#allocation3], %s207_s7  ;;  %s583_s6 = scalar_lea.hbm (!%p179_p9), %s891_s4, 128 }
  0x13   : > { %v255_v0 = vld [vmem:[%s888_s1 + $0x78] sm:$0xff]  ;;  %v254_v1 = vld [vmem:[%s888_s1 + $0x70] sm:$0xff]  ;;  %v253_v4 = vld [vmem:[%s888_s1 + $0x68] sm:$0xff]  ;;  %s899_s22 = smov (!%p211_p10, %s477_s22), 15 }
  0x14   : > { %v271_v2 = vld [vmem:[%s888_s1 + $0xf8] sm:$0xff]  ;;  %489 = vmatpush.msra.mxu2 %v255_v0  ;;  %v270_v3 = vld [vmem:[%s888_s1 + $0xf0] sm:$0xff]  ;;  %276 = vmatpush.msra.mxu0 %v255_v0  ;;  %v269_v5 = vld [vmem:[%s888_s1 + $0xe8] sm:$0xff]  ;;  %s487_s30 = sshll.u32 %s899_s22, 4 }
  0x15   : > { %505 = vmatpush.msra.mxu3 %v271_v2  ;;  %317 = vmatpush.msra.mxu1 %v271_v2  ;;  %v252_v6 = vld [vmem:[%s888_s1 + $0x60] sm:$0xff]  ;;  %v251_v8 = vld [vmem:[%s888_s1 + $0x58] sm:$0xff]  ;;  %v250_v10 = vld [vmem:[%s888_s1 + $0x50] sm:$0xff]  ;;  %s799_s20 = scalar_lea.vmem %s887_s0, %s487_s30  ;;  %s481_s30 = sshll.u32 %s899_s22, 3 }
  0x16   : > { %490 = vmatpush.msra.mxu2 %v254_v1  ;;  %277 = vmatpush.msra.mxu0 %v254_v1  ;;  %v268_v7 = vld [vmem:[%s888_s1 + $0xe0] sm:$0xff]  ;;  %v267_v9 = vld [vmem:[%s888_s1 + $0xd8] sm:$0xff]  ;;  %v266_v11 = vld [vmem:[%s888_s1 + $0xd0] sm:$0xff]  ;;  %s831_s10 = scalar_lea.vmem %s890_s3, %s481_s30  ;;  %s837_s22 = scalar_lea.vmem [#allocation2], %s476_s11 }
  0x17   : > { %506 = vmatpush.msra.mxu3 %v270_v3  ;;  %318 = vmatpush.msra.mxu1 %v270_v3  ;;  %v249_v12 = vld [vmem:[%s888_s1 + $0x48] sm:$0xff]  ;;  %v248_v14 = vld [vmem:[%s888_s1 + $0x40] sm:$0xff]  ;;  %v247_v16 = vld [vmem:[%s888_s1 + $0x38] sm:$0xff]  ;;  %s395_s19 = sshll.u32 %s837_s22, 4  ;;  %s396_s19 = int_to_ptr.vmem [resolvable:$true] %s395_s19 }
  0x18   : > { %491 = vmatpush.msra.mxu2 %v253_v4  ;;  %278 = vmatpush.msra.mxu0 %v253_v4  ;;  %v265_v13 = vld [vmem:[%s888_s1 + $0xc8] sm:$0xff]  ;;  %v264_v15 = vld [vmem:[%s888_s1 + $0xc0] sm:$0xff]  ;;  %v263_v17 = vld [vmem:[%s888_s1 + $0xb8] sm:$0xff] }
  0x19   : > { %507 = vmatpush.msra.mxu3 %v269_v5  ;;  %319 = vmatpush.msra.mxu1 %v269_v5  ;;  %v246_v18 = vld [vmem:[%s888_s1 + $0x30] sm:$0xff]  ;;  %v245_v20 = vld [vmem:[%s888_s1 + $0x28] sm:$0xff]  ;;  %v244_v22 = vld [vmem:[%s888_s1 + $0x20] sm:$0xff] }
  0x1a   : > { %492 = vmatpush.msra.mxu2 %v252_v6  ;;  %279 = vmatpush.msra.mxu0 %v252_v6  ;;  %v262_v19 = vld [vmem:[%s888_s1 + $0xb0] sm:$0xff]  ;;  %v261_v21 = vld [vmem:[%s888_s1 + $0xa8] sm:$0xff]  ;;  %v260_v23 = vld [vmem:[%s888_s1 + $0xa0] sm:$0xff] }
  0x1b   : > { %508 = vmatpush.msra.mxu3 %v268_v7  ;;  %320 = vmatpush.msra.mxu1 %v268_v7  ;;  %v243_v24 = vld [vmem:[%s888_s1 + $0x18] sm:$0xff]  ;;  %v242_v26 = vld [vmem:[%s888_s1 + $0x10] sm:$0xff]  ;;  %v241_v28 = vld [vmem:[%s888_s1 + $0x8] sm:$0xff] }
  0x1c   : > { %493 = vmatpush.msra.mxu2 %v251_v8  ;;  %280 = vmatpush.msra.mxu0 %v251_v8  ;;  %v259_v25 = vld [vmem:[%s888_s1 + $0x98] sm:$0xff]  ;;  %v258_v27 = vld [vmem:[%s888_s1 + $0x90] sm:$0xff]  ;;  %v257_v29 = vld [vmem:[%s888_s1 + $0x88] sm:$0xff] }
  0x1d   : > { %509 = vmatpush.msra.mxu3 %v267_v9  ;;  %321 = vmatpush.msra.mxu1 %v267_v9  ;;  %v240_v30 = vld [vmem:[%s888_s1] sm:$0xff]  ;;  %v233_v33 = vld [vmem:[%s799_s20 + $0x48] sm:$0xff]  ;;  %v234_v36 = vld [vmem:[%s799_s20 + $0x50] sm:$0xff] }
  0x1e   : > { %494 = vmatpush.msra.mxu2 %v250_v10  ;;  %281 = vmatpush.msra.mxu0 %v250_v10  ;;  %v256_v31 = vld [vmem:[%s888_s1 + $0x80] sm:$0xff]  ;;  %v225_v35 = vld [vmem:[%s799_s20 + $0x8] sm:$0xff]  ;;  %v235_v37 = vld [vmem:[%s799_s20 + $0x58] sm:$0xff] }
  0x1f   : > { %510 = vmatpush.msra.mxu3 %v266_v11  ;;  %322 = vmatpush.msra.mxu1 %v266_v11  ;;  %v232_v32 = vld [vmem:[%s799_s20 + $0x40] sm:$0xff]  ;;  %v226_v38 = vld [vmem:[%s799_s20 + $0x10] sm:$0xff]  ;;  %v227_v39 = vld [vmem:[%s799_s20 + $0x18] sm:$0xff] }
  0x20   : > { %495 = vmatpush.msra.mxu2 %v249_v12  ;;  %282 = vmatpush.msra.mxu0 %v249_v12  ;;  %v224_v34 = vld [vmem:[%s799_s20] sm:$0xff]  ;;  %v237_v41 = vld [vmem:[%s799_s20 + $0x68] sm:$0xff]  ;;  %v238_v44 = vld [vmem:[%s799_s20 + $0x70] sm:$0xff] }
  0x21   : > { %511 = vmatpush.msra.mxu3 %v265_v13  ;;  %323 = vmatpush.msra.mxu1 %v265_v13  ;;  %v236_v40 = vld [vmem:[%s799_s20 + $0x60] sm:$0xff]  ;;  %v229_v43 = vld [vmem:[%s799_s20 + $0x28] sm:$0xff]  ;;  %v239_v45 = vld [vmem:[%s799_s20 + $0x78] sm:$0xff] }
  0x22   : > { %496 = vmatpush.msra.mxu2 %v248_v14  ;;  %283 = vmatpush.msra.mxu0 %v248_v14  ;;  %v228_v42 = vld [vmem:[%s799_s20 + $0x20] sm:$0xff]  ;;  %v230_v46 = vld [vmem:[%s799_s20 + $0x30] sm:$0xff]  ;;  %v231_v47 = vld [vmem:[%s799_s20 + $0x38] sm:$0xff]  ;;  %s394_s20 = scalar_lea.hbm %s891_s4, %s488_s12 }
  0x23   : > { %512 = vmatpush.msra.mxu3 %v264_v15  ;;  %324 = vmatpush.msra.mxu1 %v264_v15  ;;  %v562_v48 = vld [vmem:[%s889_s2] ss:$0 sm:$0xff]  ;;  %v359_v0 = vld [vmem:[%s831_s10 + $0x8] sm:$0xff]  ;;  %v360_v12 = vld [vmem:[%s831_s10 + $0x10] sm:$0xff]  ;;  %s397_s23 = sshll.u32 %s394_s20, 4  ;;  %s398_s23 = int_to_ptr.hbm [resolvable:$true] %s397_s23 }
  0x24   : > { %497 = vmatpush.msra.mxu2 %v247_v16  ;;  %284 = vmatpush.msra.mxu0 %v247_v16  ;;  %v358_v52 = vld [vmem:[%s831_s10] sm:$0xff]  ;;  %v363_v6 = vld [vmem:[%s831_s10 + $0x28] sm:$0xff]  ;;  %s577_s28 = sshra.s32 %s398_s23, 4  ;;  %s578_s28 = int_to_ptr.hbm [resolvable:$true] %s577_s28 }
  0x25   : > { %513 = vmatpush.msra.mxu3 %v263_v17  ;;  %325 = vmatpush.msra.mxu1 %v263_v17  ;;  %v362_v58 = vld [vmem:[%s831_s10 + $0x20] sm:$0xff]  ;;  %s579_s29 = scalar_lea.hbm %s578_s28, 64  ;;  %p584_p0 = scmp.lt.s32.totalorder %s578_s28, %s891_s4 }
  0x26   : > { %498 = vmatpush.msra.mxu2 %v246_v18  ;;  %285 = vmatpush.msra.mxu0 %v246_v18  ;;  %v364_v18 = vld [vmem:[%s831_s10 + $0x30] sm:$0xff]  ;;  %p580_p11 = scmp.ne.s32.totalorder %s578_s28, %s579_s29  ;;  %p585_p1 = scmp.lt.s32.totalorder %s583_s6, %s579_s29 }
  0x27   : > { %514 = vmatpush.msra.mxu3 %v262_v19  ;;  %326 = vmatpush.msra.mxu1 %v262_v19 }
  0x28   : > { %499 = vmatpush.msra.mxu2 %v245_v20  ;;  %286 = vmatpush.msra.mxu0 %v245_v20  ;;  %p581_p12 = pnand %p580_p11, %p692_p5  ;;  %p586_p2 = por %p585_p1, %p584_p0 }
  0x29   : > { %515 = vmatpush.msra.mxu3 %v261_v21  ;;  %327 = vmatpush.msra.mxu1 %v261_v21 }
  0x2a   : > { %500 = vmatpush.msra.mxu2 %v244_v22  ;;  %287 = vmatpush.msra.mxu0 %v244_v22  ;;  %p582_p13 = pneg %p581_p12 }
  0x2b   : > { %516 = vmatpush.msra.mxu3 %v260_v23  ;;  %328 = vmatpush.msra.mxu1 %v260_v23 }
  0x2c   : > { %501 = vmatpush.msra.mxu2 %v243_v24  ;;  %288 = vmatpush.msra.mxu0 %v243_v24  ;;  %v361_v24 = vld [vmem:[%s831_s10 + $0x18] sm:$0xff]  ;;  %p587_p3 = pnand %p586_p2, %p582_p13 }
  0x2d   : > { %517 = vmatpush.msra.mxu3 %v259_v25  ;;  %329 = vmatpush.msra.mxu1 %v259_v25 }
  0x2e   : > { %502 = vmatpush.msra.mxu2 %v242_v26  ;;  %289 = vmatpush.msra.mxu0 %v242_v26 }
  0x2f   : > { %518 = vmatpush.msra.mxu3 %v258_v27  ;;  %330 = vmatpush.msra.mxu1 %v258_v27 }
  0x30   : > { %503 = vmatpush.msra.mxu2 %v241_v28  ;;  %290 = vmatpush.msra.mxu0 %v241_v28 }
  0x31   : > { %519 = vmatpush.msra.mxu3 %v257_v29  ;;  %331 = vmatpush.msra.mxu1 %v257_v29 }
  0x32   : > { %504 = vmatpush.msra.mxu2 %v240_v30  ;;  %291 = vmatpush.msra.mxu0 %v240_v30  ;;  %v365_v30 = vld [vmem:[%s831_s10 + $0x38] sm:$0xff] }
  0x33   : > { %520 = vmatpush.msra.mxu3 %v256_v31  ;;  %304 = vmatmul.f32.vlgmr.msra.gmra.mxu2 %v232_v32 }
  0x34   : > { %345 = vmatmul.f32.vlgmr.msra.gmra.mxu3 %v233_v33  ;;  %332 = vmatpush.msra.mxu1 %v256_v31 }
  0x35   : > { %292 = vmatmul.f32.vlgmr.msra.gmra.mxu0 %v224_v34  ;;  %333 = vmatmul.f32.vlgmr.msra.gmra.mxu1 %v225_v35 }
  0x3b   : > { %307 = vmatmul.f32.gmra.mxu2 %v234_v36 }
  0x3c   : > { %348 = vmatmul.f32.gmra.mxu3 %v235_v37 }
  0x3d   : > { %295 = vmatmul.f32.gmra.mxu0 %v226_v38  ;;  %336 = vmatmul.f32.gmra.mxu1 %v227_v39 }
  0x43   : > { %310 = vmatmul.f32.gmra.mxu2 %v236_v40 }
  0x44   : > { %351 = vmatmul.f32.gmra.mxu3 %v237_v41 }
  0x45   : > { %298 = vmatmul.f32.gmra.mxu0 %v228_v42  ;;  %339 = vmatmul.f32.gmra.mxu1 %v229_v43 }
  0x4b   : > { %313 = vmatmul.f32.gmra.mxu2 %v238_v44 }
  0x4c   : > { %354 = vmatmul.f32.gmra.mxu3 %v239_v45 }
  0x4d   : > { %301 = vmatmul.f32.gmra.mxu0 %v230_v46  ;;  %342 = vmatmul.f32.gmra.mxu1 %v231_v47 }
  0xb2   : > { %v293_v49 = vpop.f32.mrf.mxu0  ;;  %v334_v50 = vpop.f32.mrf.mxu1 }
  0xb3   : > { %v294_v51 = vadd.f32 %v562_v48, %v293_v49 }
  0xb5   : > { %v335_v53 = vadd.f32 %v334_v50, %v294_v51 }
  0xb6   : > { %v305_v54 = vpop.f32.mrf.mxu2 }
  0xb7   : > { %v346_v55 = vpop.f32.mrf.mxu3  ;;  %v306_v56 = vadd.f32 %v562_v48, %v305_v54  ;;  %v366_v57 = vadd.f32 %v358_v52, %v335_v53 }
  0xb9   : > { %374 = vst [vmem:[%s837_s22] sm:$0xff] %v366_v57  ;;  %v347_v59 = vadd.f32 %v346_v55, %v306_v56 }
  0xba   : > { %v296_v60 = vpop.f32.mrf.mxu0  ;;  %v337_v61 = vpop.f32.mrf.mxu1 }
  0xbb   : > { %v370_v62 = vadd.f32 %v362_v58, %v347_v59  ;;  %v297_v63 = vadd.f32 %v562_v48, %v296_v60 }
  0xbd   : > { %378 = vst [vmem:[%s837_s22 + $0x20] sm:$0xff] %v370_v62  ;;  %v338_v1 = vadd.f32 %v337_v61, %v297_v63 }
  0xbe   : > { %v308_v2 = vpop.f32.mrf.mxu2 }
  0xbf   : > { %v349_v3 = vpop.f32.mrf.mxu3  ;;  %v309_v4 = vadd.f32 %v562_v48, %v308_v2  ;;  %v367_v5 = vadd.f32 %v359_v0, %v338_v1 }
  0xc1   : > { %375 = vst [vmem:[%s837_s22 + $0x8] sm:$0xff] %v367_v5  ;;  %v350_v7 = vadd.f32 %v349_v3, %v309_v4 }
  0xc2   : > { %v299_v8 = vpop.f32.mrf.mxu0  ;;  %v340_v9 = vpop.f32.mrf.mxu1 }
  0xc3   : > { %v371_v10 = vadd.f32 %v363_v6, %v350_v7  ;;  %v300_v11 = vadd.f32 %v562_v48, %v299_v8 }
  0xc5   : > { %379 = vst [vmem:[%s837_s22 + $0x28] sm:$0xff] %v371_v10  ;;  %v341_v13 = vadd.f32 %v340_v9, %v300_v11 }
  0xc6   : > { %v311_v14 = vpop.f32.mrf.mxu2 }
  0xc7   : > { %v352_v15 = vpop.f32.mrf.mxu3  ;;  %v312_v16 = vadd.f32 %v562_v48, %v311_v14  ;;  %v368_v17 = vadd.f32 %v360_v12, %v341_v13 }
  0xc9   : > { %376 = vst [vmem:[%s837_s22 + $0x10] sm:$0xff] %v368_v17  ;;  %v353_v19 = vadd.f32 %v352_v15, %v312_v16 }
  0xca   : > { %v302_v20 = vpop.f32.mrf.mxu0  ;;  %v343_v21 = vpop.f32.mrf.mxu1 }
  0xcb   : > { %v372_v22 = vadd.f32 %v364_v18, %v353_v19  ;;  %v303_v23 = vadd.f32 %v562_v48, %v302_v20 }
  0xcd   : > { %380 = vst [vmem:[%s837_s22 + $0x30] sm:$0xff] %v372_v22  ;;  %v344_v25 = vadd.f32 %v343_v21, %v303_v23 }
  0xce   : > { %v314_v26 = vpop.f32.mrf.mxu2 }
  0xcf   : > { %v355_v27 = vpop.f32.mrf.mxu3  ;;  %v315_v28 = vadd.f32 %v562_v48, %v314_v26  ;;  %v369_v29 = vadd.f32 %v361_v24, %v344_v25 }
  0xd1   : > { %377 = vst [vmem:[%s837_s22 + $0x18] sm:$0xff] %v369_v29  ;;  %v356_v31 = vadd.f32 %v355_v27, %v315_v28 }
  0xd3   : > { %v373_v32 = vadd.f32 %v365_v30, %v356_v31 }
  0xd5   : > { %381 = vst [vmem:[%s837_s22 + $0x38] sm:$0xff] %v373_v32 }
  0xd6   : > { %590 = shalt.err (!%p587_p3)
}
  0xd7   : > { %s627_s7 = smov 128   ;;  %s628_s10 = smov 8  }
  0xd8   : > { %521 = dma.vmem_to_hbm [thread:$0]  (%p692_p5), %s396_s19, 1024, %s398_s23, %s383_s27, %s627_s7, %s627_s7, %s628_s10  }
  0xd9 PF: > { %p527_p4 = scmp.ge.s32.totalorder %s625_s18, 2  ;;  %s412_s11 = sand.u32 1, %s613_s15  }
  0xda   : > { %s413_s22 = scalar_lea.sflag [#allocation3], %s412_s11 }
  0xdb   : > { %p524_p7 = pnand %p527_p4, %p696_p6 }
  0xdd   : > { %p525_p8 = pneg %p524_p7 }
  0xdf   : > { %608 = dma.done.wait (%p525_p8), %s413_s22, 1024  }
  0xe0   : > { %610 = vsyncadd (%p525_p8), %s413_s22, 4294966272  ;;  %p14_p9 = scmp.ge.s32.totalorder %s679_s21, 4   ;;  %s894_s15 = smov %s617_s16 }
  0xe1   : > { %s895_s16 = smov %s621_s17  ;;  %s896_s17 = smov %s690_s24 }
  0xe2   : > { %s897_s18 = smov %s679_s21  ;;  %16 = sbr.rel (!%p14_p9) target bundleno = 3 (0x3), region = 74 }
  0xe7   :  { %419 = vsyncpa [#allocation3], 1 }
  0xe8   :  { %421 = vsyncpa [#allocation3 + $0x1], 1 }

// kernel: transformer_forward.13
= control target key start
LH: loop header
LB: loop body
LE: loop exit
PB: predicated region body
PF: predicated region fallthrough
CT: control target
= control target key end

     0   :  { %s912_s18 = smov 0   ;;  %s1309_s0 = inlined_call_operand.vmem [shape: f32[128,128], index: 0, kind: input, shape index: {}]   ;;  %s1310_s1 = inlined_call_operand.vmem [shape: f32[1,128], index: 1, kind: input, shape index: {}]   ;;  %s1311_s2 = inlined_call_operand.vmem [shape: f32[1,128], index: 2, kind: input, shape index: {}]   ;;  %s1312_s3 = inlined_call_operand.vmem [shape: f32[128,256], index: 3, kind: input, shape index: {}]   ;;  %s1313_s4 = inlined_call_operand.vmem [shape: f32[1,256], index: 4, kind: input, shape index: {}]   ;;  %s1314_s5 = inlined_call_operand.vmem [shape: f32[128,256], index: 5, kind: output, shape index: {}]  }
   0x1 LB: > { %s767_s19 = sadd.s32 4294967295, %s879_s18   ;;  %p771_p0 = scmp.ge.s32.totalorder %s879_s18, 1  ;;  %s879_s18 = sphi %s912_s18, %s15_s18  }
   0x2   : > { %p188_p1 = scmp.lt.s32.totalorder %s879_s18, 3 }
   0x4   : > { %p189_p2 = pnand %p771_p0, %p188_p1 }
   0x5   : > { %s772_s20 = sshll.u32 (!%p189_p2), %s767_s19, 3 }
   0x6   : > { %192 = sbr.rel (%p189_p2) target bundleno = 470 (0x1d6), region = 40  ;;  %p218_p3 = scmp.lt.s32.totalorder (!%p189_p2), %s772_s20, 15 }
   0xb   : > { %s1322_s20 = smov (!%p218_p3, %s772_s20), 15  ;;  %v881_v8 = vmov 128.0   ;;  %v459_v17 = vld [vmem:[%s1312_s3 + $0xf0] sm:$0xff]  ;;  %v460_v18 = vld [vmem:[%s1312_s3 + $0xf8] sm:$0xff]  ;;  %v457_v19 = vld [vmem:[%s1312_s3 + $0xe0] sm:$0xff] }
   0xc   : > { %s773_s21 = sshll.u32 %s1322_s20, 3  ;;  %823 = vrcp.f32 %v881_v8  ;;  %780 = vmatpush.msra.mxu2 %v459_v17  ;;  %796 = vmatpush.msra.mxu3 %v460_v18  ;;  %v458_v22 = vld [vmem:[%s1312_s3 + $0xe8] sm:$0xff]  ;;  %v455_v51 = vld [vmem:[%s1312_s3 + $0xd0] sm:$0xff]  ;;  %v456_v52 = vld [vmem:[%s1312_s3 + $0xd8] sm:$0xff]  ;;  %s779_s26 = sshll.u32 %s1322_s20, 4 }
   0xd   : > { %s221_s24 = scalar_lea.vmem %s1309_s0, %s773_s21  ;;  %467 = vmatpush.msra.mxu0 %v459_v17  ;;  %508 = vmatpush.msra.mxu1 %v460_v18  ;;  %v453_v53 = vld [vmem:[%s1312_s3 + $0xc0] sm:$0xff]  ;;  %v454_v54 = vld [vmem:[%s1312_s3 + $0xc8] sm:$0xff]  ;;  %v451_v55 = vld [vmem:[%s1312_s3 + $0xb0] sm:$0xff]  ;;  %s1238_s28 = scalar_lea.vmem %s1314_s5, %s779_s26 }
   0xe   : > { %v236_v0 = vld [vmem:[%s221_s24 + $0x30] sm:$0xff]  ;;  %v235_v1 = vld [vmem:[%s221_s24 + $0x28] sm:$0xff]  ;;  %v234_v2 = vld [vmem:[%s221_s24 + $0x20] sm:$0xff]  ;;  %781 = vmatpush.msra.mxu2 %v457_v19  ;;  %797 = vmatpush.msra.mxu3 %v458_v22 }
   0xf   : > { %250 = vadd.xlane.f32.xlu2 %v236_v0  ;;  %248 = vadd.xlane.f32.xlu1 %v235_v1  ;;  %v232_v3 = vld [vmem:[%s221_s24 + $0x10] sm:$0xff]  ;;  %v231_v4 = vld [vmem:[%s221_s24 + $0x8] sm:$0xff]  ;;  %v230_v5 = vld [vmem:[%s221_s24] sm:$0xff] }
  0x10   : > { %246 = vadd.xlane.f32.xlu0 %v234_v2  ;;  %v233_v6 = vld [vmem:[%s221_s24 + $0x18] sm:$0xff]  ;;  %468 = vmatpush.msra.mxu0 %v457_v19  ;;  %v449_v57 = vld [vmem:[%s1312_s3 + $0xa0] sm:$0xff]  ;;  %v450_v58 = vld [vmem:[%s1312_s3 + $0xa8] sm:$0xff] }
  0x11   : > { %v237_v7 = vld [vmem:[%s221_s24 + $0x38] sm:$0xff]  ;;  %509 = vmatpush.msra.mxu1 %v458_v22  ;;  %782 = vmatpush.msra.mxu2 %v455_v51  ;;  %v447_v59 = vld [vmem:[%s1312_s3 + $0x90] sm:$0xff]  ;;  %v445_v61 = vld [vmem:[%s1312_s3 + $0x80] sm:$0xff] }
  0x12   : > { %v824_v9 = vpop.eup %823  ;;  %798 = vmatpush.msra.mxu3 %v456_v52  ;;  %469 = vmatpush.msra.mxu0 %v455_v51  ;;  %v452_v56 = vld [vmem:[%s1312_s3 + $0xb8] sm:$0xff]  ;;  %v446_v62 = vld [vmem:[%s1312_s3 + $0x88] sm:$0xff]  ;;  %v443_v63 = vld [vmem:[%s1312_s3 + $0x70] sm:$0xff] }
  0x13   : > { %v255_v10 = vmul.f32 128.0, %v824_v9  ;;  %vm259_vm0 = vweird.f32 %v824_v9  ;;  %510 = vmatpush.msra.mxu1 %v456_v52  ;;  %783 = vmatpush.msra.mxu2 %v453_v53  ;;  %v448_v60 = vld [vmem:[%s1312_s3 + $0x98] sm:$0xff] }
  0x14   : > { %799 = vmatpush.msra.mxu3 %v454_v54  ;;  %470 = vmatpush.msra.mxu0 %v453_v53  ;;  %v436_v8 = vld [vmem:[%s1312_s3 + $0x38] sm:$0xff] }
  0x15   : > { %v256_v11 = vsub.f32 1.0, %v255_v10  ;;  %511 = vmatpush.msra.mxu1 %v454_v54  ;;  %784 = vmatpush.msra.mxu2 %v451_v55  ;;  %v434_v10 = vld [vmem:[%s1312_s3 + $0x28] sm:$0xff] }
  0x16   : > { %800 = vmatpush.msra.mxu3 %v452_v56  ;;  %471 = vmatpush.msra.mxu0 %v451_v55 }
  0x17   : > { %242 = vadd.xlane.f32.xlu2 %v232_v3  ;;  %240 = vadd.xlane.f32.xlu1 %v231_v4  ;;  %v257_v12 = vmul.f32 %v824_v9, %v256_v11  ;;  %v431_v11 = vld [vmem:[%s1312_s3 + $0x10] sm:$0xff] }
  0x18   : > { %238 = vadd.xlane.f32.xlu0 %v230_v5  ;;  %512 = vmatpush.msra.mxu1 %v452_v56 }
  0x19   : > { %v258_v13 = vadd.f32 %v824_v9, %v257_v12  ;;  %785 = vmatpush.msra.mxu2 %v449_v57  ;;  %801 = vmatpush.msra.mxu3 %v450_v58  ;;  %v432_v12 = vld [vmem:[%s1312_s3 + $0x18] sm:$0xff] }
  0x1a   : > { %472 = vmatpush.msra.mxu0 %v449_v57  ;;  %513 = vmatpush.msra.mxu1 %v450_v58 }
  0x1b   : > { %v926_v14 = vsel %vm259_vm0, %v824_v9, %v258_v13  ;;  %786 = vmatpush.msra.mxu2 %v447_v59  ;;  %802 = vmatpush.msra.mxu3 %v448_v60  ;;  %v433_v9 = vld [vmem:[%s1312_s3 + $0x20] sm:$0xff] }
  0x1c   : > { %473 = vmatpush.msra.mxu0 %v447_v59  ;;  %514 = vmatpush.msra.mxu1 %v448_v60  ;;  %v429_v13 = vld [vmem:[%s1312_s3] sm:$0xff] }
  0x1d   : > { %787 = vmatpush.msra.mxu2 %v445_v61  ;;  %803 = vmatpush.msra.mxu3 %v446_v62 }
  0x1e   : > { %474 = vmatpush.msra.mxu0 %v445_v61  ;;  %515 = vmatpush.msra.mxu1 %v446_v62 }
  0x1f   : > { %244 = vadd.xlane.f32.xlu1 %v233_v6  ;;  %788 = vmatpush.msra.mxu2 %v443_v63 }
  0x20   : > { %252 = vadd.xlane.f32.xlu0 %v237_v7  ;;  %475 = vmatpush.msra.mxu0 %v443_v63 }
  0x82   : > { %v251_v15 = vpop.xlane.xlu2 %250  ;;  %v249_v16 = vpop.xlane.xlu1 %248 }
  0x83   : > { %v266_v20 = vmul.f32 %v926_v14, %v249_v16  ;;  %v247_v21 = vpop.xlane.xlu0 %246  ;;  %v267_v36 = vmul.f32 %v926_v14, %v251_v15  ;;  %v430_v15 = vld [vmem:[%s1312_s3 + $0x8] sm:$0xff] }
  0x84   : > { %v265_v23 = vmul.f32 %v926_v14, %v247_v21 }
  0x85   : > { %v942_v24 = vsub.f32 %v235_v1, %v266_v20  ;;  %v966_v41 = vsub.f32 %v236_v0, %v267_v36  ;;  %v444_v0 = vld [vmem:[%s1312_s3 + $0x78] sm:$0xff]  ;;  %v441_v1 = vld [vmem:[%s1312_s3 + $0x60] sm:$0xff] }
  0x86   : > { %v944_v25 = vsub.f32 %v234_v2, %v265_v23  ;;  %804 = vmatpush.msra.mxu3 %v444_v0  ;;  %v442_v2 = vld [vmem:[%s1312_s3 + $0x68] sm:$0xff]  ;;  %516 = vmatpush.msra.mxu1 %v444_v0  ;;  %v1105_v0 = vld [vmem:[%s1310_s1] ss:$0 sm:$0xff] }
  0x87   : > { %v282_v26 = vmul.f32 %v942_v24, %v942_v24  ;;  %v283_v46 = vmul.f32 %v966_v41, %v966_v41  ;;  %789 = vmatpush.msra.mxu2 %v441_v1  ;;  %476 = vmatpush.msra.mxu0 %v441_v1 }
  0x88   : > { %v281_v27 = vmul.f32 %v944_v25, %v944_v25  ;;  %805 = vmatpush.msra.mxu3 %v442_v2  ;;  %517 = vmatpush.msra.mxu1 %v442_v2 }
  0x89   : > { %295 = vadd.xlane.f32.xlu1 %v282_v26 }
  0x8a   : > { %293 = vadd.xlane.f32.xlu2 %v281_v27  ;;  %v243_v28 = vpop.xlane.xlu2 %242  ;;  %v241_v29 = vpop.xlane.xlu1 %240 }
  0x8b   : > { %v263_v30 = vmul.f32 %v926_v14, %v243_v28  ;;  %v262_v31 = vmul.f32 %v926_v14, %v241_v29  ;;  %v239_v32 = vpop.xlane.xlu0 %238 }
  0x8c   : > { %v261_v33 = vmul.f32 %v926_v14, %v239_v32 }
  0x8d   : > { %v953_v34 = vsub.f32 %v232_v3, %v263_v30  ;;  %v955_v35 = vsub.f32 %v231_v4, %v262_v31  ;;  %v439_v3 = vld [vmem:[%s1312_s3 + $0x50] sm:$0xff]  ;;  %v440_v4 = vld [vmem:[%s1312_s3 + $0x58] sm:$0xff] }
  0x8e   : > { %v958_v37 = vsub.f32 %v230_v5, %v261_v33  ;;  %790 = vmatpush.msra.mxu2 %v439_v3  ;;  %806 = vmatpush.msra.mxu3 %v440_v4  ;;  %v437_v5 = vld [vmem:[%s1312_s3 + $0x40] sm:$0xff] }
  0x8f   : > { %v279_v38 = vmul.f32 %v953_v34, %v953_v34  ;;  %v278_v39 = vmul.f32 %v955_v35, %v955_v35  ;;  %477 = vmatpush.msra.mxu0 %v439_v3  ;;  %518 = vmatpush.msra.mxu1 %v440_v4 }
  0x90   : > { %v277_v40 = vmul.f32 %v958_v37, %v958_v37  ;;  %791 = vmatpush.msra.mxu2 %v437_v5 }
  0x91   : > { %289 = vadd.xlane.f32.xlu1 %v279_v38  ;;  %478 = vmatpush.msra.mxu0 %v437_v5 }
  0x92   : > { %287 = vadd.xlane.f32.xlu2 %v278_v39  ;;  %285 = vadd.xlane.f32.xlu0 %v277_v40  ;;  %v245_v43 = vpop.xlane.xlu1 %244 }
  0x93   : > { %v253_v42 = vpop.xlane.xlu0 %252  ;;  %v264_v47 = vmul.f32 %v926_v14, %v245_v43 }
  0x94   : > { %v268_v44 = vmul.f32 %v926_v14, %v253_v42 }
  0x95   : > { %v976_v49 = vsub.f32 %v233_v6, %v264_v47  ;;  %v438_v6 = vld [vmem:[%s1312_s3 + $0x48] sm:$0xff] }
  0x96   : > { %v969_v45 = vsub.f32 %v237_v7, %v268_v44  ;;  %807 = vmatpush.msra.mxu3 %v438_v6  ;;  %v435_v7 = vld [vmem:[%s1312_s3 + $0x30] sm:$0xff]  ;;  %519 = vmatpush.msra.mxu1 %v438_v6 }
  0x97   : > { %v280_v50 = vmul.f32 %v976_v49, %v976_v49  ;;  %792 = vmatpush.msra.mxu2 %v435_v7  ;;  %479 = vmatpush.msra.mxu0 %v435_v7 }
  0x98   : > { %v284_v48 = vmul.f32 %v969_v45, %v969_v45  ;;  %808 = vmatpush.msra.mxu3 %v436_v8  ;;  %520 = vmatpush.msra.mxu1 %v436_v8  ;;  %v1117_v8 = vld [vmem:[%s1311_s2] ss:$0 sm:$0xff] }
  0x99   : > { %793 = vmatpush.msra.mxu2 %v433_v9  ;;  %480 = vmatpush.msra.mxu0 %v433_v9 }
  0x9a   : > { %297 = vadd.xlane.f32.xlu0 %v283_v46  ;;  %299 = vadd.xlane.f32.xlu2 %v284_v48 }
  0x9b   : > { %809 = vmatpush.msra.mxu3 %v434_v10  ;;  %521 = vmatpush.msra.mxu1 %v434_v10 }
  0x9c   : > { %794 = vmatpush.msra.mxu2 %v431_v11  ;;  %481 = vmatpush.msra.mxu0 %v431_v11 }
  0x9d   : > { %810 = vmatpush.msra.mxu3 %v432_v12  ;;  %522 = vmatpush.msra.mxu1 %v432_v12 }
  0x9e   : > { %795 = vmatpush.msra.mxu2 %v429_v13  ;;  %482 = vmatpush.msra.mxu0 %v429_v13 }
  0x9f   : > { %811 = vmatpush.msra.mxu3 %v430_v15  ;;  %523 = vmatpush.msra.mxu1 %v430_v15 }
  0xa2   : > { %291 = vadd.xlane.f32.xlu0 %v280_v50 }
  0xfc   : > { %v296_v16 = vpop.xlane.xlu1 %295 }
  0xfd   : > { %v294_v17 = vpop.xlane.xlu2 %293  ;;  %v306_v18 = vmul.f32 %v296_v16, %v926_v14 }
  0xfe   : > { %v305_v19 = vmul.f32 %v294_v17, %v926_v14 }
  0xff   : > { %v314_v20 = vadd.f32 1e-05, %v306_v18 }
 0x100   : > { %v313_v21 = vadd.f32 1e-05, %v305_v19 }
 0x101   : > { %825 = vrsqrt.f32 %v314_v20  ;;  %vm373_vm3 = vweird.f32 %v314_v20 }
 0x102   : > { %827 = vrsqrt.f32 %v313_v21  ;;  %vm363_vm1 = vweird.f32 %v313_v21 }
 0x104   : > { %v290_v22 = vpop.xlane.xlu1 %289 }
 0x105   : > { %v288_v23 = vpop.xlane.xlu2 %287  ;;  %v303_v26 = vmul.f32 %v290_v22, %v926_v14  ;;  %v286_v27 = vpop.xlane.xlu0 %285 }
 0x106   : > { %v302_v28 = vmul.f32 %v288_v23, %v926_v14  ;;  %v301_v29 = vmul.f32 %v286_v27, %v926_v14 }
 0x107   : > { %v1069_v30 = vpop.eup %825  ;;  %v1071_v31 = vadd.f32 1e-05, %v303_v26 }
 0x108   : > { %v828_v32 = vpop.eup %827  ;;  %v368_v33 = vmul.f32 %v1069_v30, %v314_v20  ;;  %v1074_v36 = vadd.f32 1e-05, %v302_v28  ;;  %v1076_v38 = vadd.f32 1e-05, %v301_v29  ;;  %vm374_vm4 = vweird.f32 %v1069_v30 }
 0x109   : > { %v358_v39 = vmul.f32 %v828_v32, %v313_v21  ;;  %829 = vrsqrt.f32 %v1071_v31  ;;  %vm364_vm2 = vweird.f32 %v828_v32  ;;  %vm1108_vm6 = vmor %vm373_vm3, %vm374_vm4  ;;  %vm343_vm13 = vweird.f32 %v1071_v31 }
 0x10a   : > { %v369_v40 = vmul.f32 %v1069_v30, %v368_v33  ;;  %831 = vrsqrt.f32 %v1074_v36  ;;  %vm365_vm5 = vmor %vm363_vm1, %vm364_vm2  ;;  %vm333_vm7 = vweird.f32 %v1074_v36  ;;  %vm323_vm8 = vweird.f32 %v1076_v38 }
 0x10b   : > { %v359_v42 = vmul.f32 %v828_v32, %v358_v39  ;;  %833 = vrsqrt.f32 %v1076_v38 }
 0x10c   : > { %v370_v43 = vmul.f32 0.5, %v369_v40 }
 0x10d   : > { %v360_v44 = vmul.f32 0.5, %v359_v42  ;;  %v300_v46 = vpop.xlane.xlu2 %299  ;;  %v298_v47 = vpop.xlane.xlu0 %297 }
 0x10e   : > { %v371_v48 = vsub.f32 1.5, %v370_v43  ;;  %v308_v50 = vmul.f32 %v300_v46, %v926_v14  ;;  %v307_v51 = vmul.f32 %v298_v47, %v926_v14 }
 0x10f   : > { %v1084_v52 = vpop.eup %829  ;;  %v361_v53 = vsub.f32 1.5, %v360_v44 }
 0x110   : > { %v1086_v54 = vpop.eup %831  ;;  %v1088_v55 = vadd.f32 1e-05, %v308_v50  ;;  %v338_v59 = vmul.f32 %v1084_v52, %v1071_v31  ;;  %v1094_v60 = vadd.f32 1e-05, %v307_v51  ;;  %v372_v61 = vmul.f32 %v1069_v30, %v371_v48 }
 0x111   : > { %v834_v56 = vpop.eup %833  ;;  %v362_v57 = vmul.f32 %v828_v32, %v361_v53  ;;  %v328_v58 = vmul.f32 %v1086_v54, %v1074_v36  ;;  %vm334_vm9 = vweird.f32 %v1086_v54  ;;  %vm344_vm14 = vweird.f32 %v1084_v52 }
 0x112   : > { %v318_v62 = vmul.f32 %v834_v56, %v1076_v38  ;;  %835 = vrsqrt.f32 %v1088_v55  ;;  %v339_v5 = vmul.f32 %v1084_v52, %v338_v59  ;;  %v376_v11 = vsel %vm1108_vm6, %v1069_v30, %v372_v61  ;;  %vm1145_vm12 = vmor %vm333_vm7, %vm334_vm9 }
 0x113   : > { %v329_v63 = vmul.f32 %v1086_v54, %v328_v58  ;;  %837 = vrsqrt.f32 %v1094_v60  ;;  %v366_v2 = vsel %vm365_vm5, %v828_v32, %v362_v57  ;;  %vm324_vm10 = vweird.f32 %v834_v56  ;;  %vm1164_vm2 = vmor %vm343_vm13, %vm344_vm14 }
 0x114   : > { %v319_v1 = vmul.f32 %v834_v56, %v318_v62  ;;  %v401_v7 = vmul.f32 %v366_v2, %v944_v25  ;;  %v340_v17 = vmul.f32 0.5, %v339_v5  ;;  %v402_v20 = vmul.f32 %v376_v11, %v942_v24  ;;  %vm325_vm11 = vmor %vm323_vm8, %vm324_vm10 }
 0x115   : > { %v330_v4 = vmul.f32 0.5, %v329_v63  ;;  %v292_v6 = vpop.xlane.xlu0 %291  ;;  %vm393_vm15 = vweird.f32 %v1088_v55  ;;  %vm383_vm0 = vweird.f32 %v1094_v60 }
 0x116   : > { %v320_v9 = vmul.f32 0.5, %v319_v1  ;;  %v304_v10 = vmul.f32 %v292_v6, %v926_v14  ;;  %v413_v13 = vmul.f32 %v1105_v0, %v401_v7  ;;  %v414_v32 = vmul.f32 %v1105_v0, %v402_v20  ;;  %v461_v7 = vld [vmem:[%s1313_s4] sm:$0x3] }
 0x117   : > { %v331_v12 = vsub.f32 1.5, %v330_v4  ;;  %v341_v33 = vsub.f32 1.5, %v340_v17 }
 0x118   : > { %v1126_v25 = vpop.eup %835  ;;  %v321_v15 = vsub.f32 1.5, %v320_v9  ;;  %v1129_v16 = vadd.f32 1e-05, %v304_v10  ;;  %v425_v19 = vadd.f32 %v1117_v8, %v413_v13  ;;  %v426_v46 = vadd.f32 %v1117_v8, %v414_v32 }
 0x119   : > { %v838_v14 = vpop.eup %837  ;;  %v388_v18 = vmul.f32 %v1126_v25, %v1088_v55  ;;  %v332_v21 = vmul.f32 %v1086_v54, %v331_v12  ;;  %v342_v47 = vmul.f32 %v1084_v52, %v341_v33  ;;  %vm394_vm3 = vweird.f32 %v1126_v25 }
 0x11a   : > { %v322_v22 = vmul.f32 %v834_v56, %v321_v15  ;;  %v378_v23 = vmul.f32 %v838_v14, %v1094_v60  ;;  %839 = vrsqrt.f32 %v1129_v16  ;;  %495 = vmatmul.f32.vlgmr.msra.gmra.mxu2 %v425_v19  ;;  %536 = vmatmul.f32.vlgmr.msra.gmra.mxu3 %v425_v19  ;;  %vm384_vm1 = vweird.f32 %v838_v14  ;;  %vm395_vm5 = vmor %vm393_vm15, %vm394_vm3 }
 0x11b   : > { %v389_v26 = vmul.f32 %v1126_v25, %v388_v18  ;;  %v336_v39 = vsel %vm1145_vm12, %v1086_v54, %v332_v21  ;;  %vm385_vm4 = vmor %vm383_vm0, %vm384_vm1  ;;  %v346_v58 = vsel %vm1164_vm2, %v1084_v52, %v342_v47  ;;  %vm353_vm6 = vweird.f32 %v1129_v16 }
 0x11c   : > { %v379_v27 = vmul.f32 %v838_v14, %v378_v23  ;;  %v326_v28 = vsel %vm325_vm11, %v834_v56, %v322_v22  ;;  %v398_v31 = vmul.f32 %v336_v39, %v955_v35  ;;  %v399_v55 = vmul.f32 %v346_v58, %v953_v34 }
 0x11d   : > { %v390_v29 = vmul.f32 0.5, %v389_v26  ;;  %v397_v30 = vmul.f32 %v326_v28, %v958_v37  ;;  %v1194_v9 = vperm.slane %v461_v7, 0  ;;  %v1196_v10 = vperm.slane %v461_v7, 1 }
 0x11e   : > { %v380_v38 = vmul.f32 0.5, %v379_v27  ;;  %v410_v56 = vmul.f32 %v1105_v0, %v398_v31 }
 0x11f   : > { %v391_v36 = vsub.f32 1.5, %v390_v29  ;;  %v409_v40 = vmul.f32 %v1105_v0, %v397_v30 }
 0x120   : > { %v840_v42 = vpop.eup %839  ;;  %v381_v43 = vsub.f32 1.5, %v380_v38  ;;  %v422_v62 = vadd.f32 %v1117_v8, %v410_v56 }
 0x121   : > { %v348_v37 = vmul.f32 %v840_v42, %v1129_v16  ;;  %v421_v44 = vadd.f32 %v1117_v8, %v409_v40  ;;  %v392_v50 = vmul.f32 %v1126_v25, %v391_v36  ;;  %vm354_vm7 = vweird.f32 %v840_v42 }
 0x122   : > { %v382_v51 = vmul.f32 %v838_v14, %v381_v43  ;;  %498 = vmatmul.f32.gmra.mxu2 %v426_v46  ;;  %539 = vmatmul.f32.gmra.mxu3 %v426_v46  ;;  %vm355_vm8 = vmor %vm353_vm6, %vm354_vm7 }
 0x123   : > { %v349_v53 = vmul.f32 %v840_v42, %v348_v37  ;;  %483 = vmatmul.f32.vlgmr.msra.gmra.mxu0 %v421_v44  ;;  %524 = vmatmul.f32.vlgmr.msra.gmra.mxu1 %v421_v44  ;;  %v396_v59 = vsel %vm395_vm5, %v1126_v25, %v392_v50 }
 0x124   : > { %v386_v54 = vsel %vm385_vm4, %v838_v14, %v382_v51  ;;  %v404_v1 = vmul.f32 %v396_v59, %v969_v45 }
 0x125   : > { %v350_v35 = vmul.f32 0.5, %v349_v53  ;;  %v403_v57 = vmul.f32 %v386_v54, %v966_v41  ;;  %v411_v41 = vmul.f32 %v1105_v0, %v399_v55 }
 0x126   : > { %v416_v52 = vmul.f32 %v1105_v0, %v404_v1 }
 0x127   : > { %v351_v60 = vsub.f32 1.5, %v350_v35  ;;  %v415_v61 = vmul.f32 %v1105_v0, %v403_v57  ;;  %v423_v4 = vadd.f32 %v1117_v8, %v411_v41 }
 0x128   : > { %v428_v34 = vadd.f32 %v1117_v8, %v416_v52 }
 0x129   : > { %v427_v63 = vadd.f32 %v1117_v8, %v415_v61  ;;  %v352_v2 = vmul.f32 %v840_v42, %v351_v60 }
 0x12b   : > { %486 = vmatmul.f32.gmra.mxu0 %v422_v62  ;;  %501 = vmatmul.f32.gmra.mxu2 %v427_v63  ;;  %v356_v3 = vsel %vm355_vm8, %v840_v42, %v352_v2 }
 0x12c   : > { %527 = vmatmul.f32.gmra.mxu1 %v422_v62  ;;  %542 = vmatmul.f32.gmra.mxu3 %v427_v63  ;;  %v400_v45 = vmul.f32 %v356_v3, %v976_v49 }
 0x12e   : > { %v412_v5 = vmul.f32 %v1105_v0, %v400_v45 }
 0x130   : > { %v424_v6 = vadd.f32 %v1117_v8, %v412_v5 }
 0x133   : > { %489 = vmatmul.f32.gmra.mxu0 %v423_v4  ;;  %504 = vmatmul.f32.gmra.mxu2 %v428_v34 }
 0x134   : > { %530 = vmatmul.f32.gmra.mxu1 %v423_v4  ;;  %545 = vmatmul.f32.gmra.mxu3 %v428_v34 }
 0x13b   : > { %492 = vmatmul.f32.gmra.mxu0 %v424_v6 }
 0x13c   : > { %533 = vmatmul.f32.gmra.mxu1 %v424_v6 }
 0x19d   : > { %v496_v11 = vpop.f32.mrf.mxu2  ;;  %v537_v49 = vpop.f32.mrf.mxu3 }
 0x19e   : > { %v497_v12 = vadd.f32 %v496_v11, %v1194_v9  ;;  %v538_v13 = vadd.f32 %v537_v49, %v1196_v10 }
 0x1a0   : > { %v484_v25 = vpop.f32.mrf.mxu0  ;;  %v573_v0 = vmul.f32 0.044715, %v497_v12  ;;  %v574_v15 = vmul.f32 0.044715, %v538_v13  ;;  %v525_v8 = vpop.f32.mrf.mxu1  ;;  %v557_v58 = vmul.f32 0.5, %v497_v12  ;;  %v558_v62 = vmul.f32 0.5, %v538_v13 }
 0x1a1   : > { %v485_v16 = vadd.f32 %v484_v25, %v1194_v9  ;;  %v526_v14 = vadd.f32 %v525_v8, %v1196_v10 }
 0x1a2   : > { %v589_v17 = vmul.f32 %v573_v0, %v497_v12  ;;  %v590_v18 = vmul.f32 %v574_v15, %v538_v13 }
 0x1a3   : > { %v565_v19 = vmul.f32 0.044715, %v485_v16  ;;  %v566_v20 = vmul.f32 0.044715, %v526_v14  ;;  %v549_v52 = vmul.f32 0.5, %v485_v16  ;;  %v550_v6 = vmul.f32 0.5, %v526_v14 }
 0x1a4   : > { %v605_v21 = vmul.f32 %v589_v17, %v497_v12  ;;  %v606_v22 = vmul.f32 %v590_v18, %v538_v13 }
 0x1a5   : > { %v581_v23 = vmul.f32 %v565_v19, %v485_v16  ;;  %v582_v26 = vmul.f32 %v566_v20, %v526_v14  ;;  %v499_v27 = vpop.f32.mrf.mxu2  ;;  %v540_v30 = vpop.f32.mrf.mxu3 }
 0x1a6   : > { %v621_v28 = vadd.f32 %v605_v21, %v497_v12  ;;  %v622_v24 = vadd.f32 %v606_v22, %v538_v13  ;;  %v1203_v29 = vadd.f32 %v499_v27, %v1194_v9  ;;  %v1206_v38 = vadd.f32 %v540_v30, %v1196_v10 }
 0x1a7   : > { %v597_v32 = vmul.f32 %v581_v23, %v485_v16  ;;  %v598_v33 = vmul.f32 %v582_v26, %v526_v14 }
 0x1a8   : > { %v487_v39 = vpop.f32.mrf.mxu0  ;;  %v637_v36 = vmul.f32 0.7978846, %v621_v28  ;;  %v638_v40 = vmul.f32 0.7978846, %v622_v24  ;;  %v575_v44 = vmul.f32 0.044715, %v1203_v29 }
 0x1a9   : > { %v1209_v42 = vadd.f32 %v487_v39, %v1194_v9  ;;  %v613_v43 = vadd.f32 %v597_v32, %v485_v16  ;;  %v614_v37 = vadd.f32 %v598_v33, %v526_v14  ;;  %v528_v46 = vpop.f32.mrf.mxu1  ;;  %v576_v31 = vmul.f32 0.044715, %v1206_v38 }
 0x1aa   : > { %841 = vtanh.f32 %v637_v36  ;;  %v591_v51 = vmul.f32 %v575_v44, %v1203_v29  ;;  %v1218_v35 = vadd.f32 %v528_v46, %v1196_v10  ;;  %v559_v28 = vmul.f32 0.5, %v1203_v29 }
 0x1ab   : > { %v567_v47 = vmul.f32 0.044715, %v1209_v42  ;;  %843 = vtanh.f32 %v638_v40  ;;  %v629_v48 = vmul.f32 0.7978846, %v613_v43  ;;  %v630_v50 = vmul.f32 0.7978846, %v614_v37 }
 0x1ac   : > { %v592_v53 = vmul.f32 %v576_v31, %v1206_v38  ;;  %v607_v56 = vmul.f32 %v591_v51, %v1203_v29  ;;  %v568_v55 = vmul.f32 0.044715, %v1218_v35  ;;  %v560_v43 = vmul.f32 0.5, %v1206_v38 }
 0x1ad   : > { %v583_v54 = vmul.f32 %v567_v47, %v1209_v42  ;;  %845 = vtanh.f32 %v629_v48  ;;  %v551_v31 = vmul.f32 0.5, %v1209_v42 }
 0x1ae   : > { %v502_v57 = vpop.f32.mrf.mxu2  ;;  %847 = vtanh.f32 %v630_v50  ;;  %v608_v59 = vmul.f32 %v592_v53, %v1206_v38  ;;  %v623_v63 = vadd.f32 %v607_v56, %v1203_v29  ;;  %v584_v11 = vmul.f32 %v568_v55, %v1218_v35 }
 0x1af   : > { %v599_v60 = vmul.f32 %v583_v54, %v1209_v42  ;;  %v543_v61 = vpop.f32.mrf.mxu3  ;;  %v1227_v1 = vadd.f32 %v502_v57, %v1194_v9 }
 0x1b0   : > { %v490_v2 = vpop.f32.mrf.mxu0  ;;  %v842_v41 = vpop.eup %841  ;;  %v624_v3 = vadd.f32 %v608_v59, %v1206_v38  ;;  %v1232_v34 = vadd.f32 %v543_v61, %v1196_v10  ;;  %v639_v7 = vmul.f32 0.7978846, %v623_v63  ;;  %v600_v8 = vmul.f32 %v584_v11, %v1218_v35 }
 0x1b1   : > { %v615_v4 = vadd.f32 %v599_v60, %v1209_v42  ;;  %v844_v45 = vpop.eup %843  ;;  %v669_v5 = vadd.f32 1.0, %v842_v41  ;;  %v1241_v25 = vadd.f32 %v490_v2, %v1194_v9  ;;  %v577_v16 = vmul.f32 0.044715, %v1227_v1  ;;  %v531_v14 = vpop.f32.mrf.mxu1 }
 0x1b2   : > { %v670_v49 = vadd.f32 1.0, %v844_v45  ;;  %v640_v12 = vmul.f32 0.7978846, %v624_v3  ;;  %849 = vtanh.f32 %v639_v7  ;;  %v578_v20 = vmul.f32 0.044715, %v1232_v34 }
 0x1b3   : > { %v631_v13 = vmul.f32 0.7978846, %v615_v4  ;;  %v846_v0 = vpop.eup %845  ;;  %v685_v15 = vmul.f32 %v669_v5, %v557_v58  ;;  %v616_v22 = vadd.f32 %v600_v8, %v1218_v35  ;;  %v593_v23 = vmul.f32 %v577_v16, %v1227_v1 }
 0x1b4   : > { %v848_v17 = vpop.eup %847  ;;  %v686_v18 = vmul.f32 %v670_v49, %v558_v62  ;;  %v661_v19 = vadd.f32 1.0, %v846_v0  ;;  %851 = vtanh.f32 %v640_v12  ;;  %v594_v24 = vmul.f32 %v578_v20, %v1232_v34 }
 0x1b5   : > { %701 = vst [vmem:[%s1238_s28 + $0x40] sm:$0xff] %v685_v15  ;;  %v662_v21 = vadd.f32 1.0, %v848_v17  ;;  %853 = vtanh.f32 %v631_v13  ;;  %v569_v30 = vmul.f32 0.044715, %v1241_v25  ;;  %v632_v33 = vmul.f32 0.7978846, %v616_v22 }
 0x1b6   : > { %v505_v26 = vpop.f32.mrf.mxu2  ;;  %702 = vst [vmem:[%s1238_s28 + $0x48] sm:$0xff] %v686_v18  ;;  %v677_v27 = vmul.f32 %v661_v19, %v549_v52  ;;  %v609_v39 = vmul.f32 %v593_v23, %v1227_v1  ;;  %v1255_v36 = vadd.f32 %v531_v14, %v1196_v10  ;;  %v610_v37 = vmul.f32 %v594_v24, %v1232_v34 }
 0x1b7   : > { %v678_v32 = vmul.f32 %v662_v21, %v550_v6  ;;  %v546_v40 = vpop.f32.mrf.mxu3  ;;  %v585_v44 = vmul.f32 %v569_v30, %v1241_v25  ;;  %v1262_v29 = vadd.f32 %v505_v26, %v1194_v9  ;;  %855 = vtanh.f32 %v632_v33 }
 0x1b8   : > { %693 = vst [vmem:[%s1238_s28] sm:$0xff] %v677_v27  ;;  %v850_v46 = vpop.eup %849  ;;  %v625_v47 = vadd.f32 %v609_v39, %v1227_v1  ;;  %v570_v48 = vmul.f32 0.044715, %v1255_v36  ;;  %v626_v38 = vadd.f32 %v610_v37, %v1232_v34  ;;  %v1271_v54 = vadd.f32 %v546_v40, %v1196_v10  ;;  %v493_v55 = vpop.f32.mrf.mxu0 }
 0x1b9   : > { %694 = vst [vmem:[%s1238_s28 + $0x8] sm:$0xff] %v678_v32  ;;  %v671_v51 = vadd.f32 1.0, %v850_v46  ;;  %v601_v53 = vmul.f32 %v585_v44, %v1241_v25  ;;  %v579_v59 = vmul.f32 0.044715, %v1262_v29  ;;  %v534_v3 = vpop.f32.mrf.mxu1  ;;  %v494_v49 = vadd.f32 %v493_v55, %v1194_v9 }
 0x1ba   : > { %v852_v50 = vpop.eup %851  ;;  %v641_v58 = vmul.f32 0.7978846, %v625_v47  ;;  %v586_v42 = vmul.f32 %v570_v48, %v1255_v36  ;;  %v642_v62 = vmul.f32 0.7978846, %v626_v38  ;;  %v580_v11 = vmul.f32 0.044715, %v1271_v54 }
 0x1bb   : > { %v854_v56 = vpop.eup %853  ;;  %v672_v57 = vadd.f32 1.0, %v852_v50  ;;  %v687_v60 = vmul.f32 %v671_v51, %v559_v28  ;;  %v617_v63 = vadd.f32 %v601_v53, %v1241_v25  ;;  %v595_v52 = vmul.f32 %v579_v59, %v1262_v29 }
 0x1bc   : > { %v663_v61 = vadd.f32 1.0, %v854_v56  ;;  %857 = vtanh.f32 %v641_v58  ;;  %v602_v41 = vmul.f32 %v586_v42, %v1255_v36  ;;  %v552_v12 = vmul.f32 0.5, %v1218_v35 }
 0x1bd   : > { %v688_v2 = vmul.f32 %v672_v57, %v560_v43  ;;  %703 = vst [vmem:[%s1238_s28 + $0x50] sm:$0xff] %v687_v60  ;;  %859 = vtanh.f32 %v642_v62  ;;  %v633_v45 = vmul.f32 0.7978846, %v617_v63  ;;  %v856_v5 = vpop.eup %855  ;;  %v611_v7 = vmul.f32 %v595_v52, %v1262_v29 }
 0x1be   : > { %v679_v4 = vmul.f32 %v663_v61, %v551_v31  ;;  %v618_v6 = vadd.f32 %v602_v41, %v1255_v36  ;;  %v664_v13 = vadd.f32 1.0, %v856_v5  ;;  %v535_v0 = vadd.f32 %v534_v3, %v1196_v10 }
 0x1bf   : > { %704 = vst [vmem:[%s1238_s28 + $0x58] sm:$0xff] %v688_v2  ;;  %861 = vtanh.f32 %v633_v45  ;;  %v627_v8 = vadd.f32 %v611_v7, %v1262_v29  ;;  %v596_v16 = vmul.f32 %v580_v11, %v1271_v54  ;;  %v571_v17 = vmul.f32 0.044715, %v494_v49 }
 0x1c0   : > { %695 = vst [vmem:[%s1238_s28 + $0x10] sm:$0xff] %v679_v4  ;;  %v634_v15 = vmul.f32 0.7978846, %v618_v6  ;;  %v680_v14 = vmul.f32 %v664_v13, %v552_v12  ;;  %v572_v18 = vmul.f32 0.044715, %v535_v0  ;;  %v561_v35 = vmul.f32 0.5, %v1227_v1 }
 0x1c1   : > { %v643_v20 = vmul.f32 0.7978846, %v627_v8  ;;  %v612_v9 = vmul.f32 %v596_v16, %v1271_v54  ;;  %v587_v10 = vmul.f32 %v571_v17, %v494_v49  ;;  %v562_v26 = vmul.f32 0.5, %v1232_v34 }
 0x1c2   : > { %v858_v19 = vpop.eup %857  ;;  %863 = vtanh.f32 %v634_v15  ;;  %696 = vst [vmem:[%s1238_s28 + $0x18] sm:$0xff] %v680_v14  ;;  %v588_v23 = vmul.f32 %v572_v18, %v535_v0  ;;  %v553_v40 = vmul.f32 0.5, %v1241_v25  ;;  %v554_v31 = vmul.f32 0.5, %v1255_v36 }
 0x1c3   : > { %v860_v21 = vpop.eup %859  ;;  %v673_v22 = vadd.f32 1.0, %v858_v19  ;;  %865 = vtanh.f32 %v643_v20  ;;  %v628_v28 = vadd.f32 %v612_v9, %v1271_v54  ;;  %v603_v32 = vmul.f32 %v587_v10, %v494_v49 }
 0x1c4   : > { %v674_v27 = vadd.f32 1.0, %v860_v21  ;;  %v604_v33 = vmul.f32 %v588_v23, %v535_v0  ;;  %v563_v25 = vmul.f32 0.5, %v1262_v29  ;;  %v564_v36 = vmul.f32 0.5, %v1271_v54 }
 0x1c5   : > { %v862_v24 = vpop.eup %861  ;;  %v689_v30 = vmul.f32 %v673_v22, %v561_v35  ;;  %v644_v43 = vmul.f32 0.7978846, %v628_v28  ;;  %v619_v37 = vadd.f32 %v603_v32, %v494_v49  ;;  %v555_v61 = vmul.f32 0.5, %v494_v49 }
 0x1c6   : > { %v690_v39 = vmul.f32 %v674_v27, %v562_v26  ;;  %v665_v1 = vadd.f32 1.0, %v862_v24  ;;  %v620_v44 = vadd.f32 %v604_v33, %v535_v0  ;;  %v556_v63 = vmul.f32 0.5, %v535_v0 }
 0x1c7   : > { %705 = vst [vmem:[%s1238_s28 + $0x60] sm:$0xff] %v689_v30  ;;  %867 = vtanh.f32 %v644_v43  ;;  %v635_v48 = vmul.f32 0.7978846, %v619_v37 }
 0x1c8   : > { %v864_v34 = vpop.eup %863  ;;  %706 = vst [vmem:[%s1238_s28 + $0x68] sm:$0xff] %v690_v39  ;;  %v681_v46 = vmul.f32 %v665_v1, %v553_v40  ;;  %v636_v50 = vmul.f32 0.7978846, %v620_v44 }
 0x1c9   : > { %v666_v47 = vadd.f32 1.0, %v864_v34  ;;  %v866_v51 = vpop.eup %865  ;;  %869 = vtanh.f32 %v635_v48 }
 0x1ca   : > { %697 = vst [vmem:[%s1238_s28 + $0x20] sm:$0xff] %v681_v46  ;;  %v675_v53 = vadd.f32 1.0, %v866_v51  ;;  %871 = vtanh.f32 %v636_v50 }
 0x1cb   : > { %v682_v38 = vmul.f32 %v666_v47, %v554_v31 }
 0x1cc   : > { %v691_v56 = vmul.f32 %v675_v53, %v563_v25 }
 0x1cd   : > { %698 = vst [vmem:[%s1238_s28 + $0x28] sm:$0xff] %v682_v38  ;;  %v868_v57 = vpop.eup %867 }
 0x1ce   : > { %707 = vst [vmem:[%s1238_s28 + $0x70] sm:$0xff] %v691_v56  ;;  %v676_v58 = vadd.f32 1.0, %v868_v57 }
 0x1cf   : > { %v870_v42 = vpop.eup %869 }
 0x1d0   : > { %v692_v59 = vmul.f32 %v676_v58, %v564_v36  ;;  %v872_v60 = vpop.eup %871  ;;  %v667_v62 = vadd.f32 1.0, %v870_v42 }
 0x1d1   : > { %v668_v29 = vadd.f32 1.0, %v872_v60 }
 0x1d2   : > { %708 = vst [vmem:[%s1238_s28 + $0x78] sm:$0xff] %v692_v59  ;;  %v683_v55 = vmul.f32 %v667_v62, %v555_v61 }
 0x1d3   : > { %v684_v2 = vmul.f32 %v668_v29, %v556_v63 }
 0x1d4   : > { %699 = vst [vmem:[%s1238_s28 + $0x30] sm:$0xff] %v683_v55 }
 0x1d5   : > { %700 = vst [vmem:[%s1238_s28 + $0x38] sm:$0xff] %v684_v2 }
 0x1d6 PF: > { %s15_s18 = sadd.s32 1, %s879_s18  }
 0x1d7   : > { %p12_p4 = scmp.ge.s32.totalorder %s15_s18, 4  }
 0x1d9   :  { %14 = sbr.rel (!%p12_p4) target bundleno = 1 (0x1), region = 70 }

// kernel: transformer_forward.15
= control target key start
LH: loop header
LB: loop body
LE: loop exit
PB: predicated region body
PF: predicated region fallthrough
CT: control target
= control target key end

     0   :  { %s838_s18 = smov 0   ;;  %s1253_s0 = inlined_call_operand.vmem [shape: f32[128,128], index: 0, kind: input, shape index: {}]   ;;  %s1254_s1 = inlined_call_operand.vmem [shape: f32[1,128], index: 1, kind: input, shape index: {}]   ;;  %s1255_s2 = inlined_call_operand.vmem [shape: f32[1,128], index: 2, kind: input, shape index: {}]   ;;  %s1256_s3 = inlined_call_operand.vmem [shape: f32[128,512], index: 3, kind: input, shape index: {}]   ;;  %s1257_s4 = inlined_call_operand.vmem [shape: f32[1,512], index: 4, kind: input, shape index: {}]   ;;  %s1258_s5 = inlined_call_operand.vmem [shape: f32[128,512], index: 5, kind: output, shape index: {}]  }
   0x1 LB: > { %s757_s19 = sadd.s32 4294967295, %s805_s18   ;;  %p761_p0 = scmp.ge.s32.totalorder %s805_s18, 1  ;;  %s805_s18 = sphi %s838_s18, %s15_s18  }
   0x2   : > { %p188_p1 = scmp.lt.s32.totalorder %s805_s18, 3 }
   0x4   : > { %p189_p2 = pnand %p761_p0, %p188_p1 }
   0x5   : > { %s762_s20 = sshll.u32 (!%p189_p2), %s757_s19, 3 }
   0x6   : > { %192 = sbr.rel (%p189_p2) target bundleno = 549 (0x225), region = 40  ;;  %p218_p3 = scmp.lt.s32.totalorder (!%p189_p2), %s762_s20, 15 }
   0xb   : > { %s1262_s20 = smov (!%p218_p3, %s762_s20), 15  ;;  %v807_v7 = vmov 128.0   ;;  %v489_v16 = vld [vmem:[%s1256_s3 + $0x1e0] sm:$0xff]  ;;  %v490_v17 = vld [vmem:[%s1256_s3 + $0x1e8] sm:$0xff]  ;;  %v491_v18 = vld [vmem:[%s1256_s3 + $0x1f0] sm:$0xff] }
   0xc   : > { %s763_s21 = sshll.u32 %s1262_s20, 3  ;;  %781 = vrcp.f32 %v807_v7  ;;  %503 = vmatpush.msra.mxu0 %v489_v16  ;;  %544 = vmatpush.msra.mxu1 %v490_v17  ;;  %v492_v21 = vld [vmem:[%s1256_s3 + $0x1f8] sm:$0xff]  ;;  %v485_v22 = vld [vmem:[%s1256_s3 + $0x1c0] sm:$0xff]  ;;  %v486_v23 = vld [vmem:[%s1256_s3 + $0x1c8] sm:$0xff] }
   0xd   : > { %s852_s24 = scalar_lea.vmem %s1253_s0, %s763_s21  ;;  %585 = vmatpush.msra.mxu2 %v491_v18  ;;  %626 = vmatpush.msra.mxu3 %v492_v21  ;;  %v487_v25 = vld [vmem:[%s1256_s3 + $0x1d0] sm:$0xff]  ;;  %v488_v26 = vld [vmem:[%s1256_s3 + $0x1d8] sm:$0xff]  ;;  %v481_v51 = vld [vmem:[%s1256_s3 + $0x1a0] sm:$0xff]  ;;  %s769_s21 = sshll.u32 %s1262_s20, 5 }
   0xe   : > { %v855_v0 = vld [vmem:[%s852_s24 + $0x20] sm:$0xff]  ;;  %v232_v1 = vld [vmem:[%s852_s24 + $0x10] sm:$0xff]  ;;  %v235_v3 = vld [vmem:[%s852_s24 + $0x28] sm:$0xff]  ;;  %504 = vmatpush.msra.mxu0 %v485_v22  ;;  %545 = vmatpush.msra.mxu1 %v486_v23 }
   0xf   : > { %v230_v2 = vld [vmem:[%s852_s24] sm:$0xff]  ;;  %246 = vadd.xlane.f32.xlu2 %v855_v0  ;;  %242 = vadd.xlane.f32.xlu1 %v232_v1  ;;  %v233_v4 = vld [vmem:[%s852_s24 + $0x18] sm:$0xff]  ;;  %v231_v5 = vld [vmem:[%s852_s24 + $0x8] sm:$0xff] }
  0x10   : > { %238 = vadd.xlane.f32.xlu0 %v230_v2  ;;  %v236_v6 = vld [vmem:[%s852_s24 + $0x30] sm:$0xff]  ;;  %586 = vmatpush.msra.mxu2 %v487_v25  ;;  %v911_v41 = vld [vmem:[%s852_s24 + $0x38] sm:$0xff]  ;;  %v482_v52 = vld [vmem:[%s1256_s3 + $0x1a8] sm:$0xff]  ;;  %s1178_s24 = scalar_lea.vmem %s1258_s5, %s769_s21 }
  0x11   : > { %627 = vmatpush.msra.mxu3 %v488_v26  ;;  %v483_v53 = vld [vmem:[%s1256_s3 + $0x1b0] sm:$0xff]  ;;  %505 = vmatpush.msra.mxu0 %v481_v51  ;;  %v484_v54 = vld [vmem:[%s1256_s3 + $0x1b8] sm:$0xff]  ;;  %v477_v55 = vld [vmem:[%s1256_s3 + $0x180] sm:$0xff] }
  0x12   : > { %v782_v8 = vpop.eup %781  ;;  %546 = vmatpush.msra.mxu1 %v482_v52  ;;  %587 = vmatpush.msra.mxu2 %v483_v53  ;;  %v478_v56 = vld [vmem:[%s1256_s3 + $0x188] sm:$0xff]  ;;  %v479_v57 = vld [vmem:[%s1256_s3 + $0x190] sm:$0xff]  ;;  %v480_v58 = vld [vmem:[%s1256_s3 + $0x198] sm:$0xff] }
  0x13   : > { %v255_v9 = vmul.f32 128.0, %v782_v8  ;;  %vm259_vm0 = vweird.f32 %v782_v8  ;;  %628 = vmatpush.msra.mxu3 %v484_v54  ;;  %506 = vmatpush.msra.mxu0 %v477_v55  ;;  %v473_v59 = vld [vmem:[%s1256_s3 + $0x160] sm:$0xff]  ;;  %v474_v60 = vld [vmem:[%s1256_s3 + $0x168] sm:$0xff]  ;;  %v475_v61 = vld [vmem:[%s1256_s3 + $0x170] sm:$0xff] }
  0x14   : > { %547 = vmatpush.msra.mxu1 %v478_v56  ;;  %588 = vmatpush.msra.mxu2 %v479_v57  ;;  %v476_v62 = vld [vmem:[%s1256_s3 + $0x178] sm:$0xff]  ;;  %v469_v63 = vld [vmem:[%s1256_s3 + $0x140] sm:$0xff]  ;;  %v454_v17 = vld [vmem:[%s1256_s3 + $0xc8] sm:$0xff] }
  0x15   : > { %v256_v10 = vsub.f32 1.0, %v255_v9  ;;  %629 = vmatpush.msra.mxu3 %v480_v58  ;;  %507 = vmatpush.msra.mxu0 %v473_v59  ;;  %v461_v7 = vld [vmem:[%s1256_s3 + $0x100] sm:$0xff]  ;;  %v463_v9 = vld [vmem:[%s1256_s3 + $0x110] sm:$0xff]  ;;  %v450_v21 = vld [vmem:[%s1256_s3 + $0xa8] sm:$0xff] }
  0x16   : > { %548 = vmatpush.msra.mxu1 %v474_v60  ;;  %589 = vmatpush.msra.mxu2 %v475_v61  ;;  %v453_v16 = vld [vmem:[%s1256_s3 + $0xc0] sm:$0xff]  ;;  %v455_v18 = vld [vmem:[%s1256_s3 + $0xd0] sm:$0xff]  ;;  %v452_v23 = vld [vmem:[%s1256_s3 + $0xb8] sm:$0xff] }
  0x17   : > { %248 = vadd.xlane.f32.xlu2 %v235_v3  ;;  %244 = vadd.xlane.f32.xlu1 %v233_v4  ;;  %v257_v11 = vmul.f32 %v782_v8, %v256_v10  ;;  %v464_v10 = vld [vmem:[%s1256_s3 + $0x118] sm:$0xff]  ;;  %v451_v22 = vld [vmem:[%s1256_s3 + $0xb0] sm:$0xff]  ;;  %v446_v25 = vld [vmem:[%s1256_s3 + $0x88] sm:$0xff] }
  0x18   : > { %240 = vadd.xlane.f32.xlu0 %v231_v5  ;;  %630 = vmatpush.msra.mxu3 %v476_v62  ;;  %v447_v26 = vld [vmem:[%s1256_s3 + $0x90] sm:$0xff]  ;;  %v432_v51 = vld [vmem:[%s1256_s3 + $0x18] sm:$0xff] }
  0x19   : > { %v258_v12 = vadd.f32 %v782_v8, %v257_v11  ;;  %508 = vmatpush.msra.mxu0 %v469_v63  ;;  %v457_v11 = vld [vmem:[%s1256_s3 + $0xe0] sm:$0xff] }
  0x1b   : > { %v864_v13 = vsel %vm259_vm0, %v782_v8, %v258_v12  ;;  %v462_v8 = vld [vmem:[%s1256_s3 + $0x108] sm:$0xff] }
  0x1c   : > { %v458_v12 = vld [vmem:[%s1256_s3 + $0xe8] sm:$0xff] }
  0x1f   : > { %250 = vadd.xlane.f32.xlu1 %v236_v6 }
  0x82   : > { %v247_v14 = vpop.xlane.xlu2 %246  ;;  %v243_v15 = vpop.xlane.xlu1 %242 }
  0x83   : > { %v263_v19 = vmul.f32 %v864_v13, %v243_v15  ;;  %v239_v20 = vpop.xlane.xlu0 %238  ;;  %v265_v37 = vmul.f32 %v864_v13, %v247_v14  ;;  %v459_v14 = vld [vmem:[%s1256_s3 + $0xf0] sm:$0xff]  ;;  %v460_v15 = vld [vmem:[%s1256_s3 + $0xf8] sm:$0xff] }
  0x84   : > { %v261_v24 = vmul.f32 %v864_v13, %v239_v20  ;;  %v449_v20 = vld [vmem:[%s1256_s3 + $0xa0] sm:$0xff] }
  0x85   : > { %v892_v27 = vsub.f32 %v232_v1, %v263_v19  ;;  %v916_v43 = vsub.f32 %v855_v0, %v265_v37  ;;  %v470_v0 = vld [vmem:[%s1256_s3 + $0x148] sm:$0xff]  ;;  %v471_v1 = vld [vmem:[%s1256_s3 + $0x150] sm:$0xff]  ;;  %v456_v19 = vld [vmem:[%s1256_s3 + $0xd8] sm:$0xff] }
  0x86   : > { %v894_v28 = vsub.f32 %v230_v2, %v261_v24  ;;  %549 = vmatpush.msra.mxu1 %v470_v0  ;;  %v472_v2 = vld [vmem:[%s1256_s3 + $0x158] sm:$0xff]  ;;  %590 = vmatpush.msra.mxu2 %v471_v1  ;;  %v445_v24 = vld [vmem:[%s1256_s3 + $0x80] sm:$0xff]  ;;  %v439_v37 = vld [vmem:[%s1256_s3 + $0x50] sm:$0xff] }
  0x87   : > { %v279_v29 = vmul.f32 %v892_v27, %v892_v27  ;;  %v281_v46 = vmul.f32 %v916_v43, %v916_v43  ;;  %631 = vmatpush.msra.mxu3 %v472_v2 }
  0x88   : > { %v277_v30 = vmul.f32 %v894_v28, %v894_v28 }
  0x89   : > { %289 = vadd.xlane.f32.xlu1 %v279_v29  ;;  %v448_v29 = vld [vmem:[%s1256_s3 + $0x98] sm:$0xff] }
  0x8a   : > { %285 = vadd.xlane.f32.xlu0 %v277_v30  ;;  %v249_v31 = vpop.xlane.xlu2 %248  ;;  %v245_v32 = vpop.xlane.xlu1 %244  ;;  %v441_v30 = vld [vmem:[%s1256_s3 + $0x60] sm:$0xff] }
  0x8b   : > { %v266_v33 = vmul.f32 %v864_v13, %v249_v31  ;;  %v241_v34 = vpop.xlane.xlu0 %240  ;;  %v264_v39 = vmul.f32 %v864_v13, %v245_v32  ;;  %v442_v31 = vld [vmem:[%s1256_s3 + $0x68] sm:$0xff]  ;;  %v443_v32 = vld [vmem:[%s1256_s3 + $0x70] sm:$0xff] }
  0x8c   : > { %v262_v35 = vmul.f32 %v864_v13, %v241_v34  ;;  %v437_v34 = vld [vmem:[%s1256_s3 + $0x40] sm:$0xff] }
  0x8d   : > { %v902_v36 = vsub.f32 %v235_v3, %v266_v33  ;;  %v919_v44 = vsub.f32 %v233_v4, %v264_v39  ;;  %v465_v3 = vld [vmem:[%s1256_s3 + $0x120] sm:$0xff]  ;;  %v466_v4 = vld [vmem:[%s1256_s3 + $0x128] sm:$0xff]  ;;  %v444_v33 = vld [vmem:[%s1256_s3 + $0x78] sm:$0xff] }
  0x8e   : > { %v905_v38 = vsub.f32 %v231_v5, %v262_v35  ;;  %v467_v5 = vld [vmem:[%s1256_s3 + $0x130] sm:$0xff]  ;;  %509 = vmatpush.msra.mxu0 %v465_v3  ;;  %550 = vmatpush.msra.mxu1 %v466_v4  ;;  %v438_v35 = vld [vmem:[%s1256_s3 + $0x48] sm:$0xff]  ;;  %v440_v39 = vld [vmem:[%s1256_s3 + $0x58] sm:$0xff] }
  0x8f   : > { %v282_v40 = vmul.f32 %v902_v36, %v902_v36  ;;  %v280_v47 = vmul.f32 %v919_v44, %v919_v44  ;;  %591 = vmatpush.msra.mxu2 %v467_v5 }
  0x90   : > { %v278_v42 = vmul.f32 %v905_v38, %v905_v38  ;;  %510 = vmatpush.msra.mxu0 %v461_v7  ;;  %551 = vmatpush.msra.mxu1 %v462_v8 }
  0x91   : > { %295 = vadd.xlane.f32.xlu1 %v282_v40  ;;  %592 = vmatpush.msra.mxu2 %v463_v9  ;;  %v433_v40 = vld [vmem:[%s1256_s3 + $0x20] sm:$0xff] }
  0x92   : > { %252 = vadd.xlane.f32.xlu0 %v911_v41  ;;  %287 = vadd.xlane.f32.xlu2 %v278_v42  ;;  %v251_v45 = vpop.xlane.xlu1 %250  ;;  %v434_v42 = vld [vmem:[%s1256_s3 + $0x28] sm:$0xff] }
  0x93   : > { %v267_v48 = vmul.f32 %v864_v13, %v251_v45  ;;  %511 = vmatpush.msra.mxu0 %v457_v11  ;;  %552 = vmatpush.msra.mxu1 %v458_v12  ;;  %v435_v45 = vld [vmem:[%s1256_s3 + $0x30] sm:$0xff] }
  0x94   : > { %593 = vmatpush.msra.mxu2 %v459_v14 }
  0x95   : > { %v926_v49 = vsub.f32 %v236_v6, %v267_v48  ;;  %v468_v6 = vld [vmem:[%s1256_s3 + $0x138] sm:$0xff]  ;;  %512 = vmatpush.msra.mxu0 %v453_v16  ;;  %553 = vmatpush.msra.mxu1 %v454_v17  ;;  %v430_v48 = vld [vmem:[%s1256_s3 + $0x8] sm:$0xff] }
  0x96   : > { %632 = vmatpush.msra.mxu3 %v468_v6  ;;  %594 = vmatpush.msra.mxu2 %v455_v18 }
  0x97   : > { %v283_v50 = vmul.f32 %v926_v49, %v926_v49  ;;  %513 = vmatpush.msra.mxu0 %v449_v20  ;;  %554 = vmatpush.msra.mxu1 %v450_v21  ;;  %v1119_v21 = vld [vmem:[%s1254_s1] ss:$0 sm:$0xff] }
  0x98   : > { %633 = vmatpush.msra.mxu3 %v464_v10  ;;  %595 = vmatpush.msra.mxu2 %v451_v22 }
  0x99   : > { %514 = vmatpush.msra.mxu0 %v445_v24  ;;  %555 = vmatpush.msra.mxu1 %v446_v25 }
  0x9a   : > { %293 = vadd.xlane.f32.xlu0 %v281_v46  ;;  %291 = vadd.xlane.f32.xlu2 %v280_v47  ;;  %v436_v46 = vld [vmem:[%s1256_s3 + $0x38] sm:$0xff]  ;;  %v429_v47 = vld [vmem:[%s1256_s3] sm:$0xff] }
  0x9b   : > { %634 = vmatpush.msra.mxu3 %v460_v15  ;;  %596 = vmatpush.msra.mxu2 %v447_v26  ;;  %v1128_v26 = vld [vmem:[%s1255_s2] ss:$0 sm:$0xff] }
  0x9c   : > { %515 = vmatpush.msra.mxu0 %v441_v30  ;;  %556 = vmatpush.msra.mxu1 %v442_v31 }
  0x9d   : > { %635 = vmatpush.msra.mxu3 %v456_v19  ;;  %597 = vmatpush.msra.mxu2 %v443_v32 }
  0x9e   : > { %516 = vmatpush.msra.mxu0 %v437_v34  ;;  %557 = vmatpush.msra.mxu1 %v438_v35 }
  0x9f   : > { %636 = vmatpush.msra.mxu3 %v452_v23  ;;  %598 = vmatpush.msra.mxu2 %v439_v37 }
  0xa0   : > { %517 = vmatpush.msra.mxu0 %v433_v40  ;;  %558 = vmatpush.msra.mxu1 %v434_v42 }
  0xa1   : > { %637 = vmatpush.msra.mxu3 %v448_v29  ;;  %599 = vmatpush.msra.mxu2 %v435_v45 }
  0xa2   : > { %297 = vadd.xlane.f32.xlu2 %v283_v50  ;;  %v431_v50 = vld [vmem:[%s1256_s3 + $0x10] sm:$0xff]  ;;  %518 = vmatpush.msra.mxu0 %v429_v47 }
  0xa3   : > { %638 = vmatpush.msra.mxu3 %v444_v33  ;;  %559 = vmatpush.msra.mxu1 %v430_v48 }
  0xa4   : > { %600 = vmatpush.msra.mxu2 %v431_v50 }
  0xa5   : > { %639 = vmatpush.msra.mxu3 %v440_v39 }
  0xa7   : > { %640 = vmatpush.msra.mxu3 %v436_v46 }
  0xa9   : > { %641 = vmatpush.msra.mxu3 %v432_v51 }
  0xfc   : > { %v290_v52 = vpop.xlane.xlu1 %289 }
  0xfd   : > { %v303_v53 = vmul.f32 %v290_v52, %v864_v13  ;;  %v286_v54 = vpop.xlane.xlu0 %285 }
  0xfe   : > { %v301_v55 = vmul.f32 %v286_v54, %v864_v13 }
  0xff   : > { %v311_v56 = vadd.f32 1e-05, %v303_v53 }
 0x100   : > { %v309_v57 = vadd.f32 1e-05, %v301_v55 }
 0x101   : > { %783 = vrsqrt.f32 %v311_v56  ;;  %vm343_vm6 = vweird.f32 %v311_v56 }
 0x102   : > { %785 = vrsqrt.f32 %v309_v57  ;;  %vm323_vm2 = vweird.f32 %v309_v57 }
 0x104   : > { %v296_v6 = vpop.xlane.xlu1 %295 }
 0x105   : > { %v288_v58 = vpop.xlane.xlu2 %287  ;;  %v253_v59 = vpop.xlane.xlu0 %252  ;;  %v306_v15 = vmul.f32 %v296_v6, %v864_v13 }
 0x106   : > { %v302_v60 = vmul.f32 %v288_v58, %v864_v13  ;;  %v268_v61 = vmul.f32 %v864_v13, %v253_v59 }
 0x107   : > { %v1102_v62 = vpop.eup %783  ;;  %v1123_v25 = vadd.f32 1e-05, %v306_v15 }
 0x108   : > { %v786_v63 = vpop.eup %785  ;;  %v310_v0 = vadd.f32 1e-05, %v302_v60  ;;  %v1105_v1 = vsub.f32 %v911_v41, %v268_v61  ;;  %v338_v2 = vmul.f32 %v1102_v62, %v311_v56  ;;  %vm344_vm7 = vweird.f32 %v1102_v62 }
 0x109   : > { %v318_v3 = vmul.f32 %v786_v63, %v309_v57  ;;  %vm324_vm1 = vweird.f32 %v786_v63  ;;  %vm1136_vm9 = vmor %vm343_vm6, %vm344_vm7  ;;  %vm373_vm0 = vweird.f32 %v1123_v25 }
 0x10a   : > { %787 = vrsqrt.f32 %v310_v0  ;;  %v284_v4 = vmul.f32 %v1105_v1, %v1105_v1  ;;  %v339_v7 = vmul.f32 %v1102_v62, %v338_v2  ;;  %vm325_vm3 = vmor %vm323_vm2, %vm324_vm1  ;;  %vm333_vm4 = vweird.f32 %v310_v0 }
 0x10b   : > { %v319_v5 = vmul.f32 %v786_v63, %v318_v3 }
 0x10c   : > { %299 = vadd.xlane.f32.xlu0 %v284_v4  ;;  %v340_v17 = vmul.f32 0.5, %v339_v7 }
 0x10d   : > { %v320_v8 = vmul.f32 0.5, %v319_v5  ;;  %v292_v9 = vpop.xlane.xlu2 %291  ;;  %v294_v10 = vpop.xlane.xlu0 %293 }
 0x10e   : > { %v304_v11 = vmul.f32 %v292_v9, %v864_v13  ;;  %v305_v41 = vmul.f32 %v294_v10, %v864_v13  ;;  %v341_v29 = vsub.f32 1.5, %v340_v17 }
 0x10f   : > { %v321_v12 = vsub.f32 1.5, %v320_v8 }
 0x110   : > { %v788_v14 = vpop.eup %787  ;;  %v312_v16 = vadd.f32 1e-05, %v304_v11  ;;  %v1114_v20 = vadd.f32 1e-05, %v305_v41  ;;  %v342_v39 = vmul.f32 %v1102_v62, %v341_v29 }
 0x111   : > { %v322_v18 = vmul.f32 %v786_v63, %v321_v12  ;;  %v328_v19 = vmul.f32 %v788_v14, %v310_v0  ;;  %vm334_vm5 = vweird.f32 %v788_v14 }
 0x112   : > { %789 = vrsqrt.f32 %v312_v16  ;;  %vm335_vm8 = vmor %vm333_vm4, %vm334_vm5  ;;  %v346_v52 = vsel %vm1136_vm9, %v1102_v62, %v342_v39  ;;  %vm353_vm10 = vweird.f32 %v312_v16  ;;  %vm363_vm13 = vweird.f32 %v1114_v20 }
 0x113   : > { %v326_v22 = vsel %vm325_vm3, %v786_v63, %v322_v18  ;;  %v329_v23 = vmul.f32 %v788_v14, %v328_v19  ;;  %791 = vrsqrt.f32 %v1114_v20  ;;  %v399_v58 = vmul.f32 %v346_v52, %v892_v27 }
 0x114   : > { %v397_v24 = vmul.f32 %v326_v22, %v894_v28  ;;  %793 = vrsqrt.f32 %v1123_v25 }
 0x115   : > { %v330_v30 = vmul.f32 0.5, %v329_v23  ;;  %v298_v31 = vpop.xlane.xlu2 %297  ;;  %v411_v62 = vmul.f32 %v1119_v21, %v399_v58 }
 0x116   : > { %v409_v32 = vmul.f32 %v1119_v21, %v397_v24  ;;  %v307_v28 = vmul.f32 %v298_v31, %v864_v13 }
 0x117   : > { %v331_v33 = vsub.f32 1.5, %v330_v30  ;;  %v423_v4 = vadd.f32 %v1128_v26, %v411_v62 }
 0x118   : > { %v790_v34 = vpop.eup %789  ;;  %v421_v35 = vadd.f32 %v1128_v26, %v409_v32  ;;  %v315_v51 = vadd.f32 1e-05, %v307_v28 }
 0x119   : > { %v792_v37 = vpop.eup %791  ;;  %v332_v40 = vmul.f32 %v788_v14, %v331_v33  ;;  %v348_v42 = vmul.f32 %v790_v34, %v312_v16  ;;  %vm354_vm11 = vweird.f32 %v790_v34 }
 0x11a   : > { %v358_v46 = vmul.f32 %v792_v37, %v1114_v20  ;;  %519 = vmatmul.f32.vlgmr.msra.gmra.mxu0 %v421_v35  ;;  %560 = vmatmul.f32.vlgmr.msra.gmra.mxu1 %v421_v35  ;;  %v794_v55 = vpop.eup %793  ;;  %795 = vrsqrt.f32 %v315_v51  ;;  %vm355_vm12 = vmor %vm353_vm10, %vm354_vm11  ;;  %vm364_vm14 = vweird.f32 %v792_v37  ;;  %vm383_vm3 = vweird.f32 %v315_v51 }
 0x11b   : > { %v336_v47 = vsel %vm335_vm8, %v788_v14, %v332_v40  ;;  %v349_v48 = vmul.f32 %v790_v34, %v348_v42  ;;  %601 = vmatmul.f32.vlgmr.msra.gmra.mxu2 %v421_v35  ;;  %642 = vmatmul.f32.vlgmr.msra.gmra.mxu3 %v421_v35  ;;  %vm365_vm15 = vmor %vm363_vm13, %vm364_vm14  ;;  %vm374_vm1 = vweird.f32 %v794_v55  ;;  %v493_v35 = vld [vmem:[%s1257_s4] sm:$0xf] }
 0x11c   : > { %v398_v50 = vmul.f32 %v336_v47, %v905_v38  ;;  %v359_v54 = vmul.f32 %v792_v37, %v358_v46  ;;  %v368_v38 = vmul.f32 %v794_v55, %v1123_v25  ;;  %vm375_vm2 = vmor %vm373_vm0, %vm374_vm1  ;;  %v1170_v39 = vperm.slane %v493_v35, 0 }
 0x11d   : > { %v350_v53 = vmul.f32 0.5, %v349_v48  ;;  %v1172_v40 = vperm.slane %v493_v35, 1  ;;  %v1188_v52 = vperm.slane %v493_v35, 3 }
 0x11e   : > { %v410_v56 = vmul.f32 %v1119_v21, %v398_v50  ;;  %v360_v61 = vmul.f32 0.5, %v359_v54  ;;  %v369_v63 = vmul.f32 %v794_v55, %v368_v38 }
 0x11f   : > { %v351_v57 = vsub.f32 1.5, %v350_v53 }
 0x120   : > { %v422_v59 = vadd.f32 %v1128_v26, %v410_v56  ;;  %v361_v2 = vsub.f32 1.5, %v360_v61  ;;  %v796_v3 = vpop.eup %795  ;;  %v370_v5 = vmul.f32 0.5, %v369_v63 }
 0x121   : > { %v352_v60 = vmul.f32 %v790_v34, %v351_v57  ;;  %v378_v7 = vmul.f32 %v796_v3, %v315_v51  ;;  %vm384_vm4 = vweird.f32 %v796_v3 }
 0x122   : > { %522 = vmatmul.f32.gmra.mxu0 %v422_v59  ;;  %563 = vmatmul.f32.gmra.mxu1 %v422_v59  ;;  %v362_v6 = vmul.f32 %v792_v37, %v361_v2  ;;  %v371_v9 = vsub.f32 1.5, %v370_v5  ;;  %vm385_vm5 = vmor %vm383_vm3, %vm384_vm4 }
 0x123   : > { %604 = vmatmul.f32.gmra.mxu2 %v422_v59  ;;  %645 = vmatmul.f32.gmra.mxu3 %v422_v59  ;;  %v356_v0 = vsel %vm355_vm12, %v790_v34, %v352_v60  ;;  %v379_v11 = vmul.f32 %v796_v3, %v378_v7 }
 0x124   : > { %v400_v27 = vmul.f32 %v356_v0, %v919_v44  ;;  %v366_v10 = vsel %vm365_vm15, %v792_v37, %v362_v6  ;;  %v372_v12 = vmul.f32 %v794_v55, %v371_v9 }
 0x125   : > { %v401_v44 = vmul.f32 %v366_v10, %v916_v43  ;;  %v380_v14 = vmul.f32 0.5, %v379_v11 }
 0x126   : > { %v412_v8 = vmul.f32 %v1119_v21, %v400_v27  ;;  %v376_v16 = vsel %vm375_vm2, %v794_v55, %v372_v12 }
 0x127   : > { %v413_v15 = vmul.f32 %v1119_v21, %v401_v44  ;;  %v381_v17 = vsub.f32 1.5, %v380_v14  ;;  %v402_v18 = vmul.f32 %v376_v16, %v902_v36 }
 0x128   : > { %v424_v41 = vadd.f32 %v1128_v26, %v412_v8 }
 0x129   : > { %v425_v19 = vadd.f32 %v1128_v26, %v413_v15  ;;  %v382_v43 = vmul.f32 %v796_v3, %v381_v17  ;;  %v414_v20 = vmul.f32 %v1119_v21, %v402_v18 }
 0x12a   : > { %525 = vmatmul.f32.gmra.mxu0 %v423_v4  ;;  %566 = vmatmul.f32.gmra.mxu1 %v423_v4 }
 0x12b   : > { %607 = vmatmul.f32.gmra.mxu2 %v423_v4  ;;  %648 = vmatmul.f32.gmra.mxu3 %v423_v4  ;;  %v386_v22 = vsel %vm385_vm5, %v796_v3, %v382_v43  ;;  %v426_v24 = vadd.f32 %v1128_v26, %v414_v20 }
 0x12c   : > { %v403_v23 = vmul.f32 %v386_v22, %v926_v49 }
 0x12e   : > { %v415_v36 = vmul.f32 %v1119_v21, %v403_v23 }
 0x130   : > { %v427_v25 = vadd.f32 %v1128_v26, %v415_v36 }
 0x132   : > { %528 = vmatmul.f32.gmra.mxu0 %v424_v41  ;;  %569 = vmatmul.f32.gmra.mxu1 %v424_v41 }
 0x133   : > { %610 = vmatmul.f32.gmra.mxu2 %v424_v41  ;;  %651 = vmatmul.f32.gmra.mxu3 %v424_v41 }
 0x13a   : > { %531 = vmatmul.f32.gmra.mxu0 %v425_v19  ;;  %572 = vmatmul.f32.gmra.mxu1 %v425_v19 }
 0x13b   : > { %613 = vmatmul.f32.gmra.mxu2 %v425_v19  ;;  %654 = vmatmul.f32.gmra.mxu3 %v425_v19 }
 0x142   : > { %534 = vmatmul.f32.gmra.mxu0 %v426_v24  ;;  %575 = vmatmul.f32.gmra.mxu1 %v426_v24 }
 0x143   : > { %616 = vmatmul.f32.gmra.mxu2 %v426_v24  ;;  %657 = vmatmul.f32.gmra.mxu3 %v426_v24 }
 0x14a   : > { %537 = vmatmul.f32.gmra.mxu0 %v427_v25  ;;  %578 = vmatmul.f32.gmra.mxu1 %v427_v25 }
 0x14b   : > { %619 = vmatmul.f32.gmra.mxu2 %v427_v25  ;;  %660 = vmatmul.f32.gmra.mxu3 %v427_v25 }
 0x17f   : > { %v300_v29 = vpop.xlane.xlu0 %299 }
 0x180   : > { %v308_v30 = vmul.f32 %v300_v29, %v864_v13 }
 0x182   : > { %v316_v31 = vadd.f32 1e-05, %v308_v30 }
 0x184   : > { %797 = vrsqrt.f32 %v316_v31  ;;  %vm393_vm7 = vweird.f32 %v316_v31 }
 0x18a   : > { %v798_v49 = vpop.eup %797 }
 0x18b   : > { %v388_v32 = vmul.f32 %v798_v49, %v316_v31  ;;  %vm394_vm6 = vweird.f32 %v798_v49 }
 0x18c   : > { %vm395_vm8 = vmor %vm393_vm7, %vm394_vm6 }
 0x18d   : > { %v389_v33 = vmul.f32 %v798_v49, %v388_v32 }
 0x18f   : > { %v390_v34 = vmul.f32 0.5, %v389_v33 }
 0x191   : > { %v391_v28 = vsub.f32 1.5, %v390_v34 }
 0x193   : > { %v392_v37 = vmul.f32 %v798_v49, %v391_v28 }
 0x195   : > { %v396_v13 = vsel %vm395_vm8, %v798_v49, %v392_v37 }
 0x196   : > { %v404_v42 = vmul.f32 %v396_v13, %v1105_v1  ;;  %v1186_v1 = vperm.slane %v493_v35, 2 }
 0x197   : > { %v520_v45 = vpop.f32.mrf.mxu0  ;;  %v561_v46 = vpop.f32.mrf.mxu1 }
 0x198   : > { %v521_v47 = vadd.f32 %v520_v45, %v1170_v39  ;;  %v562_v48 = vadd.f32 %v561_v46, %v1172_v40  ;;  %v416_v50 = vmul.f32 %v1119_v21, %v404_v42 }
 0x19a   : > { %667 = vst [vmem:[%s1178_s24] sm:$0xff] %v521_v47  ;;  %v428_v51 = vadd.f32 %v1128_v26, %v416_v50 }
 0x19b   : > { %668 = vst [vmem:[%s1178_s24 + $0x8] sm:$0xff] %v562_v48 }
 0x19c   : > { %540 = vmatmul.f32.gmra.mxu0 %v428_v51  ;;  %581 = vmatmul.f32.gmra.mxu1 %v428_v51 }
 0x19d   : > { %622 = vmatmul.f32.gmra.mxu2 %v428_v51  ;;  %663 = vmatmul.f32.gmra.mxu3 %v428_v51 }
 0x19e   : > { %v602_v53 = vpop.f32.mrf.mxu2  ;;  %v643_v54 = vpop.f32.mrf.mxu3 }
 0x19f   : > { %v603_v21 = vadd.f32 %v602_v53, %v1186_v1  ;;  %v644_v55 = vadd.f32 %v643_v54, %v1188_v52  ;;  %v523_v26 = vpop.f32.mrf.mxu0  ;;  %v564_v56 = vpop.f32.mrf.mxu1 }
 0x1a0   : > { %v524_v57 = vadd.f32 %v523_v26, %v1170_v39  ;;  %v565_v58 = vadd.f32 %v564_v56, %v1172_v40 }
 0x1a1   : > { %669 = vst [vmem:[%s1178_s24 + $0x10] sm:$0xff] %v603_v21 }
 0x1a2   : > { %670 = vst [vmem:[%s1178_s24 + $0x18] sm:$0xff] %v644_v55 }
 0x1a3   : > { %671 = vst [vmem:[%s1178_s24 + $0x20] sm:$0xff] %v524_v57 }
 0x1a4   : > { %672 = vst [vmem:[%s1178_s24 + $0x28] sm:$0xff] %v565_v58 }
 0x1a6   : > { %v605_v59 = vpop.f32.mrf.mxu2  ;;  %v646_v38 = vpop.f32.mrf.mxu3 }
 0x1a7   : > { %v606_v60 = vadd.f32 %v605_v59, %v1186_v1  ;;  %v647_v61 = vadd.f32 %v646_v38, %v1188_v52  ;;  %v526_v62 = vpop.f32.mrf.mxu0  ;;  %v567_v63 = vpop.f32.mrf.mxu1 }
 0x1a8   : > { %v527_v0 = vadd.f32 %v526_v62, %v1170_v39  ;;  %v568_v2 = vadd.f32 %v567_v63, %v1172_v40 }
 0x1a9   : > { %673 = vst [vmem:[%s1178_s24 + $0x30] sm:$0xff] %v606_v60 }
 0x1aa   : > { %674 = vst [vmem:[%s1178_s24 + $0x38] sm:$0xff] %v647_v61 }
 0x1ab   : > { %675 = vst [vmem:[%s1178_s24 + $0x40] sm:$0xff] %v527_v0 }
 0x1ac   : > { %676 = vst [vmem:[%s1178_s24 + $0x48] sm:$0xff] %v568_v2 }
 0x1ae   : > { %v608_v3 = vpop.f32.mrf.mxu2  ;;  %v649_v27 = vpop.f32.mrf.mxu3 }
 0x1af   : > { %v609_v4 = vadd.f32 %v608_v3, %v1186_v1  ;;  %v650_v5 = vadd.f32 %v649_v27, %v1188_v52  ;;  %v529_v6 = vpop.f32.mrf.mxu0  ;;  %v570_v7 = vpop.f32.mrf.mxu1 }
 0x1b0   : > { %v530_v8 = vadd.f32 %v529_v6, %v1170_v39  ;;  %v571_v9 = vadd.f32 %v570_v7, %v1172_v40 }
 0x1b1   : > { %677 = vst [vmem:[%s1178_s24 + $0x50] sm:$0xff] %v609_v4 }
 0x1b2   : > { %678 = vst [vmem:[%s1178_s24 + $0x58] sm:$0xff] %v650_v5 }
 0x1b3   : > { %679 = vst [vmem:[%s1178_s24 + $0x60] sm:$0xff] %v530_v8 }
 0x1b4   : > { %680 = vst [vmem:[%s1178_s24 + $0x68] sm:$0xff] %v571_v9 }
 0x1b6   : > { %v611_v10 = vpop.f32.mrf.mxu2  ;;  %v652_v11 = vpop.f32.mrf.mxu3 }
 0x1b7   : > { %v612_v44 = vadd.f32 %v611_v10, %v1186_v1  ;;  %v653_v41 = vadd.f32 %v652_v11, %v1188_v52  ;;  %v532_v12 = vpop.f32.mrf.mxu0  ;;  %v573_v14 = vpop.f32.mrf.mxu1 }
 0x1b8   : > { %v533_v15 = vadd.f32 %v532_v12, %v1170_v39  ;;  %v574_v16 = vadd.f32 %v573_v14, %v1172_v40 }
 0x1b9   : > { %681 = vst [vmem:[%s1178_s24 + $0x70] sm:$0xff] %v612_v44 }
 0x1ba   : > { %682 = vst [vmem:[%s1178_s24 + $0x78] sm:$0xff] %v653_v41 }
 0x1bb   : > { %683 = vst [vmem:[%s1178_s24 + $0x80] sm:$0xff] %v533_v15 }
 0x1bc   : > { %684 = vst [vmem:[%s1178_s24 + $0x88] sm:$0xff] %v574_v16 }
 0x1be   : > { %v614_v17 = vpop.f32.mrf.mxu2  ;;  %v655_v18 = vpop.f32.mrf.mxu3 }
 0x1bf   : > { %v615_v19 = vadd.f32 %v614_v17, %v1186_v1  ;;  %v656_v43 = vadd.f32 %v655_v18, %v1188_v52  ;;  %v535_v20 = vpop.f32.mrf.mxu0  ;;  %v576_v22 = vpop.f32.mrf.mxu1 }
 0x1c0   : > { %v536_v23 = vadd.f32 %v535_v20, %v1170_v39  ;;  %v577_v24 = vadd.f32 %v576_v22, %v1172_v40 }
 0x1c1   : > { %685 = vst [vmem:[%s1178_s24 + $0x90] sm:$0xff] %v615_v19 }
 0x1c2   : > { %686 = vst [vmem:[%s1178_s24 + $0x98] sm:$0xff] %v656_v43 }
 0x1c3   : > { %687 = vst [vmem:[%s1178_s24 + $0xa0] sm:$0xff] %v536_v23 }
 0x1c4   : > { %688 = vst [vmem:[%s1178_s24 + $0xa8] sm:$0xff] %v577_v24 }
 0x1c6   : > { %v617_v36 = vpop.f32.mrf.mxu2  ;;  %v658_v25 = vpop.f32.mrf.mxu3 }
 0x1c7   : > { %v618_v29 = vadd.f32 %v617_v36, %v1186_v1  ;;  %v659_v30 = vadd.f32 %v658_v25, %v1188_v52  ;;  %v538_v31 = vpop.f32.mrf.mxu0  ;;  %v579_v49 = vpop.f32.mrf.mxu1 }
 0x1c8   : > { %v539_v32 = vadd.f32 %v538_v31, %v1170_v39  ;;  %v580_v33 = vadd.f32 %v579_v49, %v1172_v40 }
 0x1c9   : > { %689 = vst [vmem:[%s1178_s24 + $0xb0] sm:$0xff] %v618_v29 }
 0x1ca   : > { %690 = vst [vmem:[%s1178_s24 + $0xb8] sm:$0xff] %v659_v30 }
 0x1cb   : > { %691 = vst [vmem:[%s1178_s24 + $0xc0] sm:$0xff] %v539_v32 }
 0x1cc   : > { %692 = vst [vmem:[%s1178_s24 + $0xc8] sm:$0xff] %v580_v33 }
 0x1ce   : > { %v620_v34 = vpop.f32.mrf.mxu2  ;;  %v661_v28 = vpop.f32.mrf.mxu3 }
 0x1cf   : > { %v621_v35 = vadd.f32 %v620_v34, %v1186_v1  ;;  %v662_v37 = vadd.f32 %v661_v28, %v1188_v52 }
 0x1d1   : > { %693 = vst [vmem:[%s1178_s24 + $0xd0] sm:$0xff] %v621_v35 }
 0x1d2   : > { %694 = vst [vmem:[%s1178_s24 + $0xd8] sm:$0xff] %v662_v37 }
 0x219   : > { %v541_v13 = vpop.f32.mrf.mxu0  ;;  %v582_v42 = vpop.f32.mrf.mxu1 }
 0x21a   : > { %v542_v45 = vadd.f32 %v541_v13, %v1170_v39  ;;  %v583_v46 = vadd.f32 %v582_v42, %v1172_v40 }
 0x21c   : > { %695 = vst [vmem:[%s1178_s24 + $0xe0] sm:$0xff] %v542_v45 }
 0x21d   : > { %696 = vst [vmem:[%s1178_s24 + $0xe8] sm:$0xff] %v583_v46 }
 0x220   : > { %v623_v47 = vpop.f32.mrf.mxu2  ;;  %v664_v48 = vpop.f32.mrf.mxu3 }
 0x221   : > { %v624_v50 = vadd.f32 %v623_v47, %v1186_v1  ;;  %v665_v51 = vadd.f32 %v664_v48, %v1188_v52 }
 0x223   : > { %697 = vst [vmem:[%s1178_s24 + $0xf0] sm:$0xff] %v624_v50 }
 0x224   : > { %698 = vst [vmem:[%s1178_s24 + $0xf8] sm:$0xff] %v665_v51 }
 0x225 PF: > { %s15_s18 = sadd.s32 1, %s805_s18  }
 0x226   : > { %p12_p4 = scmp.ge.s32.totalorder %s15_s18, 4  }
 0x228   :  { %14 = sbr.rel (!%p12_p4) target bundleno = 1 (0x1), region = 70 }

</bundles_post_ra>
